<compile_context>
chip_gen: v7x
topology: tpu7x:2x2x1
jax: 0.10.0
libtpu: 0.0.40
codegen_flags: <defaults>
</compile_context>

<pallas_src>
import functools

import jax
import jax.numpy as jnp
import numpy as np
from jax.experimental import pallas as pl
from jax.experimental.pallas import tpu as pltpu


# ----------------------------- helpers ------------------------------------- #

def _round_up(x, m):
    return ((x + m - 1) // m) * m


def _pad2(a, rows, cols):
    return jnp.pad(a, ((0, rows - a.shape[0]), (0, cols - a.shape[1])))


def _vmem_limit_bytes(n_pad, e_pad, c_pad):
    f32 = 4
    resident = (2 * n_pad * e_pad            # incidence + incidence^T
                + 3 * n_pad * c_pad          # x_init, x state (+ slack)
                + e_pad * c_pad)             # x_1
    per_layer = c_pad * c_pad + c_pad        # W_l, b_l
    # Assume worst-case double buffering everywhere + 4 MiB headroom.
    need = f32 * (2 * resident + 2 * per_layer) + (4 << 20)
    try:
        cap = pltpu.get_tpu_info().vmem_capacity_bytes
    except Exception:
        cap = 64 << 20                       # conservative (v7x) fallback
    return int(min(max(need, 32 << 20), int(0.9 * cap)))


# ----------------------------- kernel -------------------------------------- #

def _unigin_fused_kernel(inc_t_ref, inc_ref, xinit_ref, w_ref, b_ref,
                         x_out_ref, x1_out_ref, *, eps):
    """One grid step == one UniGIN layer; x_out_ref carries x across layers."""

    @pl.when(pl.program_id(0) == 0)
    def _():
        # Seed the VMEM-resident node-feature state with the initial Linear
        # output (computed once in the wrapper).
        x_out_ref[...] = xinit_ref[...]

    x = x_out_ref[...]                                   # (N, C) f32 state

    # x_1 = incidence^T @ x : node -> edge.  Plain last/first-dim contraction
    # on the resident transposed incidence (no per-layer XLU transpose); the
    # result lands directly in the x_1 output block (no extra temporary).
    x1_out_ref[...] = jnp.dot(inc_t_ref[...], x,
                              preferred_element_type=jnp.float32)

    # m = incidence @ x_1 : edge -> node, LHS and RHS straight from VMEM blocks.
    m = jnp.dot(inc_ref[...], x1_out_ref[...],
                preferred_element_type=jnp.float32)

    # GIN update: Linear((1 + eps) * x + m); layer_drop == identity; ReLU.
    z = (1.0 + eps) * x + m
    y = jnp.dot(z, w_ref[...], preferred_element_type=jnp.float32) + b_ref[...]
    x_out_ref[...] = jnp.maximum(y, 0.0)


# ----------------------------- wrapper -------------------------------------- #

def unigin_forward(x_0, incidence_1, params, *, eps=0.0):
    """Full UniGIN forward (eval mode); message passing fused in one pallas_call."""
    w0, b0 = params["initial"]
    layer_ws = [w for (w, _) in params["layers"]]
    layer_bs = [b for (_, b) in params["layers"]]
    n_layers = len(layer_ws)

    n, e = incidence_1.shape
    c = w0.shape[1]

    # Initial Linear once in plain XLA (used only at step 0; keeping its
    # operands VMEM-resident across the whole grid would waste VMEM).
    x_init = x_0.astype(jnp.float32) @ w0 + b0           # (N, C)

    # Contraction dims N and E: 256-multiples (v6e/v7x MXU width) when the
    # resident incidence stays small, otherwise 128-multiples; channels -> 128.
    n_pad, e_pad = _round_up(n, 256), _round_up(e, 256)
    if 2 * 4 * n_pad * e_pad > (24 << 20):
        n_pad, e_pad = _round_up(n, 128), _round_up(e, 128)
    c_pad = _round_up(c, 128)

    inc_p = _pad2(incidence_1.astype(jnp.float32), n_pad, e_pad)             # (N, E)
    inc_t_p = inc_p.T                                                        # (E, N), one-time XLA transpose
    xinit_p = _pad2(x_init, n_pad, c_pad)                                    # (N, C)
    w_p = jnp.stack([_pad2(w, c_pad, c_pad) for w in layer_ws])              # (L, C, C)
    b_p = jnp.stack([_pad2(b.reshape(1, -1), 1, c_pad) for b in layer_bs])   # (L, 1, C)

    kernel = functools.partial(_unigin_fused_kernel, eps=eps)

    flops = n_layers * (4 * n_pad * e_pad * c_pad + 2 * n_pad * c_pad * c_pad)
    bytes_accessed = 4 * (2 * n_pad * e_pad + n_pad * c_pad
                          + n_layers * (c_pad * c_pad + c_pad)
                          + n_pad * c_pad + e_pad * c_pad)

    compiler_params = pltpu.CompilerParams(
        dimension_semantics=("arbitrary",),              # layers are sequential
        vmem_limit_bytes=_vmem_limit_bytes(n_pad, e_pad, c_pad),
    )
    out_shape = (jax.ShapeDtypeStruct((n_pad, c_pad), jnp.float32),
                 jax.ShapeDtypeStruct((e_pad, c_pad), jnp.float32))

    def build(single_buffer_residents):
        def const_spec(shape):
            nd = len(shape)

            def zero_map(l):
                return (0,) * nd

            if single_buffer_residents:
                # Block index never changes -> one VMEM buffer is enough.
                return pl.BlockSpec(shape, zero_map, pipeline_mode=pl.Buffered(1))
            return pl.BlockSpec(shape, zero_map)

        in_specs = [
            const_spec((e_pad, n_pad)),                               # incidence^T
            const_spec((n_pad, e_pad)),                               # incidence
            const_spec((n_pad, c_pad)),                               # x_init
            pl.BlockSpec((None, c_pad, c_pad), lambda l: (l, 0, 0)),  # W_l (prefetched)
            pl.BlockSpec((None, 1, c_pad), lambda l: (l, 0, 0)),      # b_l
        ]
        out_specs = [
            const_spec((n_pad, c_pad)),                               # x (carried state)
            const_spec((e_pad, c_pad)),                               # x_1
        ]
        return pl.pallas_call(
            kernel,
            grid=(n_layers,),
            in_specs=in_specs,
            out_specs=out_specs,
            out_shape=out_shape,
            compiler_params=compiler_params,
            cost_estimate=pl.CostEstimate(flops=flops, transcendentals=0,
                                          bytes_accessed=bytes_accessed),
        )

    args = (inc_t_p, inc_p, xinit_p, w_p, b_p)
    try:
        x_p, x1_p = build(True)(*args)
        jax.block_until_ready((x_p, x1_p))
    except Exception:
        # pipeline_mode=pl.Buffered(1) not accepted on top-level specs in this
        # build -> fall back to default (double) buffering.
        x_p, x1_p = build(False)(*args)

    return x_p[:n, :c], x1_p[:e, :c]


# --------------------------- reference (pure JAX) --------------------------- #

def unigin_reference(x_0, incidence_1, params, *, eps=0.0):
    w0, b0 = params["initial"]
    x = x_0 @ w0 + b0
    x_1 = None
    for (w, b) in params["layers"]:
        x_1 = incidence_1.T @ x
        m = incidence_1 @ x_1
        x = jnp.maximum(((1.0 + eps) * x + m) @ w + b, 0.0)
    return x, x_1


# ------------------------------- main --------------------------------------- #

def make_params(key, in_channels, hidden_channels, n_layers):
    """Deterministic synthetic params (torch Linear shapes, pre-transposed to (in, out))."""
    keys = jax.random.split(key, 2 * (n_layers + 1))
    params = {}
    scale0 = 1.0 / np.sqrt(in_channels)
    params["initial"] = (
        jax.random.uniform(keys[0], (in_channels, hidden_channels),
                           jnp.float32, -scale0, scale0),
        jax.random.uniform(keys[1], (1, hidden_channels),
                           jnp.float32, -scale0, scale0),
    )
    layers = []
    scale = 1.0 / np.sqrt(hidden_channels)
    for l in range(n_layers):
        w = jax.random.uniform(keys[2 + 2 * l], (hidden_channels, hidden_channels),
                               jnp.float32, -scale, scale)
        b = jax.random.uniform(keys[3 + 2 * l], (1, hidden_channels),
                               jnp.float32, -scale, scale)
        layers.append((w, b))
    params["layers"] = layers
    return params


if __name__ == "__main__":
    n_nodes = 16
    n_edges = 16
    in_channels = 8
    hidden_channels = 32
    n_layers = 2
    eps = 0.0

    key = jax.random.PRNGKey(0)
    k_x, k_inc, k_p = jax.random.split(key, 3)

    x_0 = jax.random.normal(k_x, (n_nodes, in_channels), jnp.float32)
    # Binary incidence matrix (boundary matrix of rank 1).
    incidence_1 = (jax.random.uniform(k_inc, (n_nodes, n_edges)) < 0.3).astype(jnp.float32)

    params = make_params(k_p, in_channels, hidden_channels, n_layers)

    x0_out, x1_out = unigin_forward(x_0, incidence_1, params, eps=eps)
    jax.block_until_ready((x0_out, x1_out))

    x0_ref, x1_ref = unigin_reference(x_0, incidence_1, params, eps=eps)
    np.testing.assert_allclose(np.asarray(x0_out), np.asarray(x0_ref), rtol=1e-4, atol=1e-4)
    np.testing.assert_allclose(np.asarray(x1_out), np.asarray(x1_ref), rtol=1e-4, atol=1e-4)

    print("KERNEL_OK")
</pallas_src>

<mosaic_0001>
module attributes {stable_mosaic.version = 11 : i64} {
  func.func @_unigin_fused_kernel(%arg0: i32, %arg1: memref<256x256xf32, #tpu.memory_space<vmem>>, %arg2: memref<256x256xf32, #tpu.memory_space<vmem>>, %arg3: memref<256x128xf32, #tpu.memory_space<vmem>>, %arg4: memref<1x128x128xf32, #tpu.memory_space<vmem>>, %arg5: memref<1x1x128xf32, #tpu.memory_space<vmem>>, %arg6: memref<256x128xf32, #tpu.memory_space<vmem>>, %arg7: memref<256x128xf32, #tpu.memory_space<vmem>>) attributes {dimension_semantics = [#tpu.dimension_semantics<arbitrary>], iteration_bounds = array<i64: 2>, scalar_prefetch = 0 : i64, scratch_operands = 0 : i64, tpu.core_type = #tpu.core_type<tc>, window_params = [{pipeline_mode = #tpu.pipeline_mode<synchronous>, transform_indices = @transform_0, window_bounds = array<i64: 256, 256>}, {pipeline_mode = #tpu.pipeline_mode<synchronous>, transform_indices = @transform_1, window_bounds = array<i64: 256, 256>}, {pipeline_mode = #tpu.pipeline_mode<synchronous>, transform_indices = @transform_2, window_bounds = array<i64: 256, 128>}, {transform_indices = @transform_3, window_bounds = array<i64: 1, 128, 128>}, {transform_indices = @transform_4, window_bounds = array<i64: 1, 1, 128>}, {pipeline_mode = #tpu.pipeline_mode<synchronous>, transform_indices = @transform_5, window_bounds = array<i64: 256, 128>}, {pipeline_mode = #tpu.pipeline_mode<synchronous>, transform_indices = @transform_6, window_bounds = array<i64: 256, 128>}]} {
    %c0_i32 = arith.constant 0 : i32
    %0 = arith.cmpi eq, %arg0, %c0_i32 : i32
    %1 = arith.extui %0 : i1 to i32
    %c0_i32_0 = arith.constant 0 : i32
    %2 = arith.cmpi ne, %1, %c0_i32_0 : i32
    scf.if %2 {
      %c0_22 = arith.constant 0 : index
      %c0_23 = arith.constant 0 : index
      %23 = vector.load %arg3[%c0_22, %c0_23] : memref<256x128xf32, #tpu.memory_space<vmem>>, vector<256x128xf32>
      %c0_24 = arith.constant 0 : index
      %c0_25 = arith.constant 0 : index
      %24 = vector.load %arg6[%c0_24, %c0_25] : memref<256x128xf32, #tpu.memory_space<vmem>>, vector<256x128xf32>
      tpu.vector_store %arg6[%c0_24, %c0_25], %23 {strides = array<i32>} : memref<256x128xf32, #tpu.memory_space<vmem>>, vector<256x128xf32>,
    } else {
    }
    %c0 = arith.constant 0 : index
    %c0_1 = arith.constant 0 : index
    %3 = vector.load %arg6[%c0, %c0_1] : memref<256x128xf32, #tpu.memory_space<vmem>>, vector<256x128xf32>
    %c0_2 = arith.constant 0 : index
    %c0_3 = arith.constant 0 : index
    %4 = vector.load %arg1[%c0_2, %c0_3] : memref<256x256xf32, #tpu.memory_space<vmem>>, vector<256x256xf32>
    %cst = arith.constant dense<0.000000e+00> : vector<256x128xf32>
    %5 = tpu.matmul %4, %3, %cst {dimension_numbers = #tpu.dot_dimension_numbers<[1], [0], [0], [1], [0, 0, 1, 1], [], []>} : vector<256x256xf32>, vector<256x128xf32>, vector<256x128xf32> -> vector<256x128xf32>
    %c0_4 = arith.constant 0 : index
    %c0_5 = arith.constant 0 : index
    %6 = vector.load %arg7[%c0_4, %c0_5] : memref<256x128xf32, #tpu.memory_space<vmem>>, vector<256x128xf32>
    tpu.vector_store %arg7[%c0_4, %c0_5], %5 {strides = array<i32>} : memref<256x128xf32, #tpu.memory_space<vmem>>, vector<256x128xf32>,
    %c0_6 = arith.constant 0 : index
    %c0_7 = arith.constant 0 : index
    %7 = vector.load %arg2[%c0_6, %c0_7] : memref<256x256xf32, #tpu.memory_space<vmem>>, vector<256x256xf32>
    %c0_8 = arith.constant 0 : index
    %c0_9 = arith.constant 0 : index
    %8 = vector.load %arg7[%c0_8, %c0_9] : memref<256x128xf32, #tpu.memory_space<vmem>>, vector<256x128xf32>
    %cst_10 = arith.constant dense<0.000000e+00> : vector<256x128xf32>
    %9 = tpu.matmul %7, %8, %cst_10 {dimension_numbers = #tpu.dot_dimension_numbers<[1], [0], [0], [1], [0, 0, 1, 1], [], []>} : vector<256x256xf32>, vector<256x128xf32>, vector<256x128xf32> -> vector<256x128xf32>
    %cst_11 = arith.constant 1.000000e+00 : f32
    %10 = vector.broadcast %cst_11 : f32 to vector<256x128xf32>
    %11 = arith.mulf %10, %3 : vector<256x128xf32>
    %12 = arith.addf %11, %9 : vector<256x128xf32>
    %c0_12 = arith.constant 0 : index
    %c0_13 = arith.constant 0 : index
    %c0_14 = arith.constant 0 : index
    %13 = vector.load %arg4[%c0_12, %c0_13, %c0_14] : memref<1x128x128xf32, #tpu.memory_space<vmem>>, vector<1x128x128xf32>
    %14 = vector.shape_cast %13 : vector<1x128x128xf32> to vector<128x128xf32>
    %cst_15 = arith.constant dense<0.000000e+00> : vector<256x128xf32>
    %15 = tpu.matmul %12, %14, %cst_15 {dimension_numbers = #tpu.dot_dimension_numbers<[1], [0], [0], [1], [0, 0, 1, 1], [], []>} : vector<256x128xf32>, vector<128x128xf32>, vector<256x128xf32> -> vector<256x128xf32>
    %c0_16 = arith.constant 0 : index
    %c0_17 = arith.constant 0 : index
    %c0_18 = arith.constant 0 : index
    %16 = vector.load %arg5[%c0_16, %c0_17, %c0_18] : memref<1x1x128xf32, #tpu.memory_space<vmem>>, vector<1x1x128xf32>
    %17 = vector.shape_cast %16 : vector<1x1x128xf32> to vector<1x128xf32>
    %18 = vector.broadcast %17 : vector<1x128xf32> to vector<256x128xf32>
    %19 = arith.addf %15, %18 : vector<256x128xf32>
    %cst_19 = arith.constant 0.000000e+00 : f32
    %20 = vector.broadcast %cst_19 : f32 to vector<256x128xf32>
    %21 = arith.maximumf %19, %20 : vector<256x128xf32>
    %c0_20 = arith.constant 0 : index
    %c0_21 = arith.constant 0 : index
    %22 = vector.load %arg6[%c0_20, %c0_21] : memref<256x128xf32, #tpu.memory_space<vmem>>, vector<256x128xf32>
    tpu.vector_store %arg6[%c0_20, %c0_21], %21 {strides = array<i32>} : memref<256x128xf32, #tpu.memory_space<vmem>>, vector<256x128xf32>,
    return
  }
  func.func @transform_0(%arg0: i32) -> (i32, i32) {
    %c0_i32 = arith.constant 0 : i32
    %c0_i32_0 = arith.constant 0 : i32
    %c0_i32_1 = arith.constant 0 : i32
    return %c0_i32, %c0_i32_0 : i32, i32
  }
  func.func @transform_1(%arg0: i32) -> (i32, i32) {
    %c0_i32 = arith.constant 0 : i32
    %c0_i32_0 = arith.constant 0 : i32
    %c0_i32_1 = arith.constant 0 : i32
    return %c0_i32, %c0_i32_0 : i32, i32
  }
  func.func @transform_2(%arg0: i32) -> (i32, i32) {
    %c0_i32 = arith.constant 0 : i32
    %c0_i32_0 = arith.constant 0 : i32
    %c0_i32_1 = arith.constant 0 : i32
    return %c0_i32, %c0_i32_0 : i32, i32
  }
  func.func @transform_3(%arg0: i32) -> (i32, i32, i32) {
    %c0_i32 = arith.constant 0 : i32
    %c0_i32_0 = arith.constant 0 : i32
    %c0_i32_1 = arith.constant 0 : i32
    return %arg0, %c0_i32, %c0_i32_0 : i32, i32, i32
  }
  func.func @transform_4(%arg0: i32) -> (i32, i32, i32) {
    %c0_i32 = arith.constant 0 : i32
    %c0_i32_0 = arith.constant 0 : i32
    %c0_i32_1 = arith.constant 0 : i32
    return %arg0, %c0_i32, %c0_i32_0 : i32, i32, i32
  }
  func.func @transform_5(%arg0: i32) -> (i32, i32) {
    %c0_i32 = arith.constant 0 : i32
    %c0_i32_0 = arith.constant 0 : i32
    %c0_i32_1 = arith.constant 0 : i32
    return %c0_i32, %c0_i32_0 : i32, i32
  }
  func.func @transform_6(%arg0: i32) -> (i32, i32) {
    %c0_i32 = arith.constant 0 : i32
    %c0_i32_0 = arith.constant 0 : i32
    %c0_i32_1 = arith.constant 0 : i32
    return %c0_i32, %c0_i32_0 : i32, i32
  }
}

module attributes {stable_mosaic.version = 11 : i64} {
  func.func @_unigin_fused_kernel(%arg0: i32, %arg1: memref<256x256xf32, #tpu.memory_space<vmem>>, %arg2: memref<256x256xf32, #tpu.memory_space<vmem>>, %arg3: memref<256x128xf32, #tpu.memory_space<vmem>>, %arg4: memref<1x128x128xf32, #tpu.memory_space<vmem>>, %arg5: memref<1x1x128xf32, #tpu.memory_space<vmem>>, %arg6: memref<256x128xf32, #tpu.memory_space<vmem>>, %arg7: memref<256x128xf32, #tpu.memory_space<vmem>>) attributes {dimension_semantics = [#tpu.dimension_semantics<arbitrary>], iteration_bounds = array<i64: 2>, scalar_prefetch = 0 : i64, scratch_operands = 0 : i64, tpu.core_type = #tpu.core_type<tc>, window_params = [{pipeline_mode = #tpu.pipeline_mode<synchronous>, transform_indices = @transform_0, window_bounds = array<i64: 256, 256>}, {pipeline_mode = #tpu.pipeline_mode<synchronous>, transform_indices = @transform_1, window_bounds = array<i64: 256, 256>}, {pipeline_mode = #tpu.pipeline_mode<synchronous>, transform_indices = @transform_2, window_bounds = array<i64: 256, 128>}, {transform_indices = @transform_3, window_bounds = array<i64: 1, 128, 128>}, {transform_indices = @transform_4, window_bounds = array<i64: 1, 1, 128>}, {pipeline_mode = #tpu.pipeline_mode<synchronous>, transform_indices = @transform_5, window_bounds = array<i64: 256, 128>}, {pipeline_mode = #tpu.pipeline_mode<synchronous>, transform_indices = @transform_6, window_bounds = array<i64: 256, 128>}]} {
    %c0_i32 = arith.constant 0 : i32
    %0 = arith.cmpi eq, %arg0, %c0_i32 : i32
    %1 = arith.extui %0 : i1 to i32
    %c0_i32_0 = arith.constant 0 : i32
    %2 = arith.cmpi ne, %1, %c0_i32_0 : i32
    scf.if %2 {
      %c0_22 = arith.constant 0 : index
      %c0_23 = arith.constant 0 : index
      %23 = vector.load %arg3[%c0_22, %c0_23] : memref<256x128xf32, #tpu.memory_space<vmem>>, vector<256x128xf32>
      %c0_24 = arith.constant 0 : index
      %c0_25 = arith.constant 0 : index
      %24 = vector.load %arg6[%c0_24, %c0_25] : memref<256x128xf32, #tpu.memory_space<vmem>>, vector<256x128xf32>
      tpu.vector_store %arg6[%c0_24, %c0_25], %23 {strides = array<i32>} : memref<256x128xf32, #tpu.memory_space<vmem>>, vector<256x128xf32>,
    } else {
    }
    %c0 = arith.constant 0 : index
    %c0_1 = arith.constant 0 : index
    %3 = vector.load %arg6[%c0, %c0_1] : memref<256x128xf32, #tpu.memory_space<vmem>>, vector<256x128xf32>
    %c0_2 = arith.constant 0 : index
    %c0_3 = arith.constant 0 : index
    %4 = vector.load %arg1[%c0_2, %c0_3] : memref<256x256xf32, #tpu.memory_space<vmem>>, vector<256x256xf32>
    %cst = arith.constant dense<0.000000e+00> : vector<256x128xf32>
    %5 = tpu.matmul %4, %3, %cst {dimension_numbers = #tpu.dot_dimension_numbers<[1], [0], [0], [1], [0, 0, 1, 1], [], []>} : vector<256x256xf32>, vector<256x128xf32>, vector<256x128xf32> -> vector<256x128xf32>
    %c0_4 = arith.constant 0 : index
    %c0_5 = arith.constant 0 : index
    %6 = vector.load %arg7[%c0_4, %c0_5] : memref<256x128xf32, #tpu.memory_space<vmem>>, vector<256x128xf32>
    tpu.vector_store %arg7[%c0_4, %c0_5], %5 {strides = array<i32>} : memref<256x128xf32, #tpu.memory_space<vmem>>, vector<256x128xf32>,
    %c0_6 = arith.constant 0 : index
    %c0_7 = arith.constant 0 : index
    %7 = vector.load %arg2[%c0_6, %c0_7] : memref<256x256xf32, #tpu.memory_space<vmem>>, vector<256x256xf32>
    %c0_8 = arith.constant 0 : index
    %c0_9 = arith.constant 0 : index
    %8 = vector.load %arg7[%c0_8, %c0_9] : memref<256x128xf32, #tpu.memory_space<vmem>>, vector<256x128xf32>
    %cst_10 = arith.constant dense<0.000000e+00> : vector<256x128xf32>
    %9 = tpu.matmul %7, %8, %cst_10 {dimension_numbers = #tpu.dot_dimension_numbers<[1], [0], [0], [1], [0, 0, 1, 1], [], []>} : vector<256x256xf32>, vector<256x128xf32>, vector<256x128xf32> -> vector<256x128xf32>
    %cst_11 = arith.constant 1.000000e+00 : f32
    %10 = vector.broadcast %cst_11 : f32 to vector<256x128xf32>
    %11 = arith.mulf %10, %3 : vector<256x128xf32>
    %12 = arith.addf %11, %9 : vector<256x128xf32>
    %c0_12 = arith.constant 0 : index
    %c0_13 = arith.constant 0 : index
    %c0_14 = arith.constant 0 : index
    %13 = vector.load %arg4[%c0_12, %c0_13, %c0_14] : memref<1x128x128xf32, #tpu.memory_space<vmem>>, vector<1x128x128xf32>
    %14 = vector.shape_cast %13 : vector<1x128x128xf32> to vector<128x128xf32>
    %cst_15 = arith.constant dense<0.000000e+00> : vector<256x128xf32>
    %15 = tpu.matmul %12, %14, %cst_15 {dimension_numbers = #tpu.dot_dimension_numbers<[1], [0], [0], [1], [0, 0, 1, 1], [], []>} : vector<256x128xf32>, vector<128x128xf32>, vector<256x128xf32> -> vector<256x128xf32>
    %c0_16 = arith.constant 0 : index
    %c0_17 = arith.constant 0 : index
    %c0_18 = arith.constant 0 : index
    %16 = vector.load %arg5[%c0_16, %c0_17, %c0_18] : memref<1x1x128xf32, #tpu.memory_space<vmem>>, vector<1x1x128xf32>
    %17 = vector.shape_cast %16 : vector<1x1x128xf32> to vector<1x128xf32>
    %18 = vector.broadcast %17 : vector<1x128xf32> to vector<256x128xf32>
    %19 = arith.addf %15, %18 : vector<256x128xf32>
    %cst_19 = arith.constant 0.000000e+00 : f32
    %20 = vector.broadcast %cst_19 : f32 to vector<256x128xf32>
    %21 = arith.maximumf %19, %20 : vector<256x128xf32>
    %c0_20 = arith.constant 0 : index
    %c0_21 = arith.constant 0 : index
    %22 = vector.load %arg6[%c0_20, %c0_21] : memref<256x128xf32, #tpu.memory_space<vmem>>, vector<256x128xf32>
    tpu.vector_store %arg6[%c0_20, %c0_21], %21 {strides = array<i32>} : memref<256x128xf32, #tpu.memory_space<vmem>>, vector<256x128xf32>,
    return
  }
  func.func @transform_0(%arg0: i32) -> (i32, i32) {
    %c0_i32 = arith.constant 0 : i32
    %c0_i32_0 = arith.constant 0 : i32
    %c0_i32_1 = arith.constant 0 : i32
    return %c0_i32, %c0_i32_0 : i32, i32
  }
  func.func @transform_1(%arg0: i32) -> (i32, i32) {
    %c0_i32 = arith.constant 0 : i32
    %c0_i32_0 = arith.constant 0 : i32
    %c0_i32_1 = arith.constant 0 : i32
    return %c0_i32, %c0_i32_0 : i32, i32
  }
  func.func @transform_2(%arg0: i32) -> (i32, i32) {
    %c0_i32 = arith.constant 0 : i32
    %c0_i32_0 = arith.constant 0 : i32
    %c0_i32_1 = arith.constant 0 : i32
    return %c0_i32, %c0_i32_0 : i32, i32
  }
  func.func @transform_3(%arg0: i32) -> (i32, i32, i32) {
    %c0_i32 = arith.constant 0 : i32
    %c0_i32_0 = arith.constant 0 : i32
    %c0_i32_1 = arith.constant 0 : i32
    return %arg0, %c0_i32, %c0_i32_0 : i32, i32, i32
  }
  func.func @transform_4(%arg0: i32) -> (i32, i32, i32) {
    %c0_i32 = arith.constant 0 : i32
    %c0_i32_0 = arith.constant 0 : i32
    %c0_i32_1 = arith.constant 0 : i32
    return %arg0, %c0_i32, %c0_i32_0 : i32, i32, i32
  }
  func.func @transform_5(%arg0: i32) -> (i32, i32) {
    %c0_i32 = arith.constant 0 : i32
    %c0_i32_0 = arith.constant 0 : i32
    %c0_i32_1 = arith.constant 0 : i32
    return %c0_i32, %c0_i32_0 : i32, i32
  }
  func.func @transform_6(%arg0: i32) -> (i32, i32) {
    %c0_i32 = arith.constant 0 : i32
    %c0_i32_0 = arith.constant 0 : i32
    %c0_i32_1 = arith.constant 0 : i32
    return %c0_i32, %c0_i32_0 : i32, i32
  }
}

</mosaic_0001>

<bundles_post_ra>
// kernel: tpu_custom_call.1
= control target key start
LH: loop header
LB: loop body
LE: loop exit
PB: predicated region body
PF: predicated region fallthrough
CT: control target
= control target key end

     0   :  { %12 = vsyncpa [#allocation3], 0  ;;  %s2567_s0 = inlined_call_operand.hbm [shape: f32[256,256], index: 0, kind: input, shape index: {}]   ;;  %s2568_s1 = inlined_call_operand.hbm [shape: f32[256,256], index: 1, kind: input, shape index: {}]   ;;  %s2569_s2 = inlined_call_operand.hbm [shape: f32[256,128], index: 2, kind: input, shape index: {}]   ;;  %s2570_s3 = inlined_call_operand.hbm [shape: f32[2,128,128], index: 3, kind: input, shape index: {}]   ;;  %s2571_s4 = inlined_call_operand.vmem [shape: f32[2,1,128], index: 4, kind: input, shape index: {}]   ;;  %s2572_s5 = inlined_call_operand.hbm [shape: f32[256,128], index: 5, kind: output, shape index: {0}]   ;;  %s2573_s6 = inlined_call_operand.hbm [shape: f32[256,128], index: 6, kind: output, shape index: {1}]  }
   0x1   :  { %13 = vsyncpa [#allocation6], 0 }
   0x2   :  { %14 = vsyncpa [#allocation9], 0 }
   0x3   :  { %16 = vsyncpa [#allocation9 + $0x1], 0 }
   0x4   :  { %17 = vsyncpa [#allocation4], 0 }
   0x5   :  { %18 = vsyncpa [#allocation12], 0  ;;  %s2208_s21 = smov 0   ;;  %s2210_s22 = smov 0  }
   0x6   :  { %s2212_s23 = smov 0   ;;  %s2214_s24 = smov 0  }
   0x7 LB: > { %s2227_s25 = sadd.s32 4294967295, %s2158_s24   ;;  %p107_p0 = scmp.ne.s32.totalorder %s2150_s22, %s2146_s21  ;;  %s2158_s24 = sphi %s2214_s24, %s2592_s24   ;;  %s2154_s23 = sphi %s2212_s23, %s2591_s23   ;;  %s2150_s22 = sphi %s2210_s22, %s2590_s22   ;;  %s2146_s21 = sphi %s2208_s21, %s2589_s21  }
   0x8   : > { %p2574_p1 = scmp.eq.s32.totalorder %s2227_s25, 0  ;;  %p1525_p2 = scmp.ge.s32.totalorder %s2158_s24, 1 }
   0x9   : > { %p186_p3 = scmp.lt.s32.totalorder %s2158_s24, 3  ;;  %s2160_s28 = smov [#allocation5]  }
   0xa   : > { %p2236_p5 = por %p2574_p1, %p107_p0  ;;  %s211_s29 = sshll.u32 %s2160_s28, 4  ;;  %s2246_s29 = int_to_ptr.vmem [resolvable:$true] %s211_s29 }
   0xb   : > { %p2240_p6 = pnand %p1525_p2, %p186_p3  ;;  %s2161_s7 = smov [#allocation2]  }
   0xc   : > { %s2577_s26 = scalar_select %p2236_p5, 1, 0 }
   0xd   : > { %s2578_s27 = scalar_select %p2240_p6, 1, 0 }
   0xe   : > { %p1841_p7 = pneg %p2240_p6  ;;  %s198_s8 = sshll.u32 %s2161_s7, 4  ;;  %s2254_s8 = int_to_ptr.vmem [resolvable:$true] %s198_s8 }
   0xf   : > { %s2162_s9 = smov [#allocation7]   ;;  %s1942_s13 = scalar_lea.hbm %s2568_s1, 8192 }
  0x10   : > { %p2250_p8 = pnand %p1841_p7, %p2574_p1  ;;  %s2256_s10 = sshll.u32 %s2162_s9, 4  ;;  %s225_s10 = int_to_ptr.vmem [resolvable:$true] %s2256_s10 }
  0x11   : > { %p1943_p9 = scmp.ne.s32.totalorder %s2568_s1, %s1942_s13  ;;  %p1949_p13 = scmp.lt.u32.totalorder %s1942_s13, %s2568_s1 }
  0x12   : > { %p2266_p10 = pneg %p2250_p8 }
  0x14   : > { %p1945_p11 = pnand %p2266_p10, %p1943_p9 }
  0x16   : > { %p1946_p12 = pneg %p1945_p11 }
  0x18   : > { %p1951_p0 = pnand %p1949_p13, %p1946_p12 }
  0x1a   : > { %1954 = shalt.err (!%p1951_p0)
}
  0x1b   : > { %s1955_s19 = scalar_lea.vmem %s2246_s29, 8192  ;;  %p1963_p4 = scmp.lt.s32.totalorder %s2246_s29, %s2246_s29 }
  0x1c   : > { %p1956_p2 = scmp.ne.s32.totalorder %s2246_s29, %s1955_s19  ;;  %p1964_p1 = scmp.lt.s32.totalorder %s1955_s19, %s1955_s19 }
  0x1e   : > { %p1958_p3 = pnand %p1956_p2, %p2266_p10  ;;  %p1965_p9 = por %p1964_p1, %p1963_p4 }
  0x20   : > { %p1959_p7 = pneg %p1958_p3 }
  0x22   : > { %p1966_p11 = pnand %p1965_p9, %p1959_p7 }
  0x24   : > { %1969 = shalt.err (!%p1966_p11)
}
  0x25   : > { %s2163_s20 = smov 256   ;;  %s2164_s21 = smov 16  }
  0x26   : > { %1847 = dma.hbm_to_vmem [thread:$0]  (!%p2250_p8), %s2568_s1, 8192, %s2246_s29, [#allocation6], %s2163_s20, %s2163_s20, %s2164_s21  }
  0x27   : > { %s1970_s12 = scalar_lea.hbm %s2567_s0, 8192 }
  0x28   : > { %p1971_p1 = scmp.ne.s32.totalorder %s2567_s0, %s1970_s12  ;;  %p1977_p13 = scmp.lt.u32.totalorder %s1970_s12, %s2567_s0 }
  0x2a   : > { %p1973_p4 = pnand %p1971_p1, %p2266_p10 }
  0x2c   : > { %p1974_p12 = pneg %p1973_p4 }
  0x2e   : > { %p1979_p0 = pnand %p1977_p13, %p1974_p12 }
  0x30   : > { %1982 = shalt.err (!%p1979_p0)
}
  0x31   : > { %s1983_s29 = scalar_lea.vmem %s2254_s8, 8192  ;;  %p1991_p9 = scmp.lt.s32.totalorder %s2254_s8, %s2254_s8 }
  0x32   : > { %p1984_p2 = scmp.ne.s32.totalorder %s2254_s8, %s1983_s29  ;;  %p1992_p11 = scmp.lt.s32.totalorder %s1983_s29, %s1983_s29 }
  0x34   : > { %p1986_p3 = pnand %p1984_p2, %p2266_p10  ;;  %p1993_p1 = por %p1992_p11, %p1991_p9 }
  0x36   : > { %p1987_p7 = pneg %p1986_p3 }
  0x38   : > { %p1994_p4 = pnand %p1993_p1, %p1987_p7 }
  0x3a   : > { %1997 = shalt.err (!%p1994_p4)
}
  0x3b   : > { %1844 = dma.hbm_to_vmem [thread:$0]  (!%p2250_p8), %s2567_s0, 8192, %s2254_s8, [#allocation3], %s2163_s20, %s2163_s20, %s2164_s21  }
  0x3c   : > { %s1998_s9 = scalar_lea.hbm %s2569_s2, 4096 }
  0x3d   : > { %p1999_p12 = scmp.ne.s32.totalorder %s2569_s2, %s1998_s9  ;;  %p2005_p2 = scmp.lt.u32.totalorder %s1998_s9, %s2569_s2 }
  0x3f   : > { %p2001_p13 = pnand %p1999_p12, %p2266_p10 }
  0x41   : > { %p2002_p0 = pneg %p2001_p13 }
  0x43   : > { %p2007_p3 = pnand %p2005_p2, %p2002_p0 }
  0x45   : > { %2010 = shalt.err (!%p2007_p3)
}
  0x46   : > { %s2011_s15 = scalar_lea.vmem %s225_s10, 4096  ;;  %p2019_p1 = scmp.lt.s32.totalorder %s225_s10, %s225_s10 }
  0x47   : > { %p2012_p7 = scmp.ne.s32.totalorder %s225_s10, %s2011_s15  ;;  %p2020_p4 = scmp.lt.s32.totalorder %s2011_s15, %s2011_s15 }
  0x49   : > { %p2014_p9 = pnand %p2012_p7, %p2266_p10  ;;  %p2021_p5 = por %p2020_p4, %p2019_p1 }
  0x4b   : > { %p2015_p11 = pneg %p2014_p9 }
  0x4d   : > { %p2022_p6 = pnand %p2021_p5, %p2015_p11 }
  0x4f   : > { %2025 = shalt.err (!%p2022_p6)
}
  0x50   : > { %s2165_s8 = smov 128   ;;  %s2166_s16 = smov 8  }
  0x51   : > { %1850 = dma.hbm_to_vmem [thread:$0]  (!%p2250_p8), %s2569_s2, 4096, %s225_s10, [#allocation6], %s2165_s8, %s2165_s8, %s2166_s16  }
  0x52   : > { %s2333_s17 = sadd.s32 1, %s2158_s24   ;;  %s94_s18 = sadd.s32 1, %s2154_s23 }
  0x53   : > { %s91_s29 = ssub.s32 %s2158_s24, %s2333_s17  ;;  %p101_p6 = scmp.ne.s32.totalorder %s2154_s23, %s2150_s22 }
  0x54   : > { %p92_p5 = scmp.eq.s32.totalorder %s91_s29, 0  ;;  %p102_p10 = scmp.eq.s32.totalorder %s2158_s24, 0 }
  0x55   : > { %p1858_p12 = scmp.lt.s32.totalorder %s2158_s24, 2  ;;  %s238_s30 = sand.u32 1, %s2154_s23  }
  0x56   : > { %s2343_s19 = scalar_select %p92_p5, %s2154_s23, %s94_s18  }
  0x57   : > { %p103_p13 = por %p102_p10, %p101_p6  ;;  %s1530_s28 = sshll.u32 %s238_s30, 7 }
  0x58   : > { %s1546_s7 = sshll.u32 %s2158_s24, 11  ;;  %s242_s10 = scalar_lea.vmem [#allocation8], %s1530_s28 }
  0x59   : > { %s2350_s12 = scalar_lea.hbm %s2570_s3, %s1546_s7  ;;  %s249_s13 = sshll.u32 %s242_s10, 4  ;;  %s2352_s13 = int_to_ptr.vmem [resolvable:$true] %s249_s13 }
  0x5a   : > { %p2354_p8 = pnand %p1858_p12, %p103_p13  ;;  %s2358_s24 = scalar_lea.sflag [#allocation9], %s238_s30 }
  0x5b   : > { %s2026_s15 = scalar_lea.hbm %s2350_s12, 2048  ;;  %s2031_s29 = scalar_lea.hbm %s2570_s3, 4096 }
  0x5c   : > { %p2027_p0 = scmp.ne.s32.totalorder %s2350_s12, %s2026_s15  ;;  %p2028_p2 = pneg %p2354_p8 }
  0x5d   : > { %p2032_p9 = scmp.lt.u32.totalorder %s2350_s12, %s2570_s3  ;;  %p2033_p11 = scmp.lt.u32.totalorder %s2031_s29, %s2026_s15 }
  0x5e   : > { %p2029_p3 = pnand %p2028_p2, %p2027_p0  ;;  %p2035_p4 = scmp.lt.u32.totalorder %s2026_s15, %s2350_s12 }
  0x5f   : > { %p2034_p1 = por %p2033_p11, %p2032_p9 }
  0x60   : > { %p2030_p7 = pneg %p2029_p3 }
  0x61   : > { %p2036_p5 = por %p2035_p4, %p2034_p1 }
  0x63   : > { %p2037_p6 = pnand %p2036_p5, %p2030_p7 }
  0x65   : > { %2040 = shalt.err (!%p2037_p6)
}
  0x66   : > { %s2041_s30 = scalar_lea.vmem %s2352_s13, 2048  ;;  %s2167_s7 = smov [#allocation8]  }
  0x67   : > { %p2042_p10 = scmp.ne.s32.totalorder %s2352_s13, %s2041_s30  ;;  %s2046_s9 = sshll.u32 %s2167_s7, 4  ;;  %s2047_s9 = int_to_ptr.vmem [resolvable:$false] %s2046_s9 }
  0x68   : > { %s2048_s11 = scalar_lea.vmem %s2047_s9, 4096  ;;  %p2049_p0 = scmp.lt.s32.totalorder %s2352_s13, %s2047_s9 }
  0x69   : > { %p2044_p12 = pnand %p2042_p10, %p2028_p2  ;;  %p2050_p3 = scmp.lt.s32.totalorder %s2048_s11, %s2041_s30 }
  0x6b   : > { %p2045_p13 = pneg %p2044_p12  ;;  %p2051_p9 = por %p2050_p3, %p2049_p0 }
  0x6d   : > { %p2052_p11 = pnand %p2051_p9, %p2045_p13 }
  0x6f   : > { %2055 = shalt.err (!%p2052_p11)
}
  0x70   : > { %1854 = dma.hbm_to_vmem [thread:$0]  (!%p2354_p8), %s2350_s12, 2048, %s2352_s13, %s2358_s24, %s2165_s8, %s2165_s8, %s2166_s16  }
  0x71   : > { %p2582_p2 = scmp.ne.s32.totalorder %s2578_s27, 0 }
  0x72   : > { %p2583_p7 = scmp.eq.s32.totalorder (!%p2582_p2), %s2227_s25, 0 }
  0x73   : > { %267 = sbr.rel (%p2582_p2) target bundleno = 1129 (0x469), region = 40 }
  0x7a   : > { %2125 = dma.done.wait (%p2583_p7), [#allocation3], 8192   ;;  %p2584_p1 = pmov %p2583_p7 }
  0x7c   : > { %2127 = vsyncadd (%p2584_p1), [#allocation3], 4294959104  ;;  %p2585_p4 = pmov %p2584_p1 }
  0x7d   : > { %p2586_p5 = pmov %p2584_p1 }
  0x7e   : > { %2129 = dma.done.wait (%p2585_p4), [#allocation6], 12288  }
  0x7f   : > { %2131 = vsyncadd (%p2586_p5), [#allocation6], 4294955008  ;;  %s281_s10 = sand.u32 1, %s2150_s22   ;;  %p2587_p8 = scmp.ne.s32.totalorder %s2577_s26, 0 }
  0x80   : > { %s1537_s14 = sshll.u32 %s281_s10, 7  ;;  %s282_s8 = scalar_lea.sflag [#allocation9], %s281_s10 }
  0x81   : > { %s2400_s16 = scalar_lea.vmem [#allocation8], %s1537_s14 }
  0x82   : > { %2133 = dma.done.wait (%p2587_p8), %s282_s8, 2048  }
  0x83   : > { %2135 = vsyncadd (%p2587_p8), %s282_s8, 4294965248  ;;  %p312_p6 = scmp.lt.s32.totalorder %s2227_s25, 1  ;;  %p2588_p10 = scmp.ne.s32.totalorder %s2227_s25, 0 }
  0x84   : > { %v319_v0 = vld [vmem:[#allocation7] sm:$0xff] (!%p2588_p10)  ;;  %v320_v1 = vld [vmem:[#allocation7 + $0x8] sm:$0xff] (!%p2588_p10)  ;;  %v321_v2 = vld [vmem:[#allocation7 + $0x10] sm:$0xff] (!%p2588_p10) }
  0x85   : > { %s2408_s27 = scalar_select %p312_p6, %s2227_s25, 1 }
  0x86   : > { %318 = sbr.rel (%p2588_p10) target bundleno = 150 (0x96), region = 60  ;;  %351 = vst [vmem:[#allocation10] sm:$0xff] (!%p2588_p10), %v319_v0  ;;  %352 = vst [vmem:[#allocation10 + $0x8] sm:$0xff] (!%p2588_p10), %v320_v1  ;;  %v322_v3 = vld [vmem:[#allocation7 + $0x18] sm:$0xff] (!%p2588_p10)  ;;  %v323_v4 = vld [vmem:[#allocation7 + $0x20] sm:$0xff] (!%p2588_p10) }
  0x87   : > { %s314_s24 = scalar_lea.vmem %s2571_s4, %s2408_s27  ;;  %353 = vst [vmem:[#allocation10 + $0x10] sm:$0xff] (!%p2588_p10), %v321_v2  ;;  %v324_v5 = vld [vmem:[#allocation7 + $0x28] sm:$0xff] (!%p2588_p10)  ;;  %354 = vst [vmem:[#allocation10 + $0x18] sm:$0xff] (!%p2588_p10), %v322_v3  ;;  %v325_v6 = vld [vmem:[#allocation7 + $0x30] sm:$0xff] (!%p2588_p10) }
  0x88   : > { %355 = vst [vmem:[#allocation10 + $0x20] sm:$0xff] (!%p2588_p10), %v323_v4  ;;  %356 = vst [vmem:[#allocation10 + $0x28] sm:$0xff] (!%p2588_p10), %v324_v5  ;;  %v326_v7 = vld [vmem:[#allocation7 + $0x38] sm:$0xff] (!%p2588_p10)  ;;  %v327_v8 = vld [vmem:[#allocation7 + $0x40] sm:$0xff] (!%p2588_p10) }
  0x89   : > { %357 = vst [vmem:[#allocation10 + $0x30] sm:$0xff] (!%p2588_p10), %v325_v6  ;;  %358 = vst [vmem:[#allocation10 + $0x38] sm:$0xff] (!%p2588_p10), %v326_v7  ;;  %v328_v9 = vld [vmem:[#allocation7 + $0x48] sm:$0xff] (!%p2588_p10)  ;;  %v329_v10 = vld [vmem:[#allocation7 + $0x50] sm:$0xff] (!%p2588_p10) }
  0x8a   : > { %359 = vst [vmem:[#allocation10 + $0x40] sm:$0xff] (!%p2588_p10), %v327_v8  ;;  %v330_v11 = vld [vmem:[#allocation7 + $0x58] sm:$0xff] (!%p2588_p10)  ;;  %360 = vst [vmem:[#allocation10 + $0x48] sm:$0xff] (!%p2588_p10), %v328_v9  ;;  %v331_v12 = vld [vmem:[#allocation7 + $0x60] sm:$0xff] (!%p2588_p10) }
  0x8b   : > { %361 = vst [vmem:[#allocation10 + $0x50] sm:$0xff] (!%p2588_p10), %v329_v10  ;;  %362 = vst [vmem:[#allocation10 + $0x58] sm:$0xff] (!%p2588_p10), %v330_v11  ;;  %v332_v13 = vld [vmem:[#allocation7 + $0x68] sm:$0xff] (!%p2588_p10)  ;;  %v333_v14 = vld [vmem:[#allocation7 + $0x70] sm:$0xff] (!%p2588_p10) }
  0x8c   : > { %363 = vst [vmem:[#allocation10 + $0x60] sm:$0xff] (!%p2588_p10), %v331_v12  ;;  %364 = vst [vmem:[#allocation10 + $0x68] sm:$0xff] (!%p2588_p10), %v332_v13  ;;  %v334_v15 = vld [vmem:[#allocation7 + $0x78] sm:$0xff] (!%p2588_p10)  ;;  %v335_v16 = vld [vmem:[#allocation7 + $0x80] sm:$0xff] (!%p2588_p10) }
  0x8d   : > { %365 = vst [vmem:[#allocation10 + $0x70] sm:$0xff] %v333_v14  ;;  %v336_v17 = vld [vmem:[#allocation7 + $0x88] sm:$0xff]  ;;  %366 = vst [vmem:[#allocation10 + $0x78] sm:$0xff] %v334_v15  ;;  %v337_v18 = vld [vmem:[#allocation7 + $0x90] sm:$0xff] }
  0x8e   : > { %367 = vst [vmem:[#allocation10 + $0x80] sm:$0xff] %v335_v16  ;;  %368 = vst [vmem:[#allocation10 + $0x88] sm:$0xff] %v336_v17  ;;  %v338_v19 = vld [vmem:[#allocation7 + $0x98] sm:$0xff]  ;;  %v339_v20 = vld [vmem:[#allocation7 + $0xa0] sm:$0xff] }
  0x8f   : > { %369 = vst [vmem:[#allocation10 + $0x90] sm:$0xff] %v337_v18  ;;  %370 = vst [vmem:[#allocation10 + $0x98] sm:$0xff] %v338_v19  ;;  %v340_v21 = vld [vmem:[#allocation7 + $0xa8] sm:$0xff]  ;;  %v341_v22 = vld [vmem:[#allocation7 + $0xb0] sm:$0xff] }
  0x90   : > { %371 = vst [vmem:[#allocation10 + $0xa0] sm:$0xff] %v339_v20  ;;  %v342_v23 = vld [vmem:[#allocation7 + $0xb8] sm:$0xff]  ;;  %372 = vst [vmem:[#allocation10 + $0xa8] sm:$0xff] %v340_v21  ;;  %v343_v24 = vld [vmem:[#allocation7 + $0xc0] sm:$0xff] }
  0x91   : > { %373 = vst [vmem:[#allocation10 + $0xb0] sm:$0xff] %v341_v22  ;;  %374 = vst [vmem:[#allocation10 + $0xb8] sm:$0xff] %v342_v23  ;;  %v344_v25 = vld [vmem:[#allocation7 + $0xc8] sm:$0xff]  ;;  %v345_v26 = vld [vmem:[#allocation7 + $0xd0] sm:$0xff] }
  0x92   : > { %375 = vst [vmem:[#allocation10 + $0xc0] sm:$0xff] %v343_v24  ;;  %376 = vst [vmem:[#allocation10 + $0xc8] sm:$0xff] %v344_v25  ;;  %v346_v27 = vld [vmem:[#allocation7 + $0xd8] sm:$0xff]  ;;  %v347_v28 = vld [vmem:[#allocation7 + $0xe0] sm:$0xff] }
  0x93   : > { %377 = vst [vmem:[#allocation10 + $0xd0] sm:$0xff] %v345_v26  ;;  %v348_v29 = vld [vmem:[#allocation7 + $0xe8] sm:$0xff]  ;;  %378 = vst [vmem:[#allocation10 + $0xd8] sm:$0xff] %v346_v27  ;;  %v349_v30 = vld [vmem:[#allocation7 + $0xf0] sm:$0xff] }
  0x94   : > { %379 = vst [vmem:[#allocation10 + $0xe0] sm:$0xff] %v347_v28  ;;  %380 = vst [vmem:[#allocation10 + $0xe8] sm:$0xff] %v348_v29  ;;  %v350_v31 = vld [vmem:[#allocation7 + $0xf8] sm:$0xff] }
  0x95   : > { %381 = vst [vmem:[#allocation10 + $0xf0] sm:$0xff] %v349_v30  ;;  %382 = vst [vmem:[#allocation10 + $0xf8] sm:$0xff] %v350_v31 }
  0x96 PF: > { %v383_v32 = vld [vmem:[#allocation10] sm:$0xff]  ;;  %v384_v33 = vld [vmem:[#allocation10 + $0x8] sm:$0xff]  ;;  %v2168_v35 = vmov 0.0|0.0   ;;  %v401_v61 = vld [vmem:[#allocation10 + $0x90] sm:$0xff]  ;;  %p1862_p12 = scmp.eq.s32.totalorder %s2227_s25, 1  ;;  %s2169_s20 = smov [#allocation11]  }
  0x97   : > { %v385_v34 = vld [vmem:[#allocation10 + $0x10] sm:$0xff]  ;;  %1675 = vmatprep.subr.bf16.mxu0 %v2168_v35  ;;  %v1676_v36 = vpack.c.bf16 %v384_v33, %v383_v32  ;;  %v386_v37 = vld [vmem:[#allocation10 + $0x18] sm:$0xff]  ;;  %1723 = vmatprep.subr.bf16.mxu1 %v2168_v35  ;;  %v416_v44 = vld [vmem:[#allocation2 + $0x8] sm:$0xff]  ;;  %s1420_s21 = sshll.u32 %s2169_s20, 4  ;;  %s1421_s21 = int_to_ptr.vmem [resolvable:$true] %s1420_s21 }
  0x98   : > { %v1679_v38 = vpack.c.bf16 %v386_v37, %v385_v34  ;;  %v387_v39 = vld [vmem:[#allocation10 + $0x20] sm:$0xff]  ;;  %v388_v40 = vld [vmem:[#allocation10 + $0x28] sm:$0xff]  ;;  %543 = vmatprep.mubr.f32.mxu0 %v416_v44  ;;  %v402_v62 = vld [vmem:[#allocation10 + $0x98] sm:$0xff]  ;;  %s2056_s29 = scalar_lea.vmem %s1421_s21, 4096  ;;  %p2063_p9 = scmp.lt.s32.totalorder %s1421_s21, %s1421_s21 }
  0x99   : > { %1677 = vmatpush1.bf16.msra.mxu0 %v1676_v36  ;;  %v1682_v41 = vpack.c.bf16 %v388_v40, %v387_v39  ;;  %v389_v42 = vld [vmem:[#allocation10 + $0x30] sm:$0xff]  ;;  %v390_v43 = vld [vmem:[#allocation10 + $0x38] sm:$0xff]  ;;  %v399_v58 = vld [vmem:[#allocation10 + $0x80] sm:$0xff]  ;;  %v1703_v63 = vpack.c.bf16 %v402_v62, %v401_v61  ;;  %p2057_p13 = scmp.ne.s32.totalorder %s1421_s21, %s2056_s29  ;;  %p2064_p11 = scmp.lt.s32.totalorder %s2056_s29, %s2056_s29 }
  0x9a   : > { %1678 = vmatprep.subr.bf16.mxu0 %v2168_v35  ;;  %v1685_v45 = vpack.c.bf16 %v390_v43, %v389_v42  ;;  %v391_v46 = vld [vmem:[#allocation10 + $0x40] sm:$0xff]  ;;  %v392_v47 = vld [vmem:[#allocation10 + $0x48] sm:$0xff]  ;;  %v405_v3 = vld [vmem:[#allocation10 + $0xb0] sm:$0xff] }
  0x9b   : > { %v1688_v48 = vpack.c.bf16 %v392_v47, %v391_v46  ;;  %v393_v49 = vld [vmem:[#allocation10 + $0x50] sm:$0xff]  ;;  %v394_v50 = vld [vmem:[#allocation10 + $0x58] sm:$0xff]  ;;  %v400_v59 = vld [vmem:[#allocation10 + $0x88] sm:$0xff]  ;;  %p2058_p0 = pnand %p2057_p13, %p1862_p12  ;;  %p2065_p2 = por %p2064_p11, %p2063_p9 }
  0x9c   : > { %v1691_v51 = vpack.c.bf16 %v394_v50, %v393_v49  ;;  %v395_v52 = vld [vmem:[#allocation10 + $0x60] sm:$0xff]  ;;  %v396_v53 = vld [vmem:[#allocation10 + $0x68] sm:$0xff]  ;;  %v1700_v60 = vpack.c.bf16 %v400_v59, %v399_v58  ;;  %v406_v4 = vld [vmem:[#allocation10 + $0xb8] sm:$0xff] }
  0x9d   : > { %1680 = vmatpush1.bf16.msra.mxu0 %v1679_v38  ;;  %v1694_v54 = vpack.c.bf16 %v396_v53, %v395_v52  ;;  %v397_v55 = vld [vmem:[#allocation10 + $0x70] sm:$0xff]  ;;  %v398_v56 = vld [vmem:[#allocation10 + $0x78] sm:$0xff]  ;;  %v403_v0 = vld [vmem:[#allocation10 + $0xa0] sm:$0xff]  ;;  %v1709_v5 = vpack.c.bf16 %v406_v4, %v405_v3  ;;  %p2059_p3 = pneg %p2058_p0 }
  0x9e   : > { %1681 = vmatprep.subr.bf16.mxu0 %v2168_v35  ;;  %v1697_v57 = vpack.c.bf16 %v398_v56, %v397_v55  ;;  %v404_v1 = vld [vmem:[#allocation10 + $0xa8] sm:$0xff]  ;;  %v407_v6 = vld [vmem:[#allocation10 + $0xc0] sm:$0xff]  ;;  %v409_v9 = vld [vmem:[#allocation10 + $0xd0] sm:$0xff] }
  0x9f   : > { %v1706_v2 = vpack.c.bf16 %v404_v1, %v403_v0  ;;  %v408_v7 = vld [vmem:[#allocation10 + $0xc8] sm:$0xff]  ;;  %v410_v10 = vld [vmem:[#allocation10 + $0xd8] sm:$0xff]  ;;  %v411_v12 = vld [vmem:[#allocation10 + $0xe0] sm:$0xff]  ;;  %p2066_p7 = pnand %p2065_p2, %p2059_p3 }
  0xa0   : > { %v1712_v8 = vpack.c.bf16 %v408_v7, %v407_v6  ;;  %v1715_v11 = vpack.c.bf16 %v410_v10, %v409_v9  ;;  %v412_v13 = vld [vmem:[#allocation10 + $0xe8] sm:$0xff]  ;;  %v413_v15 = vld [vmem:[#allocation10 + $0xf0] sm:$0xff]  ;;  %v414_v16 = vld [vmem:[#allocation10 + $0xf8] sm:$0xff] }
  0xa1   : > { %1683 = vmatpush1.bf16.msra.mxu0 %v1682_v41  ;;  %v1718_v14 = vpack.c.bf16 %v412_v13, %v411_v12  ;;  %v1721_v17 = vpack.c.bf16 %v414_v16, %v413_v15  ;;  %v415_v18 = vld [vmem:[#allocation2] sm:$0xff]  ;;  %v418_v19 = vld [vmem:[#allocation2 + $0x18] sm:$0xff]  ;;  %v417_v20 = vld [vmem:[#allocation2 + $0x10] sm:$0xff] }
  0xa2   : > { %1684 = vmatprep.subr.bf16.mxu0 %v2168_v35  ;;  %v420_v21 = vld [vmem:[#allocation2 + $0x28] sm:$0xff]  ;;  %v419_v22 = vld [vmem:[#allocation2 + $0x20] sm:$0xff]  ;;  %v422_v23 = vld [vmem:[#allocation2 + $0x38] sm:$0xff] }
  0xa3   : > { %v421_v24 = vld [vmem:[#allocation2 + $0x30] sm:$0xff]  ;;  %v424_v25 = vld [vmem:[#allocation2 + $0x48] sm:$0xff]  ;;  %v423_v26 = vld [vmem:[#allocation2 + $0x40] sm:$0xff] }
  0xa4   : > { %v426_v27 = vld [vmem:[#allocation2 + $0x58] sm:$0xff]  ;;  %v425_v28 = vld [vmem:[#allocation2 + $0x50] sm:$0xff]  ;;  %v428_v29 = vld [vmem:[#allocation2 + $0x68] sm:$0xff] }
  0xa5   : > { %1686 = vmatpush1.bf16.msra.mxu0 %v1685_v45  ;;  %v427_v30 = vld [vmem:[#allocation2 + $0x60] sm:$0xff]  ;;  %v430_v31 = vld [vmem:[#allocation2 + $0x78] sm:$0xff]  ;;  %v429_v32 = vld [vmem:[#allocation2 + $0x70] sm:$0xff] }
  0xa6   : > { %1687 = vmatprep.subr.bf16.mxu0 %v2168_v35  ;;  %v432_v33 = vld [vmem:[#allocation2 + $0x88] sm:$0xff]  ;;  %v431_v34 = vld [vmem:[#allocation2 + $0x80] sm:$0xff]  ;;  %v434_v36 = vld [vmem:[#allocation2 + $0x98] sm:$0xff] }
  0xa7   : > { %v433_v37 = vld [vmem:[#allocation2 + $0x90] sm:$0xff]  ;;  %v436_v38 = vld [vmem:[#allocation2 + $0xa8] sm:$0xff]  ;;  %v435_v39 = vld [vmem:[#allocation2 + $0xa0] sm:$0xff] }
  0xa8   : > { %v438_v40 = vld [vmem:[#allocation2 + $0xb8] sm:$0xff]  ;;  %v437_v41 = vld [vmem:[#allocation2 + $0xb0] sm:$0xff]  ;;  %v440_v42 = vld [vmem:[#allocation2 + $0xc8] sm:$0xff] }
  0xa9   : > { %1689 = vmatpush1.bf16.msra.mxu0 %v1688_v48  ;;  %v439_v43 = vld [vmem:[#allocation2 + $0xc0] sm:$0xff]  ;;  %v442_v44 = vld [vmem:[#allocation2 + $0xd8] sm:$0xff]  ;;  %v441_v45 = vld [vmem:[#allocation2 + $0xd0] sm:$0xff] }
  0xaa   : > { %1690 = vmatprep.subr.bf16.mxu0 %v2168_v35  ;;  %v444_v46 = vld [vmem:[#allocation2 + $0xe8] sm:$0xff]  ;;  %v443_v47 = vld [vmem:[#allocation2 + $0xe0] sm:$0xff]  ;;  %v446_v48 = vld [vmem:[#allocation2 + $0xf8] sm:$0xff] }
  0xab   : > { %v445_v49 = vld [vmem:[#allocation2 + $0xf0] sm:$0xff]  ;;  %v448_v50 = vld [vmem:[#allocation2 + $0x108] sm:$0xff]  ;;  %v450_v52 = vld [vmem:[#allocation2 + $0x118] sm:$0xff] }
  0xac   : > { %v449_v53 = vld [vmem:[#allocation2 + $0x110] sm:$0xff]  ;;  %v451_v55 = vld [vmem:[#allocation2 + $0x120] sm:$0xff]  ;;  %v454_v56 = vld [vmem:[#allocation2 + $0x138] sm:$0xff] }
  0xad   : > { %1692 = vmatpush1.bf16.msra.mxu0 %v1691_v51  ;;  %v447_v51 = vld [vmem:[#allocation2 + $0x100] sm:$0xff]  ;;  %v456_v58 = vld [vmem:[#allocation2 + $0x148] sm:$0xff]  ;;  %v457_v61 = vld [vmem:[#allocation2 + $0x150] sm:$0xff] }
  0xae   : > { %1693 = vmatprep.subr.bf16.mxu0 %v2168_v35  ;;  %v455_v59 = vld [vmem:[#allocation2 + $0x140] sm:$0xff]  ;;  %v460_v62 = vld [vmem:[#allocation2 + $0x168] sm:$0xff]  ;;  %v462_v0 = vld [vmem:[#allocation2 + $0x178] sm:$0xff] }
  0xaf   : > { %v461_v1 = vld [vmem:[#allocation2 + $0x170] sm:$0xff]  ;;  %v463_v3 = vld [vmem:[#allocation2 + $0x180] sm:$0xff]  ;;  %v466_v4 = vld [vmem:[#allocation2 + $0x198] sm:$0xff] }
  0xb0   : > { %v468_v6 = vld [vmem:[#allocation2 + $0x1a8] sm:$0xff]  ;;  %v467_v7 = vld [vmem:[#allocation2 + $0x1a0] sm:$0xff]  ;;  %v469_v9 = vld [vmem:[#allocation2 + $0x1b0] sm:$0xff] }
  0xb1   : > { %1695 = vmatpush1.bf16.msra.mxu0 %v1694_v54  ;;  %v452_v54 = vld [vmem:[#allocation2 + $0x128] sm:$0xff]  ;;  %v474_v12 = vld [vmem:[#allocation2 + $0x1d8] sm:$0xff]  ;;  %v473_v13 = vld [vmem:[#allocation2 + $0x1d0] sm:$0xff] }
  0xb2   : > { %1696 = vmatprep.subr.bf16.mxu0 %v2168_v35  ;;  %v472_v10 = vld [vmem:[#allocation2 + $0x1c8] sm:$0xff]  ;;  %v475_v15 = vld [vmem:[#allocation2 + $0x1e0] sm:$0xff]  ;;  %v478_v16 = vld [vmem:[#allocation2 + $0x1f8] sm:$0xff] }
  0xb5   : > { %1698 = vmatpush1.bf16.msra.mxu0 %v1697_v57  ;;  %v453_v57 = vld [vmem:[#allocation2 + $0x130] sm:$0xff] }
  0xb6   : > { %1699 = vmatprep.subr.bf16.mxu0 %v2168_v35 }
  0xb9   : > { %1701 = vmatpush1.bf16.msra.mxu0 %v1700_v60  ;;  %v458_v60 = vld [vmem:[#allocation2 + $0x158] sm:$0xff] }
  0xba   : > { %1702 = vmatprep.subr.bf16.mxu0 %v2168_v35 }
  0xbd   : > { %1704 = vmatpush1.bf16.msra.mxu0 %v1703_v63  ;;  %v459_v63 = vld [vmem:[#allocation2 + $0x160] sm:$0xff] }
  0xbe   : > { %1705 = vmatprep.subr.bf16.mxu0 %v2168_v35 }
  0xc1   : > { %1707 = vmatpush1.bf16.msra.mxu0 %v1706_v2  ;;  %v464_v2 = vld [vmem:[#allocation2 + $0x188] sm:$0xff] }
  0xc2   : > { %1708 = vmatprep.subr.bf16.mxu0 %v2168_v35 }
  0xc5   : > { %1710 = vmatpush1.bf16.msra.mxu0 %v1709_v5  ;;  %v465_v5 = vld [vmem:[#allocation2 + $0x190] sm:$0xff] }
  0xc6   : > { %1711 = vmatprep.subr.bf16.mxu0 %v2168_v35 }
  0xc9   : > { %1713 = vmatpush1.bf16.msra.mxu0 %v1712_v8  ;;  %v470_v8 = vld [vmem:[#allocation2 + $0x1b8] sm:$0xff] }
  0xca   : > { %1714 = vmatprep.subr.bf16.mxu0 %v2168_v35 }
  0xcd   : > { %1716 = vmatpush1.bf16.msra.mxu0 %v1715_v11  ;;  %v471_v11 = vld [vmem:[#allocation2 + $0x1c0] sm:$0xff] }
  0xce   : > { %1717 = vmatprep.subr.bf16.mxu0 %v2168_v35 }
  0xd1   : > { %1719 = vmatpush1.bf16.msra.mxu0 %v1718_v14  ;;  %v476_v14 = vld [vmem:[#allocation2 + $0x1e8] sm:$0xff] }
  0xd2   : > { %1720 = vmatprep.subr.bf16.mxu0 %v2168_v35 }
  0xd5   : > { %1722 = vmatpush1.bf16.msra.mxu0 %v1721_v17  ;;  %v477_v17 = vld [vmem:[#allocation2 + $0x1f0] sm:$0xff] }
  0xd8   : > { %544 = vmatmul.mubr.f32.vlgmr.msra.gmra.mrb[0].mxu0 %v415_v18  ;;  %v737_v18 = vld [vmem:[#allocation5 + $0x8] sm:$0xff] }
  0xd9   : > { %548 = vmatprep.mubr.f32.mxu0 %v418_v19  ;;  %896 = vmatprep.mubr.f32.mxu1 %v737_v18 }
  0xdc   : > { %549 = vmatmul.mubr.f32.gmra.mrb[2].mxu0 %v417_v20 }
  0xdd   : > { %553 = vmatprep.mubr.f32.mxu0 %v420_v21 }
  0xe0   : > { %554 = vmatmul.mubr.f32.gmra.mrb[4].mxu0 %v419_v22 }
  0xe1   : > { %558 = vmatprep.mubr.f32.mxu0 %v422_v23 }
  0xe4   : > { %559 = vmatmul.mubr.f32.gmra.mrb[6].mxu0 %v421_v24 }
  0xe5   : > { %563 = vmatprep.mubr.f32.mxu0 %v424_v25 }
  0xe8   : > { %564 = vmatmul.mubr.f32.gmra.mrb[8].mxu0 %v423_v26 }
  0xe9   : > { %568 = vmatprep.mubr.f32.mxu0 %v426_v27 }
  0xec   : > { %569 = vmatmul.mubr.f32.gmra.mrb[10].mxu0 %v425_v28 }
  0xed   : > { %573 = vmatprep.mubr.f32.mxu0 %v428_v29 }
  0xf0   : > { %574 = vmatmul.mubr.f32.gmra.mrb[12].mxu0 %v427_v30 }
  0xf1   : > { %578 = vmatprep.mubr.f32.mxu0 %v430_v31 }
  0xf4   : > { %579 = vmatmul.mubr.f32.gmra.mrb[14].mxu0 %v429_v32 }
  0xf5   : > { %583 = vmatprep.mubr.f32.mxu0 %v432_v33 }
  0xf8   : > { %584 = vmatmul.mubr.f32.gmra.mrb[16].mxu0 %v431_v34 }
  0xf9   : > { %588 = vmatprep.mubr.f32.mxu0 %v434_v36 }
  0xfc   : > { %589 = vmatmul.mubr.f32.gmra.mrb[18].mxu0 %v433_v37 }
  0xfd   : > { %593 = vmatprep.mubr.f32.mxu0 %v436_v38 }
 0x100   : > { %594 = vmatmul.mubr.f32.gmra.mrb[20].mxu0 %v435_v39 }
 0x101   : > { %598 = vmatprep.mubr.f32.mxu0 %v438_v40 }
 0x104   : > { %599 = vmatmul.mubr.f32.gmra.mrb[22].mxu0 %v437_v41 }
 0x105   : > { %603 = vmatprep.mubr.f32.mxu0 %v440_v42 }
 0x108   : > { %604 = vmatmul.mubr.f32.gmra.mrb[24].mxu0 %v439_v43 }
 0x109   : > { %608 = vmatprep.mubr.f32.mxu0 %v442_v44 }
 0x10c   : > { %609 = vmatmul.mubr.f32.gmra.mrb[26].mxu0 %v441_v45 }
 0x10d   : > { %613 = vmatprep.mubr.f32.mxu0 %v444_v46 }
 0x110   : > { %614 = vmatmul.mubr.f32.gmra.mrb[28].mxu0 %v443_v47 }
 0x111   : > { %618 = vmatprep.mubr.f32.mxu0 %v446_v48 }
 0x114   : > { %619 = vmatmul.mubr.f32.gmra.mrb[30].mxu0 %v445_v49 }
 0x115   : > { %623 = vmatprep.mubr.f32.mxu0 %v448_v50 }
 0x118   : > { %624 = vmatmul.mubr.f32.gmra.mrb[32].mxu0 %v447_v51 }
 0x119   : > { %628 = vmatprep.mubr.f32.mxu0 %v450_v52 }
 0x11c   : > { %629 = vmatmul.mubr.f32.gmra.mrb[34].mxu0 %v449_v53 }
 0x11d   : > { %633 = vmatprep.mubr.f32.mxu0 %v452_v54 }
 0x120   : > { %634 = vmatmul.mubr.f32.gmra.mrb[36].mxu0 %v451_v55 }
 0x121   : > { %638 = vmatprep.mubr.f32.mxu0 %v454_v56 }
 0x124   : > { %639 = vmatmul.mubr.f32.gmra.mrb[38].mxu0 %v453_v57 }
 0x125   : > { %643 = vmatprep.mubr.f32.mxu0 %v456_v58 }
 0x128   : > { %644 = vmatmul.mubr.f32.gmra.mrb[40].mxu0 %v455_v59 }
 0x129   : > { %648 = vmatprep.mubr.f32.mxu0 %v458_v60 }
 0x12c   : > { %649 = vmatmul.mubr.f32.gmra.mrb[42].mxu0 %v457_v61 }
 0x12d   : > { %653 = vmatprep.mubr.f32.mxu0 %v460_v62 }
 0x130   : > { %654 = vmatmul.mubr.f32.gmra.mrb[44].mxu0 %v459_v63 }
 0x131   : > { %658 = vmatprep.mubr.f32.mxu0 %v462_v0 }
 0x134   : > { %659 = vmatmul.mubr.f32.gmra.mrb[46].mxu0 %v461_v1 }
 0x135   : > { %663 = vmatprep.mubr.f32.mxu0 %v464_v2 }
 0x138   : > { %664 = vmatmul.mubr.f32.gmra.mrb[48].mxu0 %v463_v3 }
 0x139   : > { %668 = vmatprep.mubr.f32.mxu0 %v466_v4 }
 0x13c   : > { %669 = vmatmul.mubr.f32.gmra.mrb[50].mxu0 %v465_v5 }
 0x13d   : > { %673 = vmatprep.mubr.f32.mxu0 %v468_v6 }
 0x140   : > { %674 = vmatmul.mubr.f32.gmra.mrb[52].mxu0 %v467_v7 }
 0x141   : > { %678 = vmatprep.mubr.f32.mxu0 %v470_v8 }
 0x144   : > { %679 = vmatmul.mubr.f32.gmra.mrb[54].mxu0 %v469_v9 }
 0x145   : > { %683 = vmatprep.mubr.f32.mxu0 %v472_v10 }
 0x148   : > { %684 = vmatmul.mubr.f32.gmra.mrb[56].mxu0 %v471_v11 }
 0x149   : > { %688 = vmatprep.mubr.f32.mxu0 %v474_v12 }
 0x14c   : > { %689 = vmatmul.mubr.f32.gmra.mrb[58].mxu0 %v473_v13 }
 0x14d   : > { %693 = vmatprep.mubr.f32.mxu0 %v476_v14 }
 0x150   : > { %694 = vmatmul.mubr.f32.gmra.mrb[60].mxu0 %v475_v15 }
 0x151   : > { %698 = vmatprep.mubr.f32.mxu0 %v478_v16 }
 0x154   : > { %699 = vmatmul.mubr.f32.gmra.mrb[62].mxu0 %v477_v17 }
 0x1ab   : > { %v545_v19 = vpop.f32.mrb[0].mxu0 }
 0x1ac   : > { %704 = vst [vmem:[#allocation11] sm:$0xff] %v545_v19  ;;  %v547_v20 = vpop.f32.mrb[1].mxu0 }
 0x1af   : > { %v550_v21 = vpop.f32.mrb[2].mxu0 }
 0x1b0   : > { %705 = vst [vmem:[#allocation11 + $0x8] sm:$0xff] %v550_v21  ;;  %v552_v22 = vpop.f32.mrb[3].mxu0  ;;  %v1724_v23 = vpack.c.bf16 %v550_v21, %v545_v19 }
 0x1b2   : > { %1725 = vmatpush1.bf16.msra.mxu1 %v1724_v23 }
 0x1b3   : > { %v555_v24 = vpop.f32.mrb[4].mxu0  ;;  %1726 = vmatprep.subr.bf16.mxu1 %v2168_v35 }
 0x1b4   : > { %706 = vst [vmem:[#allocation11 + $0x10] sm:$0xff] %v555_v24  ;;  %v557_v25 = vpop.f32.mrb[5].mxu0 }
 0x1b7   : > { %v560_v26 = vpop.f32.mrb[6].mxu0 }
 0x1b8   : > { %707 = vst [vmem:[#allocation11 + $0x18] sm:$0xff] %v560_v26  ;;  %v562_v27 = vpop.f32.mrb[7].mxu0  ;;  %v1727_v28 = vpack.c.bf16 %v560_v26, %v555_v24 }
 0x1ba   : > { %1728 = vmatpush1.bf16.msra.mxu1 %v1727_v28 }
 0x1bb   : > { %v565_v29 = vpop.f32.mrb[8].mxu0  ;;  %1729 = vmatprep.subr.bf16.mxu1 %v2168_v35 }
 0x1bc   : > { %708 = vst [vmem:[#allocation11 + $0x20] sm:$0xff] %v565_v29  ;;  %v567_v30 = vpop.f32.mrb[9].mxu0 }
 0x1bf   : > { %v570_v31 = vpop.f32.mrb[10].mxu0 }
 0x1c0   : > { %709 = vst [vmem:[#allocation11 + $0x28] sm:$0xff] %v570_v31  ;;  %v572_v32 = vpop.f32.mrb[11].mxu0  ;;  %v1730_v33 = vpack.c.bf16 %v570_v31, %v565_v29 }
 0x1c2   : > { %1731 = vmatpush1.bf16.msra.mxu1 %v1730_v33 }
 0x1c3   : > { %v575_v34 = vpop.f32.mrb[12].mxu0  ;;  %1732 = vmatprep.subr.bf16.mxu1 %v2168_v35 }
 0x1c4   : > { %710 = vst [vmem:[#allocation11 + $0x30] sm:$0xff] %v575_v34  ;;  %v577_v36 = vpop.f32.mrb[13].mxu0 }
 0x1c7   : > { %v580_v37 = vpop.f32.mrb[14].mxu0 }
 0x1c8   : > { %711 = vst [vmem:[#allocation11 + $0x38] sm:$0xff] %v580_v37  ;;  %v582_v38 = vpop.f32.mrb[15].mxu0  ;;  %v1733_v39 = vpack.c.bf16 %v580_v37, %v575_v34  ;;  %v1089_v37 = vld [vmem:[%s2400_s16] sm:$0xff] }
 0x1c9   : > { %v1090_v38 = vld [vmem:[%s2400_s16 + $0x8] sm:$0xff] }
 0x1ca   : > { %1734 = vmatpush1.bf16.msra.mxu1 %v1733_v39  ;;  %v1091_v39 = vld [vmem:[%s2400_s16 + $0x10] sm:$0xff] }
 0x1cb   : > { %v585_v40 = vpop.f32.mrb[16].mxu0  ;;  %1735 = vmatprep.subr.bf16.mxu1 %v2168_v35 }
 0x1cc   : > { %712 = vst [vmem:[#allocation11 + $0x40] sm:$0xff] %v585_v40  ;;  %v587_v41 = vpop.f32.mrb[17].mxu0 }
 0x1cd   : > { %v1771_v41 = vpack.c.bf16 %v1090_v38, %v1089_v37  ;;  %v781_v37 = vld [vmem:[#allocation5 + $0x168] sm:$0xff]  ;;  %v1103_v38 = vld [vmem:[%s2400_s16 + $0x70] sm:$0xff] }
 0x1cf   : > { %v590_v42 = vpop.f32.mrb[18].mxu0  ;;  %1772 = vmatprep.subr.bf16.mxu0 %v1771_v41 }
 0x1d0   : > { %713 = vst [vmem:[#allocation11 + $0x48] sm:$0xff] %v590_v42  ;;  %v592_v43 = vpop.f32.mrb[19].mxu0  ;;  %v1736_v44 = vpack.c.bf16 %v590_v42, %v585_v40  ;;  %v736_v40 = vld [vmem:[#allocation5] sm:$0xff]  ;;  %v1092_v42 = vld [vmem:[%s2400_s16 + $0x18] sm:$0xff]  ;;  %1774 = vmatpush3.bf16.msra.mxu0 %v1771_v41 }
 0x1d1   : > { %v739_v43 = vld [vmem:[#allocation5 + $0x18] sm:$0xff] }
 0x1d2   : > { %1737 = vmatpush1.bf16.msra.mxu1 %v1736_v44  ;;  %v1775_v44 = vpack.c.bf16 %v1092_v42, %v1091_v39  ;;  %v1104_v39 = vld [vmem:[%s2400_s16 + $0x78] sm:$0xff] }
 0x1d3   : > { %v595_v45 = vpop.f32.mrb[20].mxu0  ;;  %1738 = vmatprep.subr.bf16.mxu1 %v2168_v35  ;;  %v783_v42 = vld [vmem:[#allocation5 + $0x178] sm:$0xff] }
 0x1d4   : > { %714 = vst [vmem:[#allocation11 + $0x50] sm:$0xff] %v595_v45  ;;  %v597_v46 = vpop.f32.mrb[21].mxu0  ;;  %1776 = vmatprep.subr.bf16.mxu0 %v1775_v44 }
 0x1d5   : > { %v738_v46 = vld [vmem:[#allocation5 + $0x10] sm:$0xff]  ;;  %1778 = vmatpush3.bf16.msra.mxu0 %v1775_v44 }
 0x1d7   : > { %v600_v47 = vpop.f32.mrb[22].mxu0 }
 0x1d8   : > { %715 = vst [vmem:[#allocation11 + $0x58] sm:$0xff] %v600_v47  ;;  %v602_v48 = vpop.f32.mrb[23].mxu0  ;;  %v1739_v49 = vpack.c.bf16 %v600_v47, %v595_v45  ;;  %v1094_v45 = vld [vmem:[%s2400_s16 + $0x28] sm:$0xff] }
 0x1d9   : > { %v741_v48 = vld [vmem:[#allocation5 + $0x28] sm:$0xff] }
 0x1da   : > { %1740 = vmatpush1.bf16.msra.mxu1 %v1739_v49  ;;  %v1095_v49 = vld [vmem:[%s2400_s16 + $0x30] sm:$0xff] }
 0x1db   : > { %v605_v50 = vpop.f32.mrb[24].mxu0  ;;  %1741 = vmatprep.subr.bf16.mxu1 %v2168_v35 }
 0x1dc   : > { %716 = vst [vmem:[#allocation11 + $0x60] sm:$0xff] %v605_v50  ;;  %v607_v51 = vpop.f32.mrb[25].mxu0 }
 0x1dd   : > { %v740_v51 = vld [vmem:[#allocation5 + $0x20] sm:$0xff] }
 0x1df   : > { %v610_v52 = vpop.f32.mrb[26].mxu0 }
 0x1e0   : > { %717 = vst [vmem:[#allocation11 + $0x68] sm:$0xff] %v610_v52  ;;  %v612_v53 = vpop.f32.mrb[27].mxu0  ;;  %v1742_v54 = vpack.c.bf16 %v610_v52, %v605_v50  ;;  %v1096_v50 = vld [vmem:[%s2400_s16 + $0x38] sm:$0xff] }
 0x1e1   : > { %v1783_v52 = vpack.c.bf16 %v1096_v50, %v1095_v49  ;;  %v743_v53 = vld [vmem:[#allocation5 + $0x38] sm:$0xff]  ;;  %v790_v50 = vld [vmem:[#allocation5 + $0x1b0] sm:$0xff] }
 0x1e2   : > { %1743 = vmatpush1.bf16.msra.mxu1 %v1742_v54  ;;  %v1097_v54 = vld [vmem:[%s2400_s16 + $0x40] sm:$0xff]  ;;  %v791_v49 = vld [vmem:[#allocation5 + $0x1b8] sm:$0xff] }
 0x1e3   : > { %v615_v55 = vpop.f32.mrb[28].mxu0  ;;  %1744 = vmatprep.subr.bf16.mxu1 %v2168_v35 }
 0x1e4   : > { %718 = vst [vmem:[#allocation11 + $0x70] sm:$0xff] %v615_v55  ;;  %v617_v56 = vpop.f32.mrb[29].mxu0 }
 0x1e5   : > { %v742_v56 = vld [vmem:[#allocation5 + $0x30] sm:$0xff] }
 0x1e7   : > { %v620_v57 = vpop.f32.mrb[30].mxu0 }
 0x1e8   : > { %719 = vst [vmem:[#allocation11 + $0x78] sm:$0xff] %v620_v57  ;;  %v622_v58 = vpop.f32.mrb[31].mxu0  ;;  %v1745_v59 = vpack.c.bf16 %v620_v57, %v615_v55  ;;  %v1098_v55 = vld [vmem:[%s2400_s16 + $0x48] sm:$0xff] }
 0x1e9   : > { %v1787_v57 = vpack.c.bf16 %v1098_v55, %v1097_v54  ;;  %v745_v58 = vld [vmem:[#allocation5 + $0x48] sm:$0xff]  ;;  %v794_v54 = vld [vmem:[#allocation5 + $0x1d0] sm:$0xff] }
 0x1ea   : > { %1746 = vmatpush1.bf16.msra.mxu1 %v1745_v59  ;;  %v1099_v59 = vld [vmem:[%s2400_s16 + $0x50] sm:$0xff]  ;;  %v797_v55 = vld [vmem:[#allocation5 + $0x1e8] sm:$0xff] }
 0x1eb   : > { %v625_v60 = vpop.f32.mrb[32].mxu0  ;;  %1747 = vmatprep.subr.bf16.mxu1 %v2168_v35 }
 0x1ec   : > { %720 = vst [vmem:[#allocation11 + $0x80] sm:$0xff] %v625_v60  ;;  %v627_v61 = vpop.f32.mrb[33].mxu0 }
 0x1ed   : > { %v744_v61 = vld [vmem:[#allocation5 + $0x40] sm:$0xff] }
 0x1ef   : > { %v630_v62 = vpop.f32.mrb[34].mxu0 }
 0x1f0   : > { %721 = vst [vmem:[#allocation11 + $0x88] sm:$0xff] %v630_v62  ;;  %v632_v63 = vpop.f32.mrb[35].mxu0  ;;  %v1748_v0 = vpack.c.bf16 %v630_v62, %v625_v60  ;;  %v1100_v60 = vld [vmem:[%s2400_s16 + $0x58] sm:$0xff] }
 0x1f1   : > { %v1791_v62 = vpack.c.bf16 %v1100_v60, %v1099_v59  ;;  %v747_v63 = vld [vmem:[#allocation5 + $0x58] sm:$0xff]  ;;  %v1910_v60 = vld [vmem:[#allocation10] sm:$0xff] }
 0x1f2   : > { %1749 = vmatpush1.bf16.msra.mxu1 %v1748_v0  ;;  %v1101_v0 = vld [vmem:[%s2400_s16 + $0x60] sm:$0xff] }
 0x1f3   : > { %v635_v1 = vpop.f32.mrb[36].mxu0  ;;  %1750 = vmatprep.subr.bf16.mxu1 %v2168_v35 }
 0x1f4   : > { %722 = vst [vmem:[#allocation11 + $0x90] sm:$0xff] %v635_v1  ;;  %v637_v2 = vpop.f32.mrb[37].mxu0 }
 0x1f5   : > { %v746_v2 = vld [vmem:[#allocation5 + $0x50] sm:$0xff] }
 0x1f7   : > { %v640_v3 = vpop.f32.mrb[38].mxu0 }
 0x1f8   : > { %723 = vst [vmem:[#allocation11 + $0x98] sm:$0xff] %v640_v3  ;;  %v642_v4 = vpop.f32.mrb[39].mxu0  ;;  %v1751_v5 = vpack.c.bf16 %v640_v3, %v635_v1  ;;  %v1102_v1 = vld [vmem:[%s2400_s16 + $0x68] sm:$0xff] }
 0x1f9   : > { %v1795_v3 = vpack.c.bf16 %v1102_v1, %v1101_v0  ;;  %v749_v4 = vld [vmem:[#allocation5 + $0x68] sm:$0xff] }
 0x1fa   : > { %1752 = vmatpush1.bf16.msra.mxu1 %v1751_v5  ;;  %v748_v5 = vld [vmem:[#allocation5 + $0x60] sm:$0xff]  ;;  %v1911_v0 = vld [vmem:[#allocation10 + $0x8] sm:$0xff] }
 0x1fb   : > { %v645_v6 = vpop.f32.mrb[40].mxu0  ;;  %1753 = vmatprep.subr.bf16.mxu1 %v2168_v35 }
 0x1fc   : > { %724 = vst [vmem:[#allocation11 + $0xa0] sm:$0xff] %v645_v6  ;;  %v647_v7 = vpop.f32.mrb[41].mxu0 }
 0x1fd   : > { %v750_v7 = vld [vmem:[#allocation5 + $0x70] sm:$0xff] }
 0x1ff   : > { %v650_v8 = vpop.f32.mrb[42].mxu0 }
 0x200   : > { %725 = vst [vmem:[#allocation11 + $0xa8] sm:$0xff] %v650_v8  ;;  %v652_v9 = vpop.f32.mrb[43].mxu0  ;;  %v1754_v10 = vpack.c.bf16 %v650_v8, %v645_v6  ;;  %v751_v6 = vld [vmem:[#allocation5 + $0x78] sm:$0xff]  ;;  %v753_v8 = vld [vmem:[#allocation5 + $0x88] sm:$0xff] }
 0x201   : > { %v752_v9 = vld [vmem:[#allocation5 + $0x80] sm:$0xff] }
 0x202   : > { %1755 = vmatpush1.bf16.msra.mxu1 %v1754_v10  ;;  %v755_v10 = vld [vmem:[#allocation5 + $0x98] sm:$0xff] }
 0x203   : > { %v655_v11 = vpop.f32.mrb[44].mxu0  ;;  %1756 = vmatprep.subr.bf16.mxu1 %v2168_v35 }
 0x204   : > { %726 = vst [vmem:[#allocation11 + $0xb0] sm:$0xff] %v655_v11  ;;  %v657_v12 = vpop.f32.mrb[45].mxu0 }
 0x205   : > { %v757_v12 = vld [vmem:[#allocation5 + $0xa8] sm:$0xff] }
 0x207   : > { %v660_v13 = vpop.f32.mrb[46].mxu0 }
 0x208   : > { %727 = vst [vmem:[#allocation11 + $0xb8] sm:$0xff] %v660_v13  ;;  %v662_v14 = vpop.f32.mrb[47].mxu0  ;;  %v1757_v15 = vpack.c.bf16 %v660_v13, %v655_v11  ;;  %v754_v11 = vld [vmem:[#allocation5 + $0x90] sm:$0xff]  ;;  %v756_v13 = vld [vmem:[#allocation5 + $0xa0] sm:$0xff] }
 0x209   : > { %v759_v14 = vld [vmem:[#allocation5 + $0xb8] sm:$0xff] }
 0x20a   : > { %1758 = vmatpush1.bf16.msra.mxu1 %v1757_v15  ;;  %v758_v15 = vld [vmem:[#allocation5 + $0xb0] sm:$0xff] }
 0x20b   : > { %v665_v16 = vpop.f32.mrb[48].mxu0  ;;  %1759 = vmatprep.subr.bf16.mxu1 %v2168_v35 }
 0x20c   : > { %728 = vst [vmem:[#allocation11 + $0xc0] sm:$0xff] %v665_v16  ;;  %v667_v17 = vpop.f32.mrb[49].mxu0 }
 0x20d   : > { %v760_v17 = vld [vmem:[#allocation5 + $0xc0] sm:$0xff] }
 0x20f   : > { %v670_v18 = vpop.f32.mrb[50].mxu0 }
 0x210   : > { %729 = vst [vmem:[#allocation11 + $0xc8] sm:$0xff] %v670_v18  ;;  %v672_v19 = vpop.f32.mrb[51].mxu0  ;;  %v1760_v20 = vpack.c.bf16 %v670_v18, %v665_v16  ;;  %v761_v16 = vld [vmem:[#allocation5 + $0xc8] sm:$0xff]  ;;  %v763_v18 = vld [vmem:[#allocation5 + $0xd8] sm:$0xff] }
 0x211   : > { %v762_v19 = vld [vmem:[#allocation5 + $0xd0] sm:$0xff] }
 0x212   : > { %1761 = vmatpush1.bf16.msra.mxu1 %v1760_v20  ;;  %v765_v20 = vld [vmem:[#allocation5 + $0xe8] sm:$0xff] }
 0x213   : > { %v675_v21 = vpop.f32.mrb[52].mxu0  ;;  %1762 = vmatprep.subr.bf16.mxu1 %v2168_v35 }
 0x214   : > { %730 = vst [vmem:[#allocation11 + $0xd0] sm:$0xff] %v675_v21  ;;  %v677_v22 = vpop.f32.mrb[53].mxu0 }
 0x215   : > { %v767_v22 = vld [vmem:[#allocation5 + $0xf8] sm:$0xff] }
 0x217   : > { %v680_v23 = vpop.f32.mrb[54].mxu0 }
 0x218   : > { %731 = vst [vmem:[#allocation11 + $0xd8] sm:$0xff] %v680_v23  ;;  %v682_v24 = vpop.f32.mrb[55].mxu0  ;;  %v1763_v25 = vpack.c.bf16 %v680_v23, %v675_v21  ;;  %v764_v21 = vld [vmem:[#allocation5 + $0xe0] sm:$0xff]  ;;  %v766_v23 = vld [vmem:[#allocation5 + $0xf0] sm:$0xff] }
 0x219   : > { %v769_v24 = vld [vmem:[#allocation5 + $0x108] sm:$0xff] }
 0x21a   : > { %1764 = vmatpush1.bf16.msra.mxu1 %v1763_v25  ;;  %v768_v25 = vld [vmem:[#allocation5 + $0x100] sm:$0xff] }
 0x21b   : > { %v685_v26 = vpop.f32.mrb[56].mxu0  ;;  %1765 = vmatprep.subr.bf16.mxu1 %v2168_v35 }
 0x21c   : > { %732 = vst [vmem:[#allocation11 + $0xe0] sm:$0xff] %v685_v26  ;;  %v687_v27 = vpop.f32.mrb[57].mxu0 }
 0x21d   : > { %v770_v27 = vld [vmem:[#allocation5 + $0x110] sm:$0xff] }
 0x21f   : > { %v690_v28 = vpop.f32.mrb[58].mxu0 }
 0x220   : > { %733 = vst [vmem:[#allocation11 + $0xe8] sm:$0xff] %v690_v28  ;;  %v692_v29 = vpop.f32.mrb[59].mxu0  ;;  %v1766_v30 = vpack.c.bf16 %v690_v28, %v685_v26  ;;  %v771_v26 = vld [vmem:[#allocation5 + $0x118] sm:$0xff]  ;;  %v773_v28 = vld [vmem:[#allocation5 + $0x128] sm:$0xff] }
 0x221   : > { %v772_v29 = vld [vmem:[#allocation5 + $0x120] sm:$0xff] }
 0x222   : > { %1767 = vmatpush1.bf16.msra.mxu1 %v1766_v30  ;;  %v775_v30 = vld [vmem:[#allocation5 + $0x138] sm:$0xff] }
 0x223   : > { %v695_v31 = vpop.f32.mrb[60].mxu0  ;;  %1768 = vmatprep.subr.bf16.mxu1 %v2168_v35  ;;  %v1093_v35 = vld [vmem:[%s2400_s16 + $0x20] sm:$0xff] }
 0x224   : > { %734 = vst [vmem:[#allocation11 + $0xf0] sm:$0xff] %v695_v31  ;;  %v697_v32 = vpop.f32.mrb[61].mxu0  ;;  %v1779_v47 = vpack.c.bf16 %v1094_v45, %v1093_v35  ;;  %v784_v35 = vld [vmem:[#allocation5 + $0x180] sm:$0xff]  ;;  %v787_v45 = vld [vmem:[#allocation5 + $0x198] sm:$0xff] }
 0x225   : > { %v777_v32 = vld [vmem:[#allocation5 + $0x148] sm:$0xff] }
 0x226   : > { %1780 = vmatprep.subr.bf16.mxu0 %v1779_v47 }
 0x227   : > { %v700_v33 = vpop.f32.mrb[62].mxu0  ;;  %1782 = vmatpush3.bf16.msra.mxu0 %v1779_v47 }
 0x228   : > { %735 = vst [vmem:[#allocation11 + $0xf8] sm:$0xff] %v700_v33  ;;  %v702_v34 = vpop.f32.mrb[63].mxu0  ;;  %v1769_v36 = vpack.c.bf16 %v700_v33, %v695_v31  ;;  %1784 = vmatprep.subr.bf16.mxu0 %v1783_v52  ;;  %v774_v31 = vld [vmem:[#allocation5 + $0x130] sm:$0xff]  ;;  %v776_v33 = vld [vmem:[#allocation5 + $0x140] sm:$0xff] }
 0x229   : > { %v779_v34 = vld [vmem:[#allocation5 + $0x158] sm:$0xff] }
 0x22a   : > { %1770 = vmatpush1.bf16.msra.mxu1 %v1769_v36  ;;  %v778_v36 = vld [vmem:[#allocation5 + $0x150] sm:$0xff] }
 0x22b   : > { %1803 = vmatprep.subr.bf16.mxu1 %v1771_v41  ;;  %1786 = vmatpush3.bf16.msra.mxu0 %v1783_v52 }
 0x22c   : > { %1788 = vmatprep.subr.bf16.mxu0 %v1787_v57 }
 0x22d   : > { %897 = vmatmul.mubr.f32.vlgmr.msra.gmra.mrb[0].mxu1 %v736_v40  ;;  %v1799_v40 = vpack.c.bf16 %v1104_v39, %v1103_v38 }
 0x22e   : > { %901 = vmatprep.mubr.f32.mxu1 %v739_v43  ;;  %1811 = vmatpush3.bf16.msra.mxu1 %v1771_v41  ;;  %v780_v41 = vld [vmem:[#allocation5 + $0x160] sm:$0xff]  ;;  %v782_v43 = vld [vmem:[#allocation5 + $0x170] sm:$0xff] }
 0x22f   : > { %1804 = vmatprep.subr.bf16.mxu1 %v1775_v44  ;;  %1790 = vmatpush3.bf16.msra.mxu0 %v1787_v57 }
 0x230   : > { %1792 = vmatprep.subr.bf16.mxu0 %v1791_v62 }
 0x231   : > { %902 = vmatmul.mubr.f32.gmra.mrb[2].mxu1 %v738_v46  ;;  %v786_v46 = vld [vmem:[#allocation5 + $0x190] sm:$0xff] }
 0x232   : > { %906 = vmatprep.mubr.f32.mxu1 %v741_v48  ;;  %1812 = vmatpush3.bf16.msra.mxu1 %v1775_v44  ;;  %v785_v44 = vld [vmem:[#allocation5 + $0x188] sm:$0xff]  ;;  %v788_v48 = vld [vmem:[#allocation5 + $0x1a0] sm:$0xff] }
 0x233   : > { %1805 = vmatprep.subr.bf16.mxu1 %v1779_v47  ;;  %1794 = vmatpush3.bf16.msra.mxu0 %v1791_v62 }
 0x234   : > { %1796 = vmatprep.subr.bf16.mxu0 %v1795_v3 }
 0x235   : > { %907 = vmatmul.mubr.f32.gmra.mrb[4].mxu1 %v740_v51  ;;  %v793_v51 = vld [vmem:[#allocation5 + $0x1c8] sm:$0xff] }
 0x236   : > { %911 = vmatprep.mubr.f32.mxu1 %v743_v53  ;;  %1813 = vmatpush3.bf16.msra.mxu1 %v1779_v47  ;;  %v789_v47 = vld [vmem:[#allocation5 + $0x1a8] sm:$0xff]  ;;  %v795_v53 = vld [vmem:[#allocation5 + $0x1d8] sm:$0xff] }
 0x237   : > { %1806 = vmatprep.subr.bf16.mxu1 %v1783_v52  ;;  %1798 = vmatpush3.bf16.msra.mxu0 %v1795_v3 }
 0x238   : > { %1800 = vmatprep.subr.bf16.mxu0 %v1799_v40 }
 0x239   : > { %912 = vmatmul.mubr.f32.gmra.mrb[6].mxu1 %v742_v56  ;;  %v796_v56 = vld [vmem:[#allocation5 + $0x1e0] sm:$0xff] }
 0x23a   : > { %916 = vmatprep.mubr.f32.mxu1 %v745_v58  ;;  %1814 = vmatpush3.bf16.msra.mxu1 %v1783_v52  ;;  %v792_v52 = vld [vmem:[#allocation5 + $0x1c0] sm:$0xff]  ;;  %v798_v58 = vld [vmem:[#allocation5 + $0x1f0] sm:$0xff] }
 0x23b   : > { %1807 = vmatprep.subr.bf16.mxu1 %v1787_v57  ;;  %1802 = vmatpush3.bf16.msra.mxu0 %v1799_v40 }
 0x23d   : > { %917 = vmatmul.mubr.f32.gmra.mrb[8].mxu1 %v744_v61 }
 0x23e   : > { %921 = vmatprep.mubr.f32.mxu1 %v747_v63  ;;  %1815 = vmatpush3.bf16.msra.mxu1 %v1787_v57  ;;  %v799_v57 = vld [vmem:[#allocation5 + $0x1f8] sm:$0xff] }
 0x23f   : > { %1808 = vmatprep.subr.bf16.mxu1 %v1791_v62 }
 0x241   : > { %922 = vmatmul.mubr.f32.gmra.mrb[10].mxu1 %v746_v2 }
 0x242   : > { %926 = vmatprep.mubr.f32.mxu1 %v749_v4  ;;  %1816 = vmatpush3.bf16.msra.mxu1 %v1791_v62  ;;  %v1912_v4 = vld [vmem:[#allocation10 + $0x10] sm:$0xff] }
 0x243   : > { %1809 = vmatprep.subr.bf16.mxu1 %v1795_v3 }
 0x245   : > { %927 = vmatmul.mubr.f32.gmra.mrb[12].mxu1 %v748_v5 }
 0x246   : > { %931 = vmatprep.mubr.f32.mxu1 %v751_v6  ;;  %1817 = vmatpush3.bf16.msra.mxu1 %v1795_v3 }
 0x247   : > { %1810 = vmatprep.subr.bf16.mxu1 %v1799_v40 }
 0x249   : > { %932 = vmatmul.mubr.f32.gmra.mrb[14].mxu1 %v750_v7 }
 0x24a   : > { %936 = vmatprep.mubr.f32.mxu1 %v753_v8  ;;  %1818 = vmatpush3.bf16.msra.mxu1 %v1799_v40  ;;  %v1913_v8 = vld [vmem:[#allocation10 + $0x18] sm:$0xff] }
 0x24d   : > { %937 = vmatmul.mubr.f32.gmra.mrb[16].mxu1 %v752_v9 }
 0x24e   : > { %941 = vmatprep.mubr.f32.mxu1 %v755_v10 }
 0x251   : > { %942 = vmatmul.mubr.f32.gmra.mrb[18].mxu1 %v754_v11 }
 0x252   : > { %946 = vmatprep.mubr.f32.mxu1 %v757_v12  ;;  %v1914_v12 = vld [vmem:[#allocation10 + $0x20] sm:$0xff] }
 0x255   : > { %947 = vmatmul.mubr.f32.gmra.mrb[20].mxu1 %v756_v13 }
 0x256   : > { %951 = vmatprep.mubr.f32.mxu1 %v759_v14 }
 0x259   : > { %952 = vmatmul.mubr.f32.gmra.mrb[22].mxu1 %v758_v15 }
 0x25a   : > { %956 = vmatprep.mubr.f32.mxu1 %v761_v16  ;;  %v1915_v16 = vld [vmem:[#allocation10 + $0x28] sm:$0xff] }
 0x25d   : > { %957 = vmatmul.mubr.f32.gmra.mrb[24].mxu1 %v760_v17 }
 0x25e   : > { %961 = vmatprep.mubr.f32.mxu1 %v763_v18 }
 0x261   : > { %962 = vmatmul.mubr.f32.gmra.mrb[26].mxu1 %v762_v19 }
 0x262   : > { %966 = vmatprep.mubr.f32.mxu1 %v765_v20  ;;  %v1916_v20 = vld [vmem:[#allocation10 + $0x30] sm:$0xff] }
 0x265   : > { %967 = vmatmul.mubr.f32.gmra.mrb[28].mxu1 %v764_v21 }
 0x266   : > { %971 = vmatprep.mubr.f32.mxu1 %v767_v22 }
 0x269   : > { %972 = vmatmul.mubr.f32.gmra.mrb[30].mxu1 %v766_v23 }
 0x26a   : > { %976 = vmatprep.mubr.f32.mxu1 %v769_v24  ;;  %v1917_v24 = vld [vmem:[#allocation10 + $0x38] sm:$0xff] }
 0x26d   : > { %977 = vmatmul.mubr.f32.gmra.mrb[32].mxu1 %v768_v25 }
 0x26e   : > { %981 = vmatprep.mubr.f32.mxu1 %v771_v26 }
 0x271   : > { %982 = vmatmul.mubr.f32.gmra.mrb[34].mxu1 %v770_v27 }
 0x272   : > { %986 = vmatprep.mubr.f32.mxu1 %v773_v28  ;;  %v1918_v28 = vld [vmem:[#allocation10 + $0x40] sm:$0xff] }
 0x275   : > { %987 = vmatmul.mubr.f32.gmra.mrb[36].mxu1 %v772_v29 }
 0x276   : > { %991 = vmatprep.mubr.f32.mxu1 %v775_v30 }
 0x279   : > { %992 = vmatmul.mubr.f32.gmra.mrb[38].mxu1 %v774_v31 }
 0x27a   : > { %996 = vmatprep.mubr.f32.mxu1 %v777_v32  ;;  %v1919_v32 = vld [vmem:[#allocation10 + $0x48] sm:$0xff] }
 0x27d   : > { %997 = vmatmul.mubr.f32.gmra.mrb[40].mxu1 %v776_v33 }
 0x27e   : > { %1001 = vmatprep.mubr.f32.mxu1 %v779_v34 }
 0x281   : > { %1002 = vmatmul.mubr.f32.gmra.mrb[42].mxu1 %v778_v36 }
 0x282   : > { %1006 = vmatprep.mubr.f32.mxu1 %v781_v37  ;;  %v1920_v37 = vld [vmem:[#allocation10 + $0x50] sm:$0xff] }
 0x285   : > { %1007 = vmatmul.mubr.f32.gmra.mrb[44].mxu1 %v780_v41  ;;  %v1921_v41 = vld [vmem:[#allocation10 + $0x58] sm:$0xff] }
 0x286   : > { %1011 = vmatprep.mubr.f32.mxu1 %v783_v42 }
 0x289   : > { %1012 = vmatmul.mubr.f32.gmra.mrb[46].mxu1 %v782_v43 }
 0x28a   : > { %1016 = vmatprep.mubr.f32.mxu1 %v785_v44 }
 0x28d   : > { %1017 = vmatmul.mubr.f32.gmra.mrb[48].mxu1 %v784_v35  ;;  %v1922_v35 = vld [vmem:[#allocation10 + $0x60] sm:$0xff] }
 0x28e   : > { %1021 = vmatprep.mubr.f32.mxu1 %v787_v45 }
 0x291   : > { %1022 = vmatmul.mubr.f32.gmra.mrb[50].mxu1 %v786_v46 }
 0x292   : > { %1026 = vmatprep.mubr.f32.mxu1 %v789_v47 }
 0x295   : > { %1027 = vmatmul.mubr.f32.gmra.mrb[52].mxu1 %v788_v48  ;;  %v1923_v48 = vld [vmem:[#allocation10 + $0x68] sm:$0xff] }
 0x296   : > { %1031 = vmatprep.mubr.f32.mxu1 %v791_v49 }
 0x299   : > { %1032 = vmatmul.mubr.f32.gmra.mrb[54].mxu1 %v790_v50 }
 0x29a   : > { %1036 = vmatprep.mubr.f32.mxu1 %v793_v51 }
 0x29d   : > { %1037 = vmatmul.mubr.f32.gmra.mrb[56].mxu1 %v792_v52  ;;  %v1924_v52 = vld [vmem:[#allocation10 + $0x70] sm:$0xff] }
 0x29e   : > { %1041 = vmatprep.mubr.f32.mxu1 %v795_v53 }
 0x2a1   : > { %1042 = vmatmul.mubr.f32.gmra.mrb[58].mxu1 %v794_v54 }
 0x2a2   : > { %1046 = vmatprep.mubr.f32.mxu1 %v797_v55 }
 0x2a5   : > { %1047 = vmatmul.mubr.f32.gmra.mrb[60].mxu1 %v796_v56  ;;  %v1925_v56 = vld [vmem:[#allocation10 + $0x78] sm:$0xff] }
 0x2a6   : > { %1051 = vmatprep.mubr.f32.mxu1 %v799_v57 }
 0x2a9   : > { %1052 = vmatmul.mubr.f32.gmra.mrb[62].mxu1 %v798_v58 }
 0x300   : > { %v898_v59 = vpop.f32.mrb[0].mxu1 }
 0x301   : > { %v1057_v61 = vadd.f32 %v1910_v60, %v898_v59  ;;  %v900_v62 = vpop.f32.mrb[1].mxu1  ;;  %v1926_v60 = vld [vmem:[#allocation10 + $0x80] sm:$0xff] }
 0x303   : > { %1627 = vmatprep.mubr.f32.mxu0 %v1057_v61 }
 0x304   : > { %v903_v63 = vpop.f32.mrb[2].mxu1 }
 0x305   : > { %v1058_v1 = vadd.f32 %v1911_v0, %v903_v63  ;;  %v905_v2 = vpop.f32.mrb[3].mxu1  ;;  %v1927_v0 = vld [vmem:[#allocation10 + $0x88] sm:$0xff] }
 0x307   : > { %1628 = vmatmul.mubr.f32.vlgmr.msra.gmra.mrb[64].mxu0 %v1058_v1 }
 0x308   : > { %v908_v3 = vpop.f32.mrb[4].mxu1 }
 0x309   : > { %v1059_v5 = vadd.f32 %v1912_v4, %v908_v3  ;;  %v910_v6 = vpop.f32.mrb[5].mxu1  ;;  %v1928_v4 = vld [vmem:[#allocation10 + $0x90] sm:$0xff] }
 0x30b   : > { %1630 = vmatprep.mubr.f32.mxu0 %v1059_v5 }
 0x30c   : > { %v913_v7 = vpop.f32.mrb[6].mxu1 }
 0x30d   : > { %v1060_v9 = vadd.f32 %v1913_v8, %v913_v7  ;;  %v915_v10 = vpop.f32.mrb[7].mxu1  ;;  %v1929_v8 = vld [vmem:[#allocation10 + $0x98] sm:$0xff] }
 0x30f   : > { %1631 = vmatmul.mubr.f32.gmra.mrb[66].mxu0 %v1060_v9 }
 0x310   : > { %v918_v11 = vpop.f32.mrb[8].mxu1 }
 0x311   : > { %v1061_v13 = vadd.f32 %v1914_v12, %v918_v11  ;;  %v920_v14 = vpop.f32.mrb[9].mxu1  ;;  %v1930_v12 = vld [vmem:[#allocation10 + $0xa0] sm:$0xff] }
 0x313   : > { %1633 = vmatprep.mubr.f32.mxu0 %v1061_v13 }
 0x314   : > { %v923_v15 = vpop.f32.mrb[10].mxu1 }
 0x315   : > { %v1062_v17 = vadd.f32 %v1915_v16, %v923_v15  ;;  %v925_v18 = vpop.f32.mrb[11].mxu1  ;;  %v1931_v16 = vld [vmem:[#allocation10 + $0xa8] sm:$0xff] }
 0x317   : > { %1634 = vmatmul.mubr.f32.gmra.mrb[68].mxu0 %v1062_v17 }
 0x318   : > { %v928_v19 = vpop.f32.mrb[12].mxu1 }
 0x319   : > { %v1063_v21 = vadd.f32 %v1916_v20, %v928_v19  ;;  %v930_v22 = vpop.f32.mrb[13].mxu1  ;;  %v1932_v20 = vld [vmem:[#allocation10 + $0xb0] sm:$0xff] }
 0x31b   : > { %1636 = vmatprep.mubr.f32.mxu0 %v1063_v21 }
 0x31c   : > { %v933_v23 = vpop.f32.mrb[14].mxu1 }
 0x31d   : > { %v1064_v25 = vadd.f32 %v1917_v24, %v933_v23  ;;  %v935_v26 = vpop.f32.mrb[15].mxu1  ;;  %v1933_v24 = vld [vmem:[#allocation10 + $0xb8] sm:$0xff] }
 0x31f   : > { %1637 = vmatmul.mubr.f32.gmra.mrb[70].mxu0 %v1064_v25 }
 0x320   : > { %v938_v27 = vpop.f32.mrb[16].mxu1 }
 0x321   : > { %v1065_v29 = vadd.f32 %v1918_v28, %v938_v27  ;;  %v940_v30 = vpop.f32.mrb[17].mxu1  ;;  %v1934_v28 = vld [vmem:[#allocation10 + $0xc0] sm:$0xff] }
 0x323   : > { %1639 = vmatprep.mubr.f32.mxu0 %v1065_v29 }
 0x324   : > { %v943_v31 = vpop.f32.mrb[18].mxu1 }
 0x325   : > { %v1066_v33 = vadd.f32 %v1919_v32, %v943_v31  ;;  %v945_v34 = vpop.f32.mrb[19].mxu1  ;;  %v1935_v32 = vld [vmem:[#allocation10 + $0xc8] sm:$0xff] }
 0x327   : > { %1640 = vmatmul.mubr.f32.gmra.mrb[72].mxu0 %v1066_v33 }
 0x328   : > { %v948_v36 = vpop.f32.mrb[20].mxu1 }
 0x329   : > { %v1067_v38 = vadd.f32 %v1920_v37, %v948_v36  ;;  %v950_v39 = vpop.f32.mrb[21].mxu1  ;;  %v1936_v37 = vld [vmem:[#allocation10 + $0xd0] sm:$0xff] }
 0x32b   : > { %1642 = vmatprep.mubr.f32.mxu0 %v1067_v38 }
 0x32c   : > { %v953_v40 = vpop.f32.mrb[22].mxu1 }
 0x32d   : > { %v1068_v42 = vadd.f32 %v1921_v41, %v953_v40  ;;  %v955_v43 = vpop.f32.mrb[23].mxu1  ;;  %v1937_v41 = vld [vmem:[#allocation10 + $0xd8] sm:$0xff] }
 0x32f   : > { %1643 = vmatmul.mubr.f32.gmra.mrb[74].mxu0 %v1068_v42 }
 0x330   : > { %v958_v44 = vpop.f32.mrb[24].mxu1 }
 0x331   : > { %v1069_v45 = vadd.f32 %v1922_v35, %v958_v44  ;;  %v960_v46 = vpop.f32.mrb[25].mxu1  ;;  %v1938_v35 = vld [vmem:[#allocation10 + $0xe0] sm:$0xff] }
 0x333   : > { %1645 = vmatprep.mubr.f32.mxu0 %v1069_v45 }
 0x334   : > { %v963_v47 = vpop.f32.mrb[26].mxu1 }
 0x335   : > { %v1070_v49 = vadd.f32 %v1923_v48, %v963_v47  ;;  %v965_v50 = vpop.f32.mrb[27].mxu1  ;;  %v1939_v48 = vld [vmem:[#allocation10 + $0xe8] sm:$0xff] }
 0x337   : > { %1646 = vmatmul.mubr.f32.gmra.mrb[76].mxu0 %v1070_v49 }
 0x338   : > { %v968_v51 = vpop.f32.mrb[28].mxu1 }
 0x339   : > { %v1071_v53 = vadd.f32 %v1924_v52, %v968_v51  ;;  %v970_v54 = vpop.f32.mrb[29].mxu1  ;;  %v1940_v52 = vld [vmem:[#allocation10 + $0xf0] sm:$0xff] }
 0x33b   : > { %1648 = vmatprep.mubr.f32.mxu0 %v1071_v53 }
 0x33c   : > { %v973_v55 = vpop.f32.mrb[30].mxu1 }
 0x33d   : > { %v1072_v57 = vadd.f32 %v1925_v56, %v973_v55  ;;  %v975_v58 = vpop.f32.mrb[31].mxu1  ;;  %v1941_v56 = vld [vmem:[#allocation10 + $0xf8] sm:$0xff] }
 0x33f   : > { %1649 = vmatmul.mubr.f32.gmra.mrb[78].mxu0 %v1072_v57 }
 0x340   : > { %v978_v59 = vpop.f32.mrb[32].mxu1 }
 0x341   : > { %v1073_v61 = vadd.f32 %v1926_v60, %v978_v59  ;;  %v980_v62 = vpop.f32.mrb[33].mxu1  ;;  %v2470_v59 = vld [vmem:[%s314_s24] ss:$0 sm:$0xff] }
 0x343   : > { %1651 = vmatprep.mubr.f32.mxu1 %v1073_v61 }
 0x344   : > { %v983_v63 = vpop.f32.mrb[34].mxu1 }
 0x345   : > { %v1074_v1 = vadd.f32 %v1927_v0, %v983_v63  ;;  %v985_v2 = vpop.f32.mrb[35].mxu1 }
 0x347   : > { %1652 = vmatmul.mubr.f32.vlgmr.msra.gmra.mrb[64].mxu1 %v1074_v1 }
 0x348   : > { %v988_v3 = vpop.f32.mrb[36].mxu1 }
 0x349   : > { %v1075_v5 = vadd.f32 %v1928_v4, %v988_v3  ;;  %v990_v6 = vpop.f32.mrb[37].mxu1 }
 0x34b   : > { %1654 = vmatprep.mubr.f32.mxu1 %v1075_v5 }
 0x34c   : > { %v993_v7 = vpop.f32.mrb[38].mxu1 }
 0x34d   : > { %v1076_v9 = vadd.f32 %v1929_v8, %v993_v7  ;;  %v995_v10 = vpop.f32.mrb[39].mxu1 }
 0x34f   : > { %1655 = vmatmul.mubr.f32.gmra.mrb[66].mxu1 %v1076_v9 }
 0x350   : > { %v998_v11 = vpop.f32.mrb[40].mxu1 }
 0x351   : > { %v1077_v13 = vadd.f32 %v1930_v12, %v998_v11  ;;  %v1000_v14 = vpop.f32.mrb[41].mxu1 }
 0x353   : > { %1657 = vmatprep.mubr.f32.mxu1 %v1077_v13 }
 0x354   : > { %v1003_v15 = vpop.f32.mrb[42].mxu1 }
 0x355   : > { %v1078_v17 = vadd.f32 %v1931_v16, %v1003_v15  ;;  %v1005_v18 = vpop.f32.mrb[43].mxu1 }
 0x357   : > { %1658 = vmatmul.mubr.f32.gmra.mrb[68].mxu1 %v1078_v17 }
 0x358   : > { %v1008_v19 = vpop.f32.mrb[44].mxu1 }
 0x359   : > { %v1079_v21 = vadd.f32 %v1932_v20, %v1008_v19  ;;  %v1010_v22 = vpop.f32.mrb[45].mxu1 }
 0x35b   : > { %1660 = vmatprep.mubr.f32.mxu1 %v1079_v21 }
 0x35c   : > { %v1013_v23 = vpop.f32.mrb[46].mxu1 }
 0x35d   : > { %v1080_v25 = vadd.f32 %v1933_v24, %v1013_v23  ;;  %v1015_v26 = vpop.f32.mrb[47].mxu1 }
 0x35f   : > { %1661 = vmatmul.mubr.f32.gmra.mrb[70].mxu1 %v1080_v25 }
 0x360   : > { %v1018_v27 = vpop.f32.mrb[48].mxu1 }
 0x361   : > { %v1081_v29 = vadd.f32 %v1934_v28, %v1018_v27  ;;  %v1020_v30 = vpop.f32.mrb[49].mxu1 }
 0x363   : > { %1663 = vmatprep.mubr.f32.mxu1 %v1081_v29 }
 0x364   : > { %v1023_v31 = vpop.f32.mrb[50].mxu1 }
 0x365   : > { %v1082_v33 = vadd.f32 %v1935_v32, %v1023_v31  ;;  %v1025_v34 = vpop.f32.mrb[51].mxu1 }
 0x367   : > { %1664 = vmatmul.mubr.f32.gmra.mrb[72].mxu1 %v1082_v33 }
 0x368   : > { %v1028_v36 = vpop.f32.mrb[52].mxu1 }
 0x369   : > { %v1083_v38 = vadd.f32 %v1936_v37, %v1028_v36  ;;  %v1030_v39 = vpop.f32.mrb[53].mxu1 }
 0x36b   : > { %1666 = vmatprep.mubr.f32.mxu1 %v1083_v38 }
 0x36c   : > { %v1033_v40 = vpop.f32.mrb[54].mxu1 }
 0x36d   : > { %v1084_v42 = vadd.f32 %v1937_v41, %v1033_v40  ;;  %v1035_v43 = vpop.f32.mrb[55].mxu1 }
 0x36f   : > { %1667 = vmatmul.mubr.f32.gmra.mrb[74].mxu1 %v1084_v42 }
 0x370   : > { %v1038_v44 = vpop.f32.mrb[56].mxu1 }
 0x371   : > { %v1085_v45 = vadd.f32 %v1938_v35, %v1038_v44  ;;  %v1040_v46 = vpop.f32.mrb[57].mxu1 }
 0x373   : > { %1669 = vmatprep.mubr.f32.mxu1 %v1085_v45 }
 0x374   : > { %v1043_v47 = vpop.f32.mrb[58].mxu1 }
 0x375   : > { %v1086_v49 = vadd.f32 %v1939_v48, %v1043_v47  ;;  %v1045_v50 = vpop.f32.mrb[59].mxu1 }
 0x377   : > { %1670 = vmatmul.mubr.f32.gmra.mrb[76].mxu1 %v1086_v49 }
 0x378   : > { %v1048_v51 = vpop.f32.mrb[60].mxu1 }
 0x379   : > { %v1087_v53 = vadd.f32 %v1940_v52, %v1048_v51  ;;  %v1050_v54 = vpop.f32.mrb[61].mxu1 }
 0x37b   : > { %1672 = vmatprep.mubr.f32.mxu1 %v1087_v53 }
 0x37c   : > { %v1053_v55 = vpop.f32.mrb[62].mxu1 }
 0x37d   : > { %v1088_v57 = vadd.f32 %v1941_v56, %v1053_v55  ;;  %v1055_v58 = vpop.f32.mrb[63].mxu1 }
 0x37f   : > { %1673 = vmatmul.mubr.f32.gmra.mrb[78].mxu1 %v1088_v57 }
 0x3da   : > { %v1629_v60 = vpop.f32.mrb[64].mxu0 }
 0x3db   : > { %v1184_v61 = vadd.f32 %v1629_v60, %v2470_v59  ;;  %v1178_v62 = vpop.f32.mrb[65].mxu0 }
 0x3dc   : > { %2069 = shalt.err (!%p2066_p7)
}
 0x3dd   : > { %s2070_s30 = scalar_lea.hbm %s2573_s6, 4096 }
 0x3de   : > { %p2071_p1 = scmp.ne.s32.totalorder %s2573_s6, %s2070_s30  ;;  %p2076_p8 = scmp.lt.u32.totalorder %s2070_s30, %s2573_s6 }
 0x3e0   : > { %p2072_p4 = pnand %p2071_p1, %p1862_p12 }
 0x3e2   : > { %p2073_p5 = pneg %p2072_p4 }
 0x3e4   : > { %p2078_p6 = pnand %p2076_p8, %p2073_p5 }
 0x3e6   : > { %2081 = shalt.err (!%p2078_p6)
}
 0x3e7   : > { %s2170_s14 = smov 128   ;;  %s2171_s8 = smov 8   ;;  %v1179_v63 = vadd.f32 %v2470_v59, %v1178_v62  ;;  %v1338_v0 = vmax.f32 %v1184_v61, 0.0  ;;  %v1632_v2 = vpop.f32.mrb[66].mxu0 }
 0x3e8   : > { %1836 = dma.vmem_to_hbm [thread:$0]  (%p1862_p12), %s1421_s21, 4096, %s2573_s6, [#allocation12], %s2170_s14, %s2170_s14, %s2171_s8   ;;  %v1194_v3 = vadd.f32 %v1632_v2, %v2470_v59  ;;  %v1188_v4 = vpop.f32.mrb[67].mxu0 }
 0x3e9   : > { %v1337_v1 = vmax.f32 %v1179_v63, 0.0  ;;  %1370 = vst [vmem:[#allocation10 + $0x8] sm:$0xff] %v1338_v0  ;;  %v1189_v5 = vadd.f32 %v2470_v59, %v1188_v4  ;;  %s2172_s12 = smov [#allocation10]  }
 0x3ea   : > { %v1340_v6 = vmax.f32 %v1194_v3, 0.0  ;;  %v1635_v8 = vpop.f32.mrb[68].mxu0  ;;  %s1407_s13 = sshll.u32 %s2172_s12, 4  ;;  %s1408_s13 = int_to_ptr.vmem [resolvable:$true] %s1407_s13 }
 0x3eb   : > { %1369 = vst [vmem:[#allocation10] sm:$0xff] %v1337_v1  ;;  %v1339_v7 = vmax.f32 %v1189_v5, 0.0  ;;  %v1204_v9 = vadd.f32 %v1635_v8, %v2470_v59  ;;  %v1198_v10 = vpop.f32.mrb[69].mxu0  ;;  %s2082_s24 = scalar_lea.vmem %s1408_s13, 4096  ;;  %p2089_p3 = scmp.lt.s32.totalorder %s1408_s13, %s1408_s13 }
 0x3ec   : > { %1372 = vst [vmem:[#allocation10 + $0x18] sm:$0xff] %v1340_v6  ;;  %v1199_v11 = vadd.f32 %v2470_v59, %v1198_v10  ;;  %p2083_p10 = scmp.ne.s32.totalorder %s1408_s13, %s2082_s24  ;;  %p2090_p9 = scmp.lt.s32.totalorder %s2082_s24, %s2082_s24 }
 0x3ed   : > { %1371 = vst [vmem:[#allocation10 + $0x10] sm:$0xff] %v1339_v7  ;;  %v1342_v12 = vmax.f32 %v1204_v9, 0.0 }
 0x3ee   : > { %v1341_v13 = vmax.f32 %v1199_v11, 0.0  ;;  %p2084_p13 = pnand %p2083_p10, %p1862_p12  ;;  %p2091_p11 = por %p2090_p9, %p2089_p3 }
 0x3ef   : > { %1374 = vst [vmem:[#allocation10 + $0x28] sm:$0xff] %v1342_v12 }
 0x3f0   : > { %1373 = vst [vmem:[#allocation10 + $0x20] sm:$0xff] %v1341_v13  ;;  %p2085_p0 = pneg %p2084_p13 }
 0x3f2   : > { %v1638_v14 = vpop.f32.mrb[70].mxu0  ;;  %p2092_p2 = pnand %p2091_p11, %p2085_p0 }
 0x3f3   : > { %v1214_v15 = vadd.f32 %v1638_v14, %v2470_v59  ;;  %v1208_v16 = vpop.f32.mrb[71].mxu0 }
 0x3f4   : > { %v1209_v17 = vadd.f32 %v2470_v59, %v1208_v16 }
 0x3f5   : > { %v1344_v18 = vmax.f32 %v1214_v15, 0.0 }
 0x3f6   : > { %v1343_v19 = vmax.f32 %v1209_v17, 0.0 }
 0x3f7   : > { %1376 = vst [vmem:[#allocation10 + $0x38] sm:$0xff] %v1344_v18 }
 0x3f8   : > { %1375 = vst [vmem:[#allocation10 + $0x30] sm:$0xff] %v1343_v19 }
 0x3fa   : > { %v1641_v20 = vpop.f32.mrb[72].mxu0 }
 0x3fb   : > { %v1224_v21 = vadd.f32 %v1641_v20, %v2470_v59  ;;  %v1218_v22 = vpop.f32.mrb[73].mxu0 }
 0x3fc   : > { %v1219_v23 = vadd.f32 %v2470_v59, %v1218_v22 }
 0x3fd   : > { %v1346_v24 = vmax.f32 %v1224_v21, 0.0 }
 0x3fe   : > { %v1345_v25 = vmax.f32 %v1219_v23, 0.0 }
 0x3ff   : > { %1378 = vst [vmem:[#allocation10 + $0x48] sm:$0xff] %v1346_v24 }
 0x400   : > { %1377 = vst [vmem:[#allocation10 + $0x40] sm:$0xff] %v1345_v25 }
 0x402   : > { %v1644_v26 = vpop.f32.mrb[74].mxu0 }
 0x403   : > { %v1234_v27 = vadd.f32 %v1644_v26, %v2470_v59  ;;  %v1228_v28 = vpop.f32.mrb[75].mxu0 }
 0x404   : > { %v1229_v29 = vadd.f32 %v2470_v59, %v1228_v28 }
 0x405   : > { %v1348_v30 = vmax.f32 %v1234_v27, 0.0 }
 0x406   : > { %v1347_v31 = vmax.f32 %v1229_v29, 0.0 }
 0x407   : > { %1380 = vst [vmem:[#allocation10 + $0x58] sm:$0xff] %v1348_v30 }
 0x408   : > { %1379 = vst [vmem:[#allocation10 + $0x50] sm:$0xff] %v1347_v31 }
 0x40a   : > { %v1647_v32 = vpop.f32.mrb[76].mxu0 }
 0x40b   : > { %v1244_v33 = vadd.f32 %v1647_v32, %v2470_v59  ;;  %v1238_v34 = vpop.f32.mrb[77].mxu0 }
 0x40c   : > { %v1239_v36 = vadd.f32 %v2470_v59, %v1238_v34 }
 0x40d   : > { %v1350_v37 = vmax.f32 %v1244_v33, 0.0 }
 0x40e   : > { %v1349_v38 = vmax.f32 %v1239_v36, 0.0 }
 0x40f   : > { %1382 = vst [vmem:[#allocation10 + $0x68] sm:$0xff] %v1350_v37 }
 0x410   : > { %1381 = vst [vmem:[#allocation10 + $0x60] sm:$0xff] %v1349_v38 }
 0x412   : > { %v1650_v39 = vpop.f32.mrb[78].mxu0 }
 0x413   : > { %v1254_v40 = vadd.f32 %v1650_v39, %v2470_v59  ;;  %v1248_v41 = vpop.f32.mrb[79].mxu0 }
 0x414   : > { %v1249_v42 = vadd.f32 %v2470_v59, %v1248_v41 }
 0x415   : > { %v1352_v43 = vmax.f32 %v1254_v40, 0.0 }
 0x416   : > { %v1351_v44 = vmax.f32 %v1249_v42, 0.0 }
 0x417   : > { %1384 = vst [vmem:[#allocation10 + $0x78] sm:$0xff] %v1352_v43 }
 0x418   : > { %1383 = vst [vmem:[#allocation10 + $0x70] sm:$0xff] %v1351_v44 }
 0x41a   : > { %v1653_v35 = vpop.f32.mrb[64].mxu1 }
 0x41b   : > { %v1264_v45 = vadd.f32 %v1653_v35, %v2470_v59  ;;  %v1258_v46 = vpop.f32.mrb[65].mxu1 }
 0x41c   : > { %v1259_v47 = vadd.f32 %v2470_v59, %v1258_v46 }
 0x41d   : > { %v1354_v48 = vmax.f32 %v1264_v45, 0.0 }
 0x41e   : > { %v1353_v49 = vmax.f32 %v1259_v47, 0.0 }
 0x41f   : > { %1386 = vst [vmem:[#allocation10 + $0x88] sm:$0xff] %v1354_v48 }
 0x420   : > { %1385 = vst [vmem:[#allocation10 + $0x80] sm:$0xff] %v1353_v49 }
 0x422   : > { %v1656_v50 = vpop.f32.mrb[66].mxu1 }
 0x423   : > { %v1274_v51 = vadd.f32 %v1656_v50, %v2470_v59  ;;  %v1268_v52 = vpop.f32.mrb[67].mxu1 }
 0x424   : > { %v1269_v53 = vadd.f32 %v2470_v59, %v1268_v52 }
 0x425   : > { %v1356_v54 = vmax.f32 %v1274_v51, 0.0 }
 0x426   : > { %v1355_v55 = vmax.f32 %v1269_v53, 0.0 }
 0x427   : > { %1388 = vst [vmem:[#allocation10 + $0x98] sm:$0xff] %v1356_v54 }
 0x428   : > { %1387 = vst [vmem:[#allocation10 + $0x90] sm:$0xff] %v1355_v55 }
 0x42a   : > { %v1659_v56 = vpop.f32.mrb[68].mxu1 }
 0x42b   : > { %v1284_v57 = vadd.f32 %v1659_v56, %v2470_v59  ;;  %v1278_v58 = vpop.f32.mrb[69].mxu1 }
 0x42c   : > { %v1279_v60 = vadd.f32 %v2470_v59, %v1278_v58 }
 0x42d   : > { %v1358_v61 = vmax.f32 %v1284_v57, 0.0 }
 0x42e   : > { %v1357_v62 = vmax.f32 %v1279_v60, 0.0 }
 0x42f   : > { %1390 = vst [vmem:[#allocation10 + $0xa8] sm:$0xff] %v1358_v61 }
 0x430   : > { %1389 = vst [vmem:[#allocation10 + $0xa0] sm:$0xff] %v1357_v62 }
 0x432   : > { %v1662_v63 = vpop.f32.mrb[70].mxu1 }
 0x433   : > { %v1294_v0 = vadd.f32 %v1662_v63, %v2470_v59  ;;  %v1288_v1 = vpop.f32.mrb[71].mxu1 }
 0x434   : > { %v1289_v2 = vadd.f32 %v2470_v59, %v1288_v1 }
 0x435   : > { %v1360_v3 = vmax.f32 %v1294_v0, 0.0 }
 0x436   : > { %v1359_v4 = vmax.f32 %v1289_v2, 0.0 }
 0x437   : > { %1392 = vst [vmem:[#allocation10 + $0xb8] sm:$0xff] %v1360_v3 }
 0x438   : > { %1391 = vst [vmem:[#allocation10 + $0xb0] sm:$0xff] %v1359_v4 }
 0x43a   : > { %v1665_v5 = vpop.f32.mrb[72].mxu1 }
 0x43b   : > { %v1304_v6 = vadd.f32 %v1665_v5, %v2470_v59  ;;  %v1298_v7 = vpop.f32.mrb[73].mxu1 }
 0x43c   : > { %v1299_v8 = vadd.f32 %v2470_v59, %v1298_v7 }
 0x43d   : > { %v1362_v9 = vmax.f32 %v1304_v6, 0.0 }
 0x43e   : > { %v1361_v10 = vmax.f32 %v1299_v8, 0.0 }
 0x43f   : > { %1394 = vst [vmem:[#allocation10 + $0xc8] sm:$0xff] %v1362_v9 }
 0x440   : > { %1393 = vst [vmem:[#allocation10 + $0xc0] sm:$0xff] %v1361_v10 }
 0x442   : > { %v1668_v11 = vpop.f32.mrb[74].mxu1 }
 0x443   : > { %v1314_v12 = vadd.f32 %v1668_v11, %v2470_v59  ;;  %v1308_v13 = vpop.f32.mrb[75].mxu1 }
 0x444   : > { %v1309_v14 = vadd.f32 %v2470_v59, %v1308_v13 }
 0x445   : > { %v1364_v15 = vmax.f32 %v1314_v12, 0.0 }
 0x446   : > { %v1363_v16 = vmax.f32 %v1309_v14, 0.0 }
 0x447   : > { %1396 = vst [vmem:[#allocation10 + $0xd8] sm:$0xff] %v1364_v15 }
 0x448   : > { %1395 = vst [vmem:[#allocation10 + $0xd0] sm:$0xff] %v1363_v16 }
 0x44a   : > { %v1671_v17 = vpop.f32.mrb[76].mxu1 }
 0x44b   : > { %v1324_v18 = vadd.f32 %v1671_v17, %v2470_v59  ;;  %v1318_v19 = vpop.f32.mrb[77].mxu1 }
 0x44c   : > { %v1319_v20 = vadd.f32 %v2470_v59, %v1318_v19 }
 0x44d   : > { %v1366_v21 = vmax.f32 %v1324_v18, 0.0 }
 0x44e   : > { %v1365_v22 = vmax.f32 %v1319_v20, 0.0 }
 0x44f   : > { %1398 = vst [vmem:[#allocation10 + $0xe8] sm:$0xff] %v1366_v21 }
 0x450   : > { %1397 = vst [vmem:[#allocation10 + $0xe0] sm:$0xff] %v1365_v22 }
 0x452   : > { %v1674_v23 = vpop.f32.mrb[78].mxu1 }
 0x453   : > { %v1334_v24 = vadd.f32 %v1674_v23, %v2470_v59  ;;  %v1328_v25 = vpop.f32.mrb[79].mxu1 }
 0x454   : > { %v1329_v26 = vadd.f32 %v2470_v59, %v1328_v25 }
 0x455   : > { %v1368_v27 = vmax.f32 %v1334_v24, 0.0 }
 0x456   : > { %v1367_v28 = vmax.f32 %v1329_v26, 0.0 }
 0x457   : > { %1400 = vst [vmem:[#allocation10 + $0xf8] sm:$0xff] %v1368_v27 }
 0x458   : > { %1399 = vst [vmem:[#allocation10 + $0xf0] sm:$0xff] %v1367_v28 }
 0x459   : > { %2095 = shalt.err (!%p2092_p2)
}
 0x45a   : > { %s2096_s20 = scalar_lea.hbm %s2572_s5, 4096 }
 0x45b   : > { %p2097_p7 = scmp.ne.s32.totalorder %s2572_s5, %s2096_s20  ;;  %p2102_p5 = scmp.lt.u32.totalorder %s2096_s20, %s2572_s5 }
 0x45d   : > { %p2098_p1 = pnand %p2097_p7, %p1862_p12 }
 0x45f   : > { %p2099_p4 = pneg %p2098_p1 }
 0x461   : > { %p2104_p8 = pnand %p2102_p5, %p2099_p4 }
 0x463   : > { %2107 = shalt.err (!%p2104_p8)
}
 0x464   : > { %1834 = dma.vmem_to_hbm [thread:$0]  (%p1862_p12), %s1408_s13, 4096, %s2572_s5, [#allocation4], %s2170_s14, %s2170_s14, %s2171_s8  }
 0x465   : > { %2137 = dma.done.wait (%p1862_p12), [#allocation4], 4096  }
 0x466   : > { %2139 = vsyncadd (%p1862_p12), [#allocation4], 4294963200 }
 0x467   : > { %2141 = dma.done.wait (%p1862_p12), [#allocation12], 4096  }
 0x468   : > { %2143 = vsyncadd (%p1862_p12), [#allocation12], 4294963200 }
 0x469 PF: > { %p21_p6 = scmp.ge.s32.totalorder %s2333_s17, 4   ;;  %s2589_s21 = smov %s2150_s22 }
 0x46a   : > { %s2590_s22 = smov %s2154_s23  ;;  %s2591_s23 = smov %s2343_s19 }
 0x46b   : > { %s2592_s24 = smov %s2333_s17  ;;  %23 = sbr.rel (!%p21_p6) target bundleno = 7 (0x7), region = 105 }
 0x472   :  { %1440 = vsyncpa [#allocation3], 1 }
 0x473   :  { %1442 = vsyncpa [#allocation3 + $0x1], 1 }
 0x474   :  { %1443 = vsyncpa [#allocation6], 1 }
 0x475   :  { %1444 = vsyncpa [#allocation9], 1 }
 0x476   :  { %1446 = vsyncpa [#allocation9 + $0x1], 1 }
 0x477   :  { %1447 = vsyncpa [#allocation4], 1 }
 0x478   :  { %1449 = vsyncpa [#allocation4 + $0x1], 1 }
 0x479   :  { %1450 = vsyncpa [#allocation12], 1 }

// kernel: tpu_custom_call.1
= control target key start
LH: loop header
LB: loop body
LE: loop exit
PB: predicated region body
PF: predicated region fallthrough
CT: control target
= control target key end

     0   :  { %12 = vsyncpa [#allocation3], 0  ;;  %s2567_s0 = inlined_call_operand.hbm [shape: f32[256,256], index: 0, kind: input, shape index: {}]   ;;  %s2568_s1 = inlined_call_operand.hbm [shape: f32[256,256], index: 1, kind: input, shape index: {}]   ;;  %s2569_s2 = inlined_call_operand.hbm [shape: f32[256,128], index: 2, kind: input, shape index: {}]   ;;  %s2570_s3 = inlined_call_operand.hbm [shape: f32[2,128,128], index: 3, kind: input, shape index: {}]   ;;  %s2571_s4 = inlined_call_operand.vmem [shape: f32[2,1,128], index: 4, kind: input, shape index: {}]   ;;  %s2572_s5 = inlined_call_operand.hbm [shape: f32[256,128], index: 5, kind: output, shape index: {0}]   ;;  %s2573_s6 = inlined_call_operand.hbm [shape: f32[256,128], index: 6, kind: output, shape index: {1}]  }
   0x1   :  { %13 = vsyncpa [#allocation6], 0 }
   0x2   :  { %14 = vsyncpa [#allocation9], 0 }
   0x3   :  { %16 = vsyncpa [#allocation9 + $0x1], 0 }
   0x4   :  { %17 = vsyncpa [#allocation4], 0 }
   0x5   :  { %18 = vsyncpa [#allocation12], 0  ;;  %s2208_s21 = smov 0   ;;  %s2210_s22 = smov 0  }
   0x6   :  { %s2212_s23 = smov 0   ;;  %s2214_s24 = smov 0  }
   0x7 LB: > { %s2227_s25 = sadd.s32 4294967295, %s2158_s24   ;;  %p107_p0 = scmp.ne.s32.totalorder %s2150_s22, %s2146_s21  ;;  %s2158_s24 = sphi %s2214_s24, %s2592_s24   ;;  %s2154_s23 = sphi %s2212_s23, %s2591_s23   ;;  %s2150_s22 = sphi %s2210_s22, %s2590_s22   ;;  %s2146_s21 = sphi %s2208_s21, %s2589_s21  }
   0x8   : > { %p2574_p1 = scmp.eq.s32.totalorder %s2227_s25, 0  ;;  %p1525_p2 = scmp.ge.s32.totalorder %s2158_s24, 1 }
   0x9   : > { %p186_p3 = scmp.lt.s32.totalorder %s2158_s24, 3  ;;  %s2160_s28 = smov [#allocation5]  }
   0xa   : > { %p2236_p5 = por %p2574_p1, %p107_p0  ;;  %s211_s29 = sshll.u32 %s2160_s28, 4  ;;  %s2246_s29 = int_to_ptr.vmem [resolvable:$true] %s211_s29 }
   0xb   : > { %p2240_p6 = pnand %p1525_p2, %p186_p3  ;;  %s2161_s7 = smov [#allocation2]  }
   0xc   : > { %s2577_s26 = scalar_select %p2236_p5, 1, 0 }
   0xd   : > { %s2578_s27 = scalar_select %p2240_p6, 1, 0 }
   0xe   : > { %p1841_p7 = pneg %p2240_p6  ;;  %s198_s8 = sshll.u32 %s2161_s7, 4  ;;  %s2254_s8 = int_to_ptr.vmem [resolvable:$true] %s198_s8 }
   0xf   : > { %s2162_s9 = smov [#allocation7]   ;;  %s1942_s13 = scalar_lea.hbm %s2568_s1, 8192 }
  0x10   : > { %p2250_p8 = pnand %p1841_p7, %p2574_p1  ;;  %s2256_s10 = sshll.u32 %s2162_s9, 4  ;;  %s225_s10 = int_to_ptr.vmem [resolvable:$true] %s2256_s10 }
  0x11   : > { %p1943_p9 = scmp.ne.s32.totalorder %s2568_s1, %s1942_s13  ;;  %p1949_p13 = scmp.lt.u32.totalorder %s1942_s13, %s2568_s1 }
  0x12   : > { %p2266_p10 = pneg %p2250_p8 }
  0x14   : > { %p1945_p11 = pnand %p2266_p10, %p1943_p9 }
  0x16   : > { %p1946_p12 = pneg %p1945_p11 }
  0x18   : > { %p1951_p0 = pnand %p1949_p13, %p1946_p12 }
  0x1a   : > { %1954 = shalt.err (!%p1951_p0)
}
  0x1b   : > { %s1955_s19 = scalar_lea.vmem %s2246_s29, 8192  ;;  %p1963_p4 = scmp.lt.s32.totalorder %s2246_s29, %s2246_s29 }
  0x1c   : > { %p1956_p2 = scmp.ne.s32.totalorder %s2246_s29, %s1955_s19  ;;  %p1964_p1 = scmp.lt.s32.totalorder %s1955_s19, %s1955_s19 }
  0x1e   : > { %p1958_p3 = pnand %p1956_p2, %p2266_p10  ;;  %p1965_p9 = por %p1964_p1, %p1963_p4 }
  0x20   : > { %p1959_p7 = pneg %p1958_p3 }
  0x22   : > { %p1966_p11 = pnand %p1965_p9, %p1959_p7 }
  0x24   : > { %1969 = shalt.err (!%p1966_p11)
}
  0x25   : > { %s2163_s20 = smov 256   ;;  %s2164_s21 = smov 16  }
  0x26   : > { %1847 = dma.hbm_to_vmem [thread:$0]  (!%p2250_p8), %s2568_s1, 8192, %s2246_s29, [#allocation6], %s2163_s20, %s2163_s20, %s2164_s21  }
  0x27   : > { %s1970_s12 = scalar_lea.hbm %s2567_s0, 8192 }
  0x28   : > { %p1971_p1 = scmp.ne.s32.totalorder %s2567_s0, %s1970_s12  ;;  %p1977_p13 = scmp.lt.u32.totalorder %s1970_s12, %s2567_s0 }
  0x2a   : > { %p1973_p4 = pnand %p1971_p1, %p2266_p10 }
  0x2c   : > { %p1974_p12 = pneg %p1973_p4 }
  0x2e   : > { %p1979_p0 = pnand %p1977_p13, %p1974_p12 }
  0x30   : > { %1982 = shalt.err (!%p1979_p0)
}
  0x31   : > { %s1983_s29 = scalar_lea.vmem %s2254_s8, 8192  ;;  %p1991_p9 = scmp.lt.s32.totalorder %s2254_s8, %s2254_s8 }
  0x32   : > { %p1984_p2 = scmp.ne.s32.totalorder %s2254_s8, %s1983_s29  ;;  %p1992_p11 = scmp.lt.s32.totalorder %s1983_s29, %s1983_s29 }
  0x34   : > { %p1986_p3 = pnand %p1984_p2, %p2266_p10  ;;  %p1993_p1 = por %p1992_p11, %p1991_p9 }
  0x36   : > { %p1987_p7 = pneg %p1986_p3 }
  0x38   : > { %p1994_p4 = pnand %p1993_p1, %p1987_p7 }
  0x3a   : > { %1997 = shalt.err (!%p1994_p4)
}
  0x3b   : > { %1844 = dma.hbm_to_vmem [thread:$0]  (!%p2250_p8), %s2567_s0, 8192, %s2254_s8, [#allocation3], %s2163_s20, %s2163_s20, %s2164_s21  }
  0x3c   : > { %s1998_s9 = scalar_lea.hbm %s2569_s2, 4096 }
  0x3d   : > { %p1999_p12 = scmp.ne.s32.totalorder %s2569_s2, %s1998_s9  ;;  %p2005_p2 = scmp.lt.u32.totalorder %s1998_s9, %s2569_s2 }
  0x3f   : > { %p2001_p13 = pnand %p1999_p12, %p2266_p10 }
  0x41   : > { %p2002_p0 = pneg %p2001_p13 }
  0x43   : > { %p2007_p3 = pnand %p2005_p2, %p2002_p0 }
  0x45   : > { %2010 = shalt.err (!%p2007_p3)
}
  0x46   : > { %s2011_s15 = scalar_lea.vmem %s225_s10, 4096  ;;  %p2019_p1 = scmp.lt.s32.totalorder %s225_s10, %s225_s10 }
  0x47   : > { %p2012_p7 = scmp.ne.s32.totalorder %s225_s10, %s2011_s15  ;;  %p2020_p4 = scmp.lt.s32.totalorder %s2011_s15, %s2011_s15 }
  0x49   : > { %p2014_p9 = pnand %p2012_p7, %p2266_p10  ;;  %p2021_p5 = por %p2020_p4, %p2019_p1 }
  0x4b   : > { %p2015_p11 = pneg %p2014_p9 }
  0x4d   : > { %p2022_p6 = pnand %p2021_p5, %p2015_p11 }
  0x4f   : > { %2025 = shalt.err (!%p2022_p6)
}
  0x50   : > { %s2165_s8 = smov 128   ;;  %s2166_s16 = smov 8  }
  0x51   : > { %1850 = dma.hbm_to_vmem [thread:$0]  (!%p2250_p8), %s2569_s2, 4096, %s225_s10, [#allocation6], %s2165_s8, %s2165_s8, %s2166_s16  }
  0x52   : > { %s2333_s17 = sadd.s32 1, %s2158_s24   ;;  %s94_s18 = sadd.s32 1, %s2154_s23 }
  0x53   : > { %s91_s29 = ssub.s32 %s2158_s24, %s2333_s17  ;;  %p101_p6 = scmp.ne.s32.totalorder %s2154_s23, %s2150_s22 }
  0x54   : > { %p92_p5 = scmp.eq.s32.totalorder %s91_s29, 0  ;;  %p102_p10 = scmp.eq.s32.totalorder %s2158_s24, 0 }
  0x55   : > { %p1858_p12 = scmp.lt.s32.totalorder %s2158_s24, 2  ;;  %s238_s30 = sand.u32 1, %s2154_s23  }
  0x56   : > { %s2343_s19 = scalar_select %p92_p5, %s2154_s23, %s94_s18  }
  0x57   : > { %p103_p13 = por %p102_p10, %p101_p6  ;;  %s1530_s28 = sshll.u32 %s238_s30, 7 }
  0x58   : > { %s1546_s7 = sshll.u32 %s2158_s24, 11  ;;  %s242_s10 = scalar_lea.vmem [#allocation8], %s1530_s28 }
  0x59   : > { %s2350_s12 = scalar_lea.hbm %s2570_s3, %s1546_s7  ;;  %s249_s13 = sshll.u32 %s242_s10, 4  ;;  %s2352_s13 = int_to_ptr.vmem [resolvable:$true] %s249_s13 }
  0x5a   : > { %p2354_p8 = pnand %p1858_p12, %p103_p13  ;;  %s2358_s24 = scalar_lea.sflag [#allocation9], %s238_s30 }
  0x5b   : > { %s2026_s15 = scalar_lea.hbm %s2350_s12, 2048  ;;  %s2031_s29 = scalar_lea.hbm %s2570_s3, 4096 }
  0x5c   : > { %p2027_p0 = scmp.ne.s32.totalorder %s2350_s12, %s2026_s15  ;;  %p2028_p2 = pneg %p2354_p8 }
  0x5d   : > { %p2032_p9 = scmp.lt.u32.totalorder %s2350_s12, %s2570_s3  ;;  %p2033_p11 = scmp.lt.u32.totalorder %s2031_s29, %s2026_s15 }
  0x5e   : > { %p2029_p3 = pnand %p2028_p2, %p2027_p0  ;;  %p2035_p4 = scmp.lt.u32.totalorder %s2026_s15, %s2350_s12 }
  0x5f   : > { %p2034_p1 = por %p2033_p11, %p2032_p9 }
  0x60   : > { %p2030_p7 = pneg %p2029_p3 }
  0x61   : > { %p2036_p5 = por %p2035_p4, %p2034_p1 }
  0x63   : > { %p2037_p6 = pnand %p2036_p5, %p2030_p7 }
  0x65   : > { %2040 = shalt.err (!%p2037_p6)
}
  0x66   : > { %s2041_s30 = scalar_lea.vmem %s2352_s13, 2048  ;;  %s2167_s7 = smov [#allocation8]  }
  0x67   : > { %p2042_p10 = scmp.ne.s32.totalorder %s2352_s13, %s2041_s30  ;;  %s2046_s9 = sshll.u32 %s2167_s7, 4  ;;  %s2047_s9 = int_to_ptr.vmem [resolvable:$false] %s2046_s9 }
  0x68   : > { %s2048_s11 = scalar_lea.vmem %s2047_s9, 4096  ;;  %p2049_p0 = scmp.lt.s32.totalorder %s2352_s13, %s2047_s9 }
  0x69   : > { %p2044_p12 = pnand %p2042_p10, %p2028_p2  ;;  %p2050_p3 = scmp.lt.s32.totalorder %s2048_s11, %s2041_s30 }
  0x6b   : > { %p2045_p13 = pneg %p2044_p12  ;;  %p2051_p9 = por %p2050_p3, %p2049_p0 }
  0x6d   : > { %p2052_p11 = pnand %p2051_p9, %p2045_p13 }
  0x6f   : > { %2055 = shalt.err (!%p2052_p11)
}
  0x70   : > { %1854 = dma.hbm_to_vmem [thread:$0]  (!%p2354_p8), %s2350_s12, 2048, %s2352_s13, %s2358_s24, %s2165_s8, %s2165_s8, %s2166_s16  }
  0x71   : > { %p2582_p2 = scmp.ne.s32.totalorder %s2578_s27, 0 }
  0x72   : > { %p2583_p7 = scmp.eq.s32.totalorder (!%p2582_p2), %s2227_s25, 0 }
  0x73   : > { %267 = sbr.rel (%p2582_p2) target bundleno = 1129 (0x469), region = 40 }
  0x7a   : > { %2125 = dma.done.wait (%p2583_p7), [#allocation3], 8192   ;;  %p2584_p1 = pmov %p2583_p7 }
  0x7c   : > { %2127 = vsyncadd (%p2584_p1), [#allocation3], 4294959104  ;;  %p2585_p4 = pmov %p2584_p1 }
  0x7d   : > { %p2586_p5 = pmov %p2584_p1 }
  0x7e   : > { %2129 = dma.done.wait (%p2585_p4), [#allocation6], 12288  }
  0x7f   : > { %2131 = vsyncadd (%p2586_p5), [#allocation6], 4294955008  ;;  %s281_s10 = sand.u32 1, %s2150_s22   ;;  %p2587_p8 = scmp.ne.s32.totalorder %s2577_s26, 0 }
  0x80   : > { %s1537_s14 = sshll.u32 %s281_s10, 7  ;;  %s282_s8 = scalar_lea.sflag [#allocation9], %s281_s10 }
  0x81   : > { %s2400_s16 = scalar_lea.vmem [#allocation8], %s1537_s14 }
  0x82   : > { %2133 = dma.done.wait (%p2587_p8), %s282_s8, 2048  }
  0x83   : > { %2135 = vsyncadd (%p2587_p8), %s282_s8, 4294965248  ;;  %p312_p6 = scmp.lt.s32.totalorder %s2227_s25, 1  ;;  %p2588_p10 = scmp.ne.s32.totalorder %s2227_s25, 0 }
  0x84   : > { %v319_v0 = vld [vmem:[#allocation7] sm:$0xff] (!%p2588_p10)  ;;  %v320_v1 = vld [vmem:[#allocation7 + $0x8] sm:$0xff] (!%p2588_p10)  ;;  %v321_v2 = vld [vmem:[#allocation7 + $0x10] sm:$0xff] (!%p2588_p10) }
  0x85   : > { %s2408_s27 = scalar_select %p312_p6, %s2227_s25, 1 }
  0x86   : > { %318 = sbr.rel (%p2588_p10) target bundleno = 150 (0x96), region = 60  ;;  %351 = vst [vmem:[#allocation10] sm:$0xff] (!%p2588_p10), %v319_v0  ;;  %352 = vst [vmem:[#allocation10 + $0x8] sm:$0xff] (!%p2588_p10), %v320_v1  ;;  %v322_v3 = vld [vmem:[#allocation7 + $0x18] sm:$0xff] (!%p2588_p10)  ;;  %v323_v4 = vld [vmem:[#allocation7 + $0x20] sm:$0xff] (!%p2588_p10) }
  0x87   : > { %s314_s24 = scalar_lea.vmem %s2571_s4, %s2408_s27  ;;  %353 = vst [vmem:[#allocation10 + $0x10] sm:$0xff] (!%p2588_p10), %v321_v2  ;;  %v324_v5 = vld [vmem:[#allocation7 + $0x28] sm:$0xff] (!%p2588_p10)  ;;  %354 = vst [vmem:[#allocation10 + $0x18] sm:$0xff] (!%p2588_p10), %v322_v3  ;;  %v325_v6 = vld [vmem:[#allocation7 + $0x30] sm:$0xff] (!%p2588_p10) }
  0x88   : > { %355 = vst [vmem:[#allocation10 + $0x20] sm:$0xff] (!%p2588_p10), %v323_v4  ;;  %356 = vst [vmem:[#allocation10 + $0x28] sm:$0xff] (!%p2588_p10), %v324_v5  ;;  %v326_v7 = vld [vmem:[#allocation7 + $0x38] sm:$0xff] (!%p2588_p10)  ;;  %v327_v8 = vld [vmem:[#allocation7 + $0x40] sm:$0xff] (!%p2588_p10) }
  0x89   : > { %357 = vst [vmem:[#allocation10 + $0x30] sm:$0xff] (!%p2588_p10), %v325_v6  ;;  %358 = vst [vmem:[#allocation10 + $0x38] sm:$0xff] (!%p2588_p10), %v326_v7  ;;  %v328_v9 = vld [vmem:[#allocation7 + $0x48] sm:$0xff] (!%p2588_p10)  ;;  %v329_v10 = vld [vmem:[#allocation7 + $0x50] sm:$0xff] (!%p2588_p10) }
  0x8a   : > { %359 = vst [vmem:[#allocation10 + $0x40] sm:$0xff] (!%p2588_p10), %v327_v8  ;;  %v330_v11 = vld [vmem:[#allocation7 + $0x58] sm:$0xff] (!%p2588_p10)  ;;  %360 = vst [vmem:[#allocation10 + $0x48] sm:$0xff] (!%p2588_p10), %v328_v9  ;;  %v331_v12 = vld [vmem:[#allocation7 + $0x60] sm:$0xff] (!%p2588_p10) }
  0x8b   : > { %361 = vst [vmem:[#allocation10 + $0x50] sm:$0xff] (!%p2588_p10), %v329_v10  ;;  %362 = vst [vmem:[#allocation10 + $0x58] sm:$0xff] (!%p2588_p10), %v330_v11  ;;  %v332_v13 = vld [vmem:[#allocation7 + $0x68] sm:$0xff] (!%p2588_p10)  ;;  %v333_v14 = vld [vmem:[#allocation7 + $0x70] sm:$0xff] (!%p2588_p10) }
  0x8c   : > { %363 = vst [vmem:[#allocation10 + $0x60] sm:$0xff] (!%p2588_p10), %v331_v12  ;;  %364 = vst [vmem:[#allocation10 + $0x68] sm:$0xff] (!%p2588_p10), %v332_v13  ;;  %v334_v15 = vld [vmem:[#allocation7 + $0x78] sm:$0xff] (!%p2588_p10)  ;;  %v335_v16 = vld [vmem:[#allocation7 + $0x80] sm:$0xff] (!%p2588_p10) }
  0x8d   : > { %365 = vst [vmem:[#allocation10 + $0x70] sm:$0xff] %v333_v14  ;;  %v336_v17 = vld [vmem:[#allocation7 + $0x88] sm:$0xff]  ;;  %366 = vst [vmem:[#allocation10 + $0x78] sm:$0xff] %v334_v15  ;;  %v337_v18 = vld [vmem:[#allocation7 + $0x90] sm:$0xff] }
  0x8e   : > { %367 = vst [vmem:[#allocation10 + $0x80] sm:$0xff] %v335_v16  ;;  %368 = vst [vmem:[#allocation10 + $0x88] sm:$0xff] %v336_v17  ;;  %v338_v19 = vld [vmem:[#allocation7 + $0x98] sm:$0xff]  ;;  %v339_v20 = vld [vmem:[#allocation7 + $0xa0] sm:$0xff] }
  0x8f   : > { %369 = vst [vmem:[#allocation10 + $0x90] sm:$0xff] %v337_v18  ;;  %370 = vst [vmem:[#allocation10 + $0x98] sm:$0xff] %v338_v19  ;;  %v340_v21 = vld [vmem:[#allocation7 + $0xa8] sm:$0xff]  ;;  %v341_v22 = vld [vmem:[#allocation7 + $0xb0] sm:$0xff] }
  0x90   : > { %371 = vst [vmem:[#allocation10 + $0xa0] sm:$0xff] %v339_v20  ;;  %v342_v23 = vld [vmem:[#allocation7 + $0xb8] sm:$0xff]  ;;  %372 = vst [vmem:[#allocation10 + $0xa8] sm:$0xff] %v340_v21  ;;  %v343_v24 = vld [vmem:[#allocation7 + $0xc0] sm:$0xff] }
  0x91   : > { %373 = vst [vmem:[#allocation10 + $0xb0] sm:$0xff] %v341_v22  ;;  %374 = vst [vmem:[#allocation10 + $0xb8] sm:$0xff] %v342_v23  ;;  %v344_v25 = vld [vmem:[#allocation7 + $0xc8] sm:$0xff]  ;;  %v345_v26 = vld [vmem:[#allocation7 + $0xd0] sm:$0xff] }
  0x92   : > { %375 = vst [vmem:[#allocation10 + $0xc0] sm:$0xff] %v343_v24  ;;  %376 = vst [vmem:[#allocation10 + $0xc8] sm:$0xff] %v344_v25  ;;  %v346_v27 = vld [vmem:[#allocation7 + $0xd8] sm:$0xff]  ;;  %v347_v28 = vld [vmem:[#allocation7 + $0xe0] sm:$0xff] }
  0x93   : > { %377 = vst [vmem:[#allocation10 + $0xd0] sm:$0xff] %v345_v26  ;;  %v348_v29 = vld [vmem:[#allocation7 + $0xe8] sm:$0xff]  ;;  %378 = vst [vmem:[#allocation10 + $0xd8] sm:$0xff] %v346_v27  ;;  %v349_v30 = vld [vmem:[#allocation7 + $0xf0] sm:$0xff] }
  0x94   : > { %379 = vst [vmem:[#allocation10 + $0xe0] sm:$0xff] %v347_v28  ;;  %380 = vst [vmem:[#allocation10 + $0xe8] sm:$0xff] %v348_v29  ;;  %v350_v31 = vld [vmem:[#allocation7 + $0xf8] sm:$0xff] }
  0x95   : > { %381 = vst [vmem:[#allocation10 + $0xf0] sm:$0xff] %v349_v30  ;;  %382 = vst [vmem:[#allocation10 + $0xf8] sm:$0xff] %v350_v31 }
  0x96 PF: > { %v383_v32 = vld [vmem:[#allocation10] sm:$0xff]  ;;  %v384_v33 = vld [vmem:[#allocation10 + $0x8] sm:$0xff]  ;;  %v2168_v35 = vmov 0.0|0.0   ;;  %v401_v61 = vld [vmem:[#allocation10 + $0x90] sm:$0xff]  ;;  %p1862_p12 = scmp.eq.s32.totalorder %s2227_s25, 1  ;;  %s2169_s20 = smov [#allocation11]  }
  0x97   : > { %v385_v34 = vld [vmem:[#allocation10 + $0x10] sm:$0xff]  ;;  %1675 = vmatprep.subr.bf16.mxu0 %v2168_v35  ;;  %v1676_v36 = vpack.c.bf16 %v384_v33, %v383_v32  ;;  %v386_v37 = vld [vmem:[#allocation10 + $0x18] sm:$0xff]  ;;  %1723 = vmatprep.subr.bf16.mxu1 %v2168_v35  ;;  %v416_v44 = vld [vmem:[#allocation2 + $0x8] sm:$0xff]  ;;  %s1420_s21 = sshll.u32 %s2169_s20, 4  ;;  %s1421_s21 = int_to_ptr.vmem [resolvable:$true] %s1420_s21 }
  0x98   : > { %v1679_v38 = vpack.c.bf16 %v386_v37, %v385_v34  ;;  %v387_v39 = vld [vmem:[#allocation10 + $0x20] sm:$0xff]  ;;  %v388_v40 = vld [vmem:[#allocation10 + $0x28] sm:$0xff]  ;;  %543 = vmatprep.mubr.f32.mxu0 %v416_v44  ;;  %v402_v62 = vld [vmem:[#allocation10 + $0x98] sm:$0xff]  ;;  %s2056_s29 = scalar_lea.vmem %s1421_s21, 4096  ;;  %p2063_p9 = scmp.lt.s32.totalorder %s1421_s21, %s1421_s21 }
  0x99   : > { %1677 = vmatpush1.bf16.msra.mxu0 %v1676_v36  ;;  %v1682_v41 = vpack.c.bf16 %v388_v40, %v387_v39  ;;  %v389_v42 = vld [vmem:[#allocation10 + $0x30] sm:$0xff]  ;;  %v390_v43 = vld [vmem:[#allocation10 + $0x38] sm:$0xff]  ;;  %v399_v58 = vld [vmem:[#allocation10 + $0x80] sm:$0xff]  ;;  %v1703_v63 = vpack.c.bf16 %v402_v62, %v401_v61  ;;  %p2057_p13 = scmp.ne.s32.totalorder %s1421_s21, %s2056_s29  ;;  %p2064_p11 = scmp.lt.s32.totalorder %s2056_s29, %s2056_s29 }
  0x9a   : > { %1678 = vmatprep.subr.bf16.mxu0 %v2168_v35  ;;  %v1685_v45 = vpack.c.bf16 %v390_v43, %v389_v42  ;;  %v391_v46 = vld [vmem:[#allocation10 + $0x40] sm:$0xff]  ;;  %v392_v47 = vld [vmem:[#allocation10 + $0x48] sm:$0xff]  ;;  %v405_v3 = vld [vmem:[#allocation10 + $0xb0] sm:$0xff] }
  0x9b   : > { %v1688_v48 = vpack.c.bf16 %v392_v47, %v391_v46  ;;  %v393_v49 = vld [vmem:[#allocation10 + $0x50] sm:$0xff]  ;;  %v394_v50 = vld [vmem:[#allocation10 + $0x58] sm:$0xff]  ;;  %v400_v59 = vld [vmem:[#allocation10 + $0x88] sm:$0xff]  ;;  %p2058_p0 = pnand %p2057_p13, %p1862_p12  ;;  %p2065_p2 = por %p2064_p11, %p2063_p9 }
  0x9c   : > { %v1691_v51 = vpack.c.bf16 %v394_v50, %v393_v49  ;;  %v395_v52 = vld [vmem:[#allocation10 + $0x60] sm:$0xff]  ;;  %v396_v53 = vld [vmem:[#allocation10 + $0x68] sm:$0xff]  ;;  %v1700_v60 = vpack.c.bf16 %v400_v59, %v399_v58  ;;  %v406_v4 = vld [vmem:[#allocation10 + $0xb8] sm:$0xff] }
  0x9d   : > { %1680 = vmatpush1.bf16.msra.mxu0 %v1679_v38  ;;  %v1694_v54 = vpack.c.bf16 %v396_v53, %v395_v52  ;;  %v397_v55 = vld [vmem:[#allocation10 + $0x70] sm:$0xff]  ;;  %v398_v56 = vld [vmem:[#allocation10 + $0x78] sm:$0xff]  ;;  %v403_v0 = vld [vmem:[#allocation10 + $0xa0] sm:$0xff]  ;;  %v1709_v5 = vpack.c.bf16 %v406_v4, %v405_v3  ;;  %p2059_p3 = pneg %p2058_p0 }
  0x9e   : > { %1681 = vmatprep.subr.bf16.mxu0 %v2168_v35  ;;  %v1697_v57 = vpack.c.bf16 %v398_v56, %v397_v55  ;;  %v404_v1 = vld [vmem:[#allocation10 + $0xa8] sm:$0xff]  ;;  %v407_v6 = vld [vmem:[#allocation10 + $0xc0] sm:$0xff]  ;;  %v409_v9 = vld [vmem:[#allocation10 + $0xd0] sm:$0xff] }
  0x9f   : > { %v1706_v2 = vpack.c.bf16 %v404_v1, %v403_v0  ;;  %v408_v7 = vld [vmem:[#allocation10 + $0xc8] sm:$0xff]  ;;  %v410_v10 = vld [vmem:[#allocation10 + $0xd8] sm:$0xff]  ;;  %v411_v12 = vld [vmem:[#allocation10 + $0xe0] sm:$0xff]  ;;  %p2066_p7 = pnand %p2065_p2, %p2059_p3 }
  0xa0   : > { %v1712_v8 = vpack.c.bf16 %v408_v7, %v407_v6  ;;  %v1715_v11 = vpack.c.bf16 %v410_v10, %v409_v9  ;;  %v412_v13 = vld [vmem:[#allocation10 + $0xe8] sm:$0xff]  ;;  %v413_v15 = vld [vmem:[#allocation10 + $0xf0] sm:$0xff]  ;;  %v414_v16 = vld [vmem:[#allocation10 + $0xf8] sm:$0xff] }
  0xa1   : > { %1683 = vmatpush1.bf16.msra.mxu0 %v1682_v41  ;;  %v1718_v14 = vpack.c.bf16 %v412_v13, %v411_v12  ;;  %v1721_v17 = vpack.c.bf16 %v414_v16, %v413_v15  ;;  %v415_v18 = vld [vmem:[#allocation2] sm:$0xff]  ;;  %v418_v19 = vld [vmem:[#allocation2 + $0x18] sm:$0xff]  ;;  %v417_v20 = vld [vmem:[#allocation2 + $0x10] sm:$0xff] }
  0xa2   : > { %1684 = vmatprep.subr.bf16.mxu0 %v2168_v35  ;;  %v420_v21 = vld [vmem:[#allocation2 + $0x28] sm:$0xff]  ;;  %v419_v22 = vld [vmem:[#allocation2 + $0x20] sm:$0xff]  ;;  %v422_v23 = vld [vmem:[#allocation2 + $0x38] sm:$0xff] }
  0xa3   : > { %v421_v24 = vld [vmem:[#allocation2 + $0x30] sm:$0xff]  ;;  %v424_v25 = vld [vmem:[#allocation2 + $0x48] sm:$0xff]  ;;  %v423_v26 = vld [vmem:[#allocation2 + $0x40] sm:$0xff] }
  0xa4   : > { %v426_v27 = vld [vmem:[#allocation2 + $0x58] sm:$0xff]  ;;  %v425_v28 = vld [vmem:[#allocation2 + $0x50] sm:$0xff]  ;;  %v428_v29 = vld [vmem:[#allocation2 + $0x68] sm:$0xff] }
  0xa5   : > { %1686 = vmatpush1.bf16.msra.mxu0 %v1685_v45  ;;  %v427_v30 = vld [vmem:[#allocation2 + $0x60] sm:$0xff]  ;;  %v430_v31 = vld [vmem:[#allocation2 + $0x78] sm:$0xff]  ;;  %v429_v32 = vld [vmem:[#allocation2 + $0x70] sm:$0xff] }
  0xa6   : > { %1687 = vmatprep.subr.bf16.mxu0 %v2168_v35  ;;  %v432_v33 = vld [vmem:[#allocation2 + $0x88] sm:$0xff]  ;;  %v431_v34 = vld [vmem:[#allocation2 + $0x80] sm:$0xff]  ;;  %v434_v36 = vld [vmem:[#allocation2 + $0x98] sm:$0xff] }
  0xa7   : > { %v433_v37 = vld [vmem:[#allocation2 + $0x90] sm:$0xff]  ;;  %v436_v38 = vld [vmem:[#allocation2 + $0xa8] sm:$0xff]  ;;  %v435_v39 = vld [vmem:[#allocation2 + $0xa0] sm:$0xff] }
  0xa8   : > { %v438_v40 = vld [vmem:[#allocation2 + $0xb8] sm:$0xff]  ;;  %v437_v41 = vld [vmem:[#allocation2 + $0xb0] sm:$0xff]  ;;  %v440_v42 = vld [vmem:[#allocation2 + $0xc8] sm:$0xff] }
  0xa9   : > { %1689 = vmatpush1.bf16.msra.mxu0 %v1688_v48  ;;  %v439_v43 = vld [vmem:[#allocation2 + $0xc0] sm:$0xff]  ;;  %v442_v44 = vld [vmem:[#allocation2 + $0xd8] sm:$0xff]  ;;  %v441_v45 = vld [vmem:[#allocation2 + $0xd0] sm:$0xff] }
  0xaa   : > { %1690 = vmatprep.subr.bf16.mxu0 %v2168_v35  ;;  %v444_v46 = vld [vmem:[#allocation2 + $0xe8] sm:$0xff]  ;;  %v443_v47 = vld [vmem:[#allocation2 + $0xe0] sm:$0xff]  ;;  %v446_v48 = vld [vmem:[#allocation2 + $0xf8] sm:$0xff] }
  0xab   : > { %v445_v49 = vld [vmem:[#allocation2 + $0xf0] sm:$0xff]  ;;  %v448_v50 = vld [vmem:[#allocation2 + $0x108] sm:$0xff]  ;;  %v450_v52 = vld [vmem:[#allocation2 + $0x118] sm:$0xff] }
  0xac   : > { %v449_v53 = vld [vmem:[#allocation2 + $0x110] sm:$0xff]  ;;  %v451_v55 = vld [vmem:[#allocation2 + $0x120] sm:$0xff]  ;;  %v454_v56 = vld [vmem:[#allocation2 + $0x138] sm:$0xff] }
  0xad   : > { %1692 = vmatpush1.bf16.msra.mxu0 %v1691_v51  ;;  %v447_v51 = vld [vmem:[#allocation2 + $0x100] sm:$0xff]  ;;  %v456_v58 = vld [vmem:[#allocation2 + $0x148] sm:$0xff]  ;;  %v457_v61 = vld [vmem:[#allocation2 + $0x150] sm:$0xff] }
  0xae   : > { %1693 = vmatprep.subr.bf16.mxu0 %v2168_v35  ;;  %v455_v59 = vld [vmem:[#allocation2 + $0x140] sm:$0xff]  ;;  %v460_v62 = vld [vmem:[#allocation2 + $0x168] sm:$0xff]  ;;  %v462_v0 = vld [vmem:[#allocation2 + $0x178] sm:$0xff] }
  0xaf   : > { %v461_v1 = vld [vmem:[#allocation2 + $0x170] sm:$0xff]  ;;  %v463_v3 = vld [vmem:[#allocation2 + $0x180] sm:$0xff]  ;;  %v466_v4 = vld [vmem:[#allocation2 + $0x198] sm:$0xff] }
  0xb0   : > { %v468_v6 = vld [vmem:[#allocation2 + $0x1a8] sm:$0xff]  ;;  %v467_v7 = vld [vmem:[#allocation2 + $0x1a0] sm:$0xff]  ;;  %v469_v9 = vld [vmem:[#allocation2 + $0x1b0] sm:$0xff] }
  0xb1   : > { %1695 = vmatpush1.bf16.msra.mxu0 %v1694_v54  ;;  %v452_v54 = vld [vmem:[#allocation2 + $0x128] sm:$0xff]  ;;  %v474_v12 = vld [vmem:[#allocation2 + $0x1d8] sm:$0xff]  ;;  %v473_v13 = vld [vmem:[#allocation2 + $0x1d0] sm:$0xff] }
  0xb2   : > { %1696 = vmatprep.subr.bf16.mxu0 %v2168_v35  ;;  %v472_v10 = vld [vmem:[#allocation2 + $0x1c8] sm:$0xff]  ;;  %v475_v15 = vld [vmem:[#allocation2 + $0x1e0] sm:$0xff]  ;;  %v478_v16 = vld [vmem:[#allocation2 + $0x1f8] sm:$0xff] }
  0xb5   : > { %1698 = vmatpush1.bf16.msra.mxu0 %v1697_v57  ;;  %v453_v57 = vld [vmem:[#allocation2 + $0x130] sm:$0xff] }
  0xb6   : > { %1699 = vmatprep.subr.bf16.mxu0 %v2168_v35 }
  0xb9   : > { %1701 = vmatpush1.bf16.msra.mxu0 %v1700_v60  ;;  %v458_v60 = vld [vmem:[#allocation2 + $0x158] sm:$0xff] }
  0xba   : > { %1702 = vmatprep.subr.bf16.mxu0 %v2168_v35 }
  0xbd   : > { %1704 = vmatpush1.bf16.msra.mxu0 %v1703_v63  ;;  %v459_v63 = vld [vmem:[#allocation2 + $0x160] sm:$0xff] }
  0xbe   : > { %1705 = vmatprep.subr.bf16.mxu0 %v2168_v35 }
  0xc1   : > { %1707 = vmatpush1.bf16.msra.mxu0 %v1706_v2  ;;  %v464_v2 = vld [vmem:[#allocation2 + $0x188] sm:$0xff] }
  0xc2   : > { %1708 = vmatprep.subr.bf16.mxu0 %v2168_v35 }
  0xc5   : > { %1710 = vmatpush1.bf16.msra.mxu0 %v1709_v5  ;;  %v465_v5 = vld [vmem:[#allocation2 + $0x190] sm:$0xff] }
  0xc6   : > { %1711 = vmatprep.subr.bf16.mxu0 %v2168_v35 }
  0xc9   : > { %1713 = vmatpush1.bf16.msra.mxu0 %v1712_v8  ;;  %v470_v8 = vld [vmem:[#allocation2 + $0x1b8] sm:$0xff] }
  0xca   : > { %1714 = vmatprep.subr.bf16.mxu0 %v2168_v35 }
  0xcd   : > { %1716 = vmatpush1.bf16.msra.mxu0 %v1715_v11  ;;  %v471_v11 = vld [vmem:[#allocation2 + $0x1c0] sm:$0xff] }
  0xce   : > { %1717 = vmatprep.subr.bf16.mxu0 %v2168_v35 }
  0xd1   : > { %1719 = vmatpush1.bf16.msra.mxu0 %v1718_v14  ;;  %v476_v14 = vld [vmem:[#allocation2 + $0x1e8] sm:$0xff] }
  0xd2   : > { %1720 = vmatprep.subr.bf16.mxu0 %v2168_v35 }
  0xd5   : > { %1722 = vmatpush1.bf16.msra.mxu0 %v1721_v17  ;;  %v477_v17 = vld [vmem:[#allocation2 + $0x1f0] sm:$0xff] }
  0xd8   : > { %544 = vmatmul.mubr.f32.vlgmr.msra.gmra.mrb[0].mxu0 %v415_v18  ;;  %v737_v18 = vld [vmem:[#allocation5 + $0x8] sm:$0xff] }
  0xd9   : > { %548 = vmatprep.mubr.f32.mxu0 %v418_v19  ;;  %896 = vmatprep.mubr.f32.mxu1 %v737_v18 }
  0xdc   : > { %549 = vmatmul.mubr.f32.gmra.mrb[2].mxu0 %v417_v20 }
  0xdd   : > { %553 = vmatprep.mubr.f32.mxu0 %v420_v21 }
  0xe0   : > { %554 = vmatmul.mubr.f32.gmra.mrb[4].mxu0 %v419_v22 }
  0xe1   : > { %558 = vmatprep.mubr.f32.mxu0 %v422_v23 }
  0xe4   : > { %559 = vmatmul.mubr.f32.gmra.mrb[6].mxu0 %v421_v24 }
  0xe5   : > { %563 = vmatprep.mubr.f32.mxu0 %v424_v25 }
  0xe8   : > { %564 = vmatmul.mubr.f32.gmra.mrb[8].mxu0 %v423_v26 }
  0xe9   : > { %568 = vmatprep.mubr.f32.mxu0 %v426_v27 }
  0xec   : > { %569 = vmatmul.mubr.f32.gmra.mrb[10].mxu0 %v425_v28 }
  0xed   : > { %573 = vmatprep.mubr.f32.mxu0 %v428_v29 }
  0xf0   : > { %574 = vmatmul.mubr.f32.gmra.mrb[12].mxu0 %v427_v30 }
  0xf1   : > { %578 = vmatprep.mubr.f32.mxu0 %v430_v31 }
  0xf4   : > { %579 = vmatmul.mubr.f32.gmra.mrb[14].mxu0 %v429_v32 }
  0xf5   : > { %583 = vmatprep.mubr.f32.mxu0 %v432_v33 }
  0xf8   : > { %584 = vmatmul.mubr.f32.gmra.mrb[16].mxu0 %v431_v34 }
  0xf9   : > { %588 = vmatprep.mubr.f32.mxu0 %v434_v36 }
  0xfc   : > { %589 = vmatmul.mubr.f32.gmra.mrb[18].mxu0 %v433_v37 }
  0xfd   : > { %593 = vmatprep.mubr.f32.mxu0 %v436_v38 }
 0x100   : > { %594 = vmatmul.mubr.f32.gmra.mrb[20].mxu0 %v435_v39 }
 0x101   : > { %598 = vmatprep.mubr.f32.mxu0 %v438_v40 }
 0x104   : > { %599 = vmatmul.mubr.f32.gmra.mrb[22].mxu0 %v437_v41 }
 0x105   : > { %603 = vmatprep.mubr.f32.mxu0 %v440_v42 }
 0x108   : > { %604 = vmatmul.mubr.f32.gmra.mrb[24].mxu0 %v439_v43 }
 0x109   : > { %608 = vmatprep.mubr.f32.mxu0 %v442_v44 }
 0x10c   : > { %609 = vmatmul.mubr.f32.gmra.mrb[26].mxu0 %v441_v45 }
 0x10d   : > { %613 = vmatprep.mubr.f32.mxu0 %v444_v46 }
 0x110   : > { %614 = vmatmul.mubr.f32.gmra.mrb[28].mxu0 %v443_v47 }
 0x111   : > { %618 = vmatprep.mubr.f32.mxu0 %v446_v48 }
 0x114   : > { %619 = vmatmul.mubr.f32.gmra.mrb[30].mxu0 %v445_v49 }
 0x115   : > { %623 = vmatprep.mubr.f32.mxu0 %v448_v50 }
 0x118   : > { %624 = vmatmul.mubr.f32.gmra.mrb[32].mxu0 %v447_v51 }
 0x119   : > { %628 = vmatprep.mubr.f32.mxu0 %v450_v52 }
 0x11c   : > { %629 = vmatmul.mubr.f32.gmra.mrb[34].mxu0 %v449_v53 }
 0x11d   : > { %633 = vmatprep.mubr.f32.mxu0 %v452_v54 }
 0x120   : > { %634 = vmatmul.mubr.f32.gmra.mrb[36].mxu0 %v451_v55 }
 0x121   : > { %638 = vmatprep.mubr.f32.mxu0 %v454_v56 }
 0x124   : > { %639 = vmatmul.mubr.f32.gmra.mrb[38].mxu0 %v453_v57 }
 0x125   : > { %643 = vmatprep.mubr.f32.mxu0 %v456_v58 }
 0x128   : > { %644 = vmatmul.mubr.f32.gmra.mrb[40].mxu0 %v455_v59 }
 0x129   : > { %648 = vmatprep.mubr.f32.mxu0 %v458_v60 }
 0x12c   : > { %649 = vmatmul.mubr.f32.gmra.mrb[42].mxu0 %v457_v61 }
 0x12d   : > { %653 = vmatprep.mubr.f32.mxu0 %v460_v62 }
 0x130   : > { %654 = vmatmul.mubr.f32.gmra.mrb[44].mxu0 %v459_v63 }
 0x131   : > { %658 = vmatprep.mubr.f32.mxu0 %v462_v0 }
 0x134   : > { %659 = vmatmul.mubr.f32.gmra.mrb[46].mxu0 %v461_v1 }
 0x135   : > { %663 = vmatprep.mubr.f32.mxu0 %v464_v2 }
 0x138   : > { %664 = vmatmul.mubr.f32.gmra.mrb[48].mxu0 %v463_v3 }
 0x139   : > { %668 = vmatprep.mubr.f32.mxu0 %v466_v4 }
 0x13c   : > { %669 = vmatmul.mubr.f32.gmra.mrb[50].mxu0 %v465_v5 }
 0x13d   : > { %673 = vmatprep.mubr.f32.mxu0 %v468_v6 }
 0x140   : > { %674 = vmatmul.mubr.f32.gmra.mrb[52].mxu0 %v467_v7 }
 0x141   : > { %678 = vmatprep.mubr.f32.mxu0 %v470_v8 }
 0x144   : > { %679 = vmatmul.mubr.f32.gmra.mrb[54].mxu0 %v469_v9 }
 0x145   : > { %683 = vmatprep.mubr.f32.mxu0 %v472_v10 }
 0x148   : > { %684 = vmatmul.mubr.f32.gmra.mrb[56].mxu0 %v471_v11 }
 0x149   : > { %688 = vmatprep.mubr.f32.mxu0 %v474_v12 }
 0x14c   : > { %689 = vmatmul.mubr.f32.gmra.mrb[58].mxu0 %v473_v13 }
 0x14d   : > { %693 = vmatprep.mubr.f32.mxu0 %v476_v14 }
 0x150   : > { %694 = vmatmul.mubr.f32.gmra.mrb[60].mxu0 %v475_v15 }
 0x151   : > { %698 = vmatprep.mubr.f32.mxu0 %v478_v16 }
 0x154   : > { %699 = vmatmul.mubr.f32.gmra.mrb[62].mxu0 %v477_v17 }
 0x1ab   : > { %v545_v19 = vpop.f32.mrb[0].mxu0 }
 0x1ac   : > { %704 = vst [vmem:[#allocation11] sm:$0xff] %v545_v19  ;;  %v547_v20 = vpop.f32.mrb[1].mxu0 }
 0x1af   : > { %v550_v21 = vpop.f32.mrb[2].mxu0 }
 0x1b0   : > { %705 = vst [vmem:[#allocation11 + $0x8] sm:$0xff] %v550_v21  ;;  %v552_v22 = vpop.f32.mrb[3].mxu0  ;;  %v1724_v23 = vpack.c.bf16 %v550_v21, %v545_v19 }
 0x1b2   : > { %1725 = vmatpush1.bf16.msra.mxu1 %v1724_v23 }
 0x1b3   : > { %v555_v24 = vpop.f32.mrb[4].mxu0  ;;  %1726 = vmatprep.subr.bf16.mxu1 %v2168_v35 }
 0x1b4   : > { %706 = vst [vmem:[#allocation11 + $0x10] sm:$0xff] %v555_v24  ;;  %v557_v25 = vpop.f32.mrb[5].mxu0 }
 0x1b7   : > { %v560_v26 = vpop.f32.mrb[6].mxu0 }
 0x1b8   : > { %707 = vst [vmem:[#allocation11 + $0x18] sm:$0xff] %v560_v26  ;;  %v562_v27 = vpop.f32.mrb[7].mxu0  ;;  %v1727_v28 = vpack.c.bf16 %v560_v26, %v555_v24 }
 0x1ba   : > { %1728 = vmatpush1.bf16.msra.mxu1 %v1727_v28 }
 0x1bb   : > { %v565_v29 = vpop.f32.mrb[8].mxu0  ;;  %1729 = vmatprep.subr.bf16.mxu1 %v2168_v35 }
 0x1bc   : > { %708 = vst [vmem:[#allocation11 + $0x20] sm:$0xff] %v565_v29  ;;  %v567_v30 = vpop.f32.mrb[9].mxu0 }
 0x1bf   : > { %v570_v31 = vpop.f32.mrb[10].mxu0 }
 0x1c0   : > { %709 = vst [vmem:[#allocation11 + $0x28] sm:$0xff] %v570_v31  ;;  %v572_v32 = vpop.f32.mrb[11].mxu0  ;;  %v1730_v33 = vpack.c.bf16 %v570_v31, %v565_v29 }
 0x1c2   : > { %1731 = vmatpush1.bf16.msra.mxu1 %v1730_v33 }
 0x1c3   : > { %v575_v34 = vpop.f32.mrb[12].mxu0  ;;  %1732 = vmatprep.subr.bf16.mxu1 %v2168_v35 }
 0x1c4   : > { %710 = vst [vmem:[#allocation11 + $0x30] sm:$0xff] %v575_v34  ;;  %v577_v36 = vpop.f32.mrb[13].mxu0 }
 0x1c7   : > { %v580_v37 = vpop.f32.mrb[14].mxu0 }
 0x1c8   : > { %711 = vst [vmem:[#allocation11 + $0x38] sm:$0xff] %v580_v37  ;;  %v582_v38 = vpop.f32.mrb[15].mxu0  ;;  %v1733_v39 = vpack.c.bf16 %v580_v37, %v575_v34  ;;  %v1089_v37 = vld [vmem:[%s2400_s16] sm:$0xff] }
 0x1c9   : > { %v1090_v38 = vld [vmem:[%s2400_s16 + $0x8] sm:$0xff] }
 0x1ca   : > { %1734 = vmatpush1.bf16.msra.mxu1 %v1733_v39  ;;  %v1091_v39 = vld [vmem:[%s2400_s16 + $0x10] sm:$0xff] }
 0x1cb   : > { %v585_v40 = vpop.f32.mrb[16].mxu0  ;;  %1735 = vmatprep.subr.bf16.mxu1 %v2168_v35 }
 0x1cc   : > { %712 = vst [vmem:[#allocation11 + $0x40] sm:$0xff] %v585_v40  ;;  %v587_v41 = vpop.f32.mrb[17].mxu0 }
 0x1cd   : > { %v1771_v41 = vpack.c.bf16 %v1090_v38, %v1089_v37  ;;  %v781_v37 = vld [vmem:[#allocation5 + $0x168] sm:$0xff]  ;;  %v1103_v38 = vld [vmem:[%s2400_s16 + $0x70] sm:$0xff] }
 0x1cf   : > { %v590_v42 = vpop.f32.mrb[18].mxu0  ;;  %1772 = vmatprep.subr.bf16.mxu0 %v1771_v41 }
 0x1d0   : > { %713 = vst [vmem:[#allocation11 + $0x48] sm:$0xff] %v590_v42  ;;  %v592_v43 = vpop.f32.mrb[19].mxu0  ;;  %v1736_v44 = vpack.c.bf16 %v590_v42, %v585_v40  ;;  %v736_v40 = vld [vmem:[#allocation5] sm:$0xff]  ;;  %v1092_v42 = vld [vmem:[%s2400_s16 + $0x18] sm:$0xff]  ;;  %1774 = vmatpush3.bf16.msra.mxu0 %v1771_v41 }
 0x1d1   : > { %v739_v43 = vld [vmem:[#allocation5 + $0x18] sm:$0xff] }
 0x1d2   : > { %1737 = vmatpush1.bf16.msra.mxu1 %v1736_v44  ;;  %v1775_v44 = vpack.c.bf16 %v1092_v42, %v1091_v39  ;;  %v1104_v39 = vld [vmem:[%s2400_s16 + $0x78] sm:$0xff] }
 0x1d3   : > { %v595_v45 = vpop.f32.mrb[20].mxu0  ;;  %1738 = vmatprep.subr.bf16.mxu1 %v2168_v35  ;;  %v783_v42 = vld [vmem:[#allocation5 + $0x178] sm:$0xff] }
 0x1d4   : > { %714 = vst [vmem:[#allocation11 + $0x50] sm:$0xff] %v595_v45  ;;  %v597_v46 = vpop.f32.mrb[21].mxu0  ;;  %1776 = vmatprep.subr.bf16.mxu0 %v1775_v44 }
 0x1d5   : > { %v738_v46 = vld [vmem:[#allocation5 + $0x10] sm:$0xff]  ;;  %1778 = vmatpush3.bf16.msra.mxu0 %v1775_v44 }
 0x1d7   : > { %v600_v47 = vpop.f32.mrb[22].mxu0 }
 0x1d8   : > { %715 = vst [vmem:[#allocation11 + $0x58] sm:$0xff] %v600_v47  ;;  %v602_v48 = vpop.f32.mrb[23].mxu0  ;;  %v1739_v49 = vpack.c.bf16 %v600_v47, %v595_v45  ;;  %v1094_v45 = vld [vmem:[%s2400_s16 + $0x28] sm:$0xff] }
 0x1d9   : > { %v741_v48 = vld [vmem:[#allocation5 + $0x28] sm:$0xff] }
 0x1da   : > { %1740 = vmatpush1.bf16.msra.mxu1 %v1739_v49  ;;  %v1095_v49 = vld [vmem:[%s2400_s16 + $0x30] sm:$0xff] }
 0x1db   : > { %v605_v50 = vpop.f32.mrb[24].mxu0  ;;  %1741 = vmatprep.subr.bf16.mxu1 %v2168_v35 }
 0x1dc   : > { %716 = vst [vmem:[#allocation11 + $0x60] sm:$0xff] %v605_v50  ;;  %v607_v51 = vpop.f32.mrb[25].mxu0 }
 0x1dd   : > { %v740_v51 = vld [vmem:[#allocation5 + $0x20] sm:$0xff] }
 0x1df   : > { %v610_v52 = vpop.f32.mrb[26].mxu0 }
 0x1e0   : > { %717 = vst [vmem:[#allocation11 + $0x68] sm:$0xff] %v610_v52  ;;  %v612_v53 = vpop.f32.mrb[27].mxu0  ;;  %v1742_v54 = vpack.c.bf16 %v610_v52, %v605_v50  ;;  %v1096_v50 = vld [vmem:[%s2400_s16 + $0x38] sm:$0xff] }
 0x1e1   : > { %v1783_v52 = vpack.c.bf16 %v1096_v50, %v1095_v49  ;;  %v743_v53 = vld [vmem:[#allocation5 + $0x38] sm:$0xff]  ;;  %v790_v50 = vld [vmem:[#allocation5 + $0x1b0] sm:$0xff] }
 0x1e2   : > { %1743 = vmatpush1.bf16.msra.mxu1 %v1742_v54  ;;  %v1097_v54 = vld [vmem:[%s2400_s16 + $0x40] sm:$0xff]  ;;  %v791_v49 = vld [vmem:[#allocation5 + $0x1b8] sm:$0xff] }
 0x1e3   : > { %v615_v55 = vpop.f32.mrb[28].mxu0  ;;  %1744 = vmatprep.subr.bf16.mxu1 %v2168_v35 }
 0x1e4   : > { %718 = vst [vmem:[#allocation11 + $0x70] sm:$0xff] %v615_v55  ;;  %v617_v56 = vpop.f32.mrb[29].mxu0 }
 0x1e5   : > { %v742_v56 = vld [vmem:[#allocation5 + $0x30] sm:$0xff] }
 0x1e7   : > { %v620_v57 = vpop.f32.mrb[30].mxu0 }
 0x1e8   : > { %719 = vst [vmem:[#allocation11 + $0x78] sm:$0xff] %v620_v57  ;;  %v622_v58 = vpop.f32.mrb[31].mxu0  ;;  %v1745_v59 = vpack.c.bf16 %v620_v57, %v615_v55  ;;  %v1098_v55 = vld [vmem:[%s2400_s16 + $0x48] sm:$0xff] }
 0x1e9   : > { %v1787_v57 = vpack.c.bf16 %v1098_v55, %v1097_v54  ;;  %v745_v58 = vld [vmem:[#allocation5 + $0x48] sm:$0xff]  ;;  %v794_v54 = vld [vmem:[#allocation5 + $0x1d0] sm:$0xff] }
 0x1ea   : > { %1746 = vmatpush1.bf16.msra.mxu1 %v1745_v59  ;;  %v1099_v59 = vld [vmem:[%s2400_s16 + $0x50] sm:$0xff]  ;;  %v797_v55 = vld [vmem:[#allocation5 + $0x1e8] sm:$0xff] }
 0x1eb   : > { %v625_v60 = vpop.f32.mrb[32].mxu0  ;;  %1747 = vmatprep.subr.bf16.mxu1 %v2168_v35 }
 0x1ec   : > { %720 = vst [vmem:[#allocation11 + $0x80] sm:$0xff] %v625_v60  ;;  %v627_v61 = vpop.f32.mrb[33].mxu0 }
 0x1ed   : > { %v744_v61 = vld [vmem:[#allocation5 + $0x40] sm:$0xff] }
 0x1ef   : > { %v630_v62 = vpop.f32.mrb[34].mxu0 }
 0x1f0   : > { %721 = vst [vmem:[#allocation11 + $0x88] sm:$0xff] %v630_v62  ;;  %v632_v63 = vpop.f32.mrb[35].mxu0  ;;  %v1748_v0 = vpack.c.bf16 %v630_v62, %v625_v60  ;;  %v1100_v60 = vld [vmem:[%s2400_s16 + $0x58] sm:$0xff] }
 0x1f1   : > { %v1791_v62 = vpack.c.bf16 %v1100_v60, %v1099_v59  ;;  %v747_v63 = vld [vmem:[#allocation5 + $0x58] sm:$0xff]  ;;  %v1910_v60 = vld [vmem:[#allocation10] sm:$0xff] }
 0x1f2   : > { %1749 = vmatpush1.bf16.msra.mxu1 %v1748_v0  ;;  %v1101_v0 = vld [vmem:[%s2400_s16 + $0x60] sm:$0xff] }
 0x1f3   : > { %v635_v1 = vpop.f32.mrb[36].mxu0  ;;  %1750 = vmatprep.subr.bf16.mxu1 %v2168_v35 }
 0x1f4   : > { %722 = vst [vmem:[#allocation11 + $0x90] sm:$0xff] %v635_v1  ;;  %v637_v2 = vpop.f32.mrb[37].mxu0 }
 0x1f5   : > { %v746_v2 = vld [vmem:[#allocation5 + $0x50] sm:$0xff] }
 0x1f7   : > { %v640_v3 = vpop.f32.mrb[38].mxu0 }
 0x1f8   : > { %723 = vst [vmem:[#allocation11 + $0x98] sm:$0xff] %v640_v3  ;;  %v642_v4 = vpop.f32.mrb[39].mxu0  ;;  %v1751_v5 = vpack.c.bf16 %v640_v3, %v635_v1  ;;  %v1102_v1 = vld [vmem:[%s2400_s16 + $0x68] sm:$0xff] }
 0x1f9   : > { %v1795_v3 = vpack.c.bf16 %v1102_v1, %v1101_v0  ;;  %v749_v4 = vld [vmem:[#allocation5 + $0x68] sm:$0xff] }
 0x1fa   : > { %1752 = vmatpush1.bf16.msra.mxu1 %v1751_v5  ;;  %v748_v5 = vld [vmem:[#allocation5 + $0x60] sm:$0xff]  ;;  %v1911_v0 = vld [vmem:[#allocation10 + $0x8] sm:$0xff] }
 0x1fb   : > { %v645_v6 = vpop.f32.mrb[40].mxu0  ;;  %1753 = vmatprep.subr.bf16.mxu1 %v2168_v35 }
 0x1fc   : > { %724 = vst [vmem:[#allocation11 + $0xa0] sm:$0xff] %v645_v6  ;;  %v647_v7 = vpop.f32.mrb[41].mxu0 }
 0x1fd   : > { %v750_v7 = vld [vmem:[#allocation5 + $0x70] sm:$0xff] }
 0x1ff   : > { %v650_v8 = vpop.f32.mrb[42].mxu0 }
 0x200   : > { %725 = vst [vmem:[#allocation11 + $0xa8] sm:$0xff] %v650_v8  ;;  %v652_v9 = vpop.f32.mrb[43].mxu0  ;;  %v1754_v10 = vpack.c.bf16 %v650_v8, %v645_v6  ;;  %v751_v6 = vld [vmem:[#allocation5 + $0x78] sm:$0xff]  ;;  %v753_v8 = vld [vmem:[#allocation5 + $0x88] sm:$0xff] }
 0x201   : > { %v752_v9 = vld [vmem:[#allocation5 + $0x80] sm:$0xff] }
 0x202   : > { %1755 = vmatpush1.bf16.msra.mxu1 %v1754_v10  ;;  %v755_v10 = vld [vmem:[#allocation5 + $0x98] sm:$0xff] }
 0x203   : > { %v655_v11 = vpop.f32.mrb[44].mxu0  ;;  %1756 = vmatprep.subr.bf16.mxu1 %v2168_v35 }
 0x204   : > { %726 = vst [vmem:[#allocation11 + $0xb0] sm:$0xff] %v655_v11  ;;  %v657_v12 = vpop.f32.mrb[45].mxu0 }
 0x205   : > { %v757_v12 = vld [vmem:[#allocation5 + $0xa8] sm:$0xff] }
 0x207   : > { %v660_v13 = vpop.f32.mrb[46].mxu0 }
 0x208   : > { %727 = vst [vmem:[#allocation11 + $0xb8] sm:$0xff] %v660_v13  ;;  %v662_v14 = vpop.f32.mrb[47].mxu0  ;;  %v1757_v15 = vpack.c.bf16 %v660_v13, %v655_v11  ;;  %v754_v11 = vld [vmem:[#allocation5 + $0x90] sm:$0xff]  ;;  %v756_v13 = vld [vmem:[#allocation5 + $0xa0] sm:$0xff] }
 0x209   : > { %v759_v14 = vld [vmem:[#allocation5 + $0xb8] sm:$0xff] }
 0x20a   : > { %1758 = vmatpush1.bf16.msra.mxu1 %v1757_v15  ;;  %v758_v15 = vld [vmem:[#allocation5 + $0xb0] sm:$0xff] }
 0x20b   : > { %v665_v16 = vpop.f32.mrb[48].mxu0  ;;  %1759 = vmatprep.subr.bf16.mxu1 %v2168_v35 }
 0x20c   : > { %728 = vst [vmem:[#allocation11 + $0xc0] sm:$0xff] %v665_v16  ;;  %v667_v17 = vpop.f32.mrb[49].mxu0 }
 0x20d   : > { %v760_v17 = vld [vmem:[#allocation5 + $0xc0] sm:$0xff] }
 0x20f   : > { %v670_v18 = vpop.f32.mrb[50].mxu0 }
 0x210   : > { %729 = vst [vmem:[#allocation11 + $0xc8] sm:$0xff] %v670_v18  ;;  %v672_v19 = vpop.f32.mrb[51].mxu0  ;;  %v1760_v20 = vpack.c.bf16 %v670_v18, %v665_v16  ;;  %v761_v16 = vld [vmem:[#allocation5 + $0xc8] sm:$0xff]  ;;  %v763_v18 = vld [vmem:[#allocation5 + $0xd8] sm:$0xff] }
 0x211   : > { %v762_v19 = vld [vmem:[#allocation5 + $0xd0] sm:$0xff] }
 0x212   : > { %1761 = vmatpush1.bf16.msra.mxu1 %v1760_v20  ;;  %v765_v20 = vld [vmem:[#allocation5 + $0xe8] sm:$0xff] }
 0x213   : > { %v675_v21 = vpop.f32.mrb[52].mxu0  ;;  %1762 = vmatprep.subr.bf16.mxu1 %v2168_v35 }
 0x214   : > { %730 = vst [vmem:[#allocation11 + $0xd0] sm:$0xff] %v675_v21  ;;  %v677_v22 = vpop.f32.mrb[53].mxu0 }
 0x215   : > { %v767_v22 = vld [vmem:[#allocation5 + $0xf8] sm:$0xff] }
 0x217   : > { %v680_v23 = vpop.f32.mrb[54].mxu0 }
 0x218   : > { %731 = vst [vmem:[#allocation11 + $0xd8] sm:$0xff] %v680_v23  ;;  %v682_v24 = vpop.f32.mrb[55].mxu0  ;;  %v1763_v25 = vpack.c.bf16 %v680_v23, %v675_v21  ;;  %v764_v21 = vld [vmem:[#allocation5 + $0xe0] sm:$0xff]  ;;  %v766_v23 = vld [vmem:[#allocation5 + $0xf0] sm:$0xff] }
 0x219   : > { %v769_v24 = vld [vmem:[#allocation5 + $0x108] sm:$0xff] }
 0x21a   : > { %1764 = vmatpush1.bf16.msra.mxu1 %v1763_v25  ;;  %v768_v25 = vld [vmem:[#allocation5 + $0x100] sm:$0xff] }
 0x21b   : > { %v685_v26 = vpop.f32.mrb[56].mxu0  ;;  %1765 = vmatprep.subr.bf16.mxu1 %v2168_v35 }
 0x21c   : > { %732 = vst [vmem:[#allocation11 + $0xe0] sm:$0xff] %v685_v26  ;;  %v687_v27 = vpop.f32.mrb[57].mxu0 }
 0x21d   : > { %v770_v27 = vld [vmem:[#allocation5 + $0x110] sm:$0xff] }
 0x21f   : > { %v690_v28 = vpop.f32.mrb[58].mxu0 }
 0x220   : > { %733 = vst [vmem:[#allocation11 + $0xe8] sm:$0xff] %v690_v28  ;;  %v692_v29 = vpop.f32.mrb[59].mxu0  ;;  %v1766_v30 = vpack.c.bf16 %v690_v28, %v685_v26  ;;  %v771_v26 = vld [vmem:[#allocation5 + $0x118] sm:$0xff]  ;;  %v773_v28 = vld [vmem:[#allocation5 + $0x128] sm:$0xff] }
 0x221   : > { %v772_v29 = vld [vmem:[#allocation5 + $0x120] sm:$0xff] }
 0x222   : > { %1767 = vmatpush1.bf16.msra.mxu1 %v1766_v30  ;;  %v775_v30 = vld [vmem:[#allocation5 + $0x138] sm:$0xff] }
 0x223   : > { %v695_v31 = vpop.f32.mrb[60].mxu0  ;;  %1768 = vmatprep.subr.bf16.mxu1 %v2168_v35  ;;  %v1093_v35 = vld [vmem:[%s2400_s16 + $0x20] sm:$0xff] }
 0x224   : > { %734 = vst [vmem:[#allocation11 + $0xf0] sm:$0xff] %v695_v31  ;;  %v697_v32 = vpop.f32.mrb[61].mxu0  ;;  %v1779_v47 = vpack.c.bf16 %v1094_v45, %v1093_v35  ;;  %v784_v35 = vld [vmem:[#allocation5 + $0x180] sm:$0xff]  ;;  %v787_v45 = vld [vmem:[#allocation5 + $0x198] sm:$0xff] }
 0x225   : > { %v777_v32 = vld [vmem:[#allocation5 + $0x148] sm:$0xff] }
 0x226   : > { %1780 = vmatprep.subr.bf16.mxu0 %v1779_v47 }
 0x227   : > { %v700_v33 = vpop.f32.mrb[62].mxu0  ;;  %1782 = vmatpush3.bf16.msra.mxu0 %v1779_v47 }
 0x228   : > { %735 = vst [vmem:[#allocation11 + $0xf8] sm:$0xff] %v700_v33  ;;  %v702_v34 = vpop.f32.mrb[63].mxu0  ;;  %v1769_v36 = vpack.c.bf16 %v700_v33, %v695_v31  ;;  %1784 = vmatprep.subr.bf16.mxu0 %v1783_v52  ;;  %v774_v31 = vld [vmem:[#allocation5 + $0x130] sm:$0xff]  ;;  %v776_v33 = vld [vmem:[#allocation5 + $0x140] sm:$0xff] }
 0x229   : > { %v779_v34 = vld [vmem:[#allocation5 + $0x158] sm:$0xff] }
 0x22a   : > { %1770 = vmatpush1.bf16.msra.mxu1 %v1769_v36  ;;  %v778_v36 = vld [vmem:[#allocation5 + $0x150] sm:$0xff] }
 0x22b   : > { %1803 = vmatprep.subr.bf16.mxu1 %v1771_v41  ;;  %1786 = vmatpush3.bf16.msra.mxu0 %v1783_v52 }
 0x22c   : > { %1788 = vmatprep.subr.bf16.mxu0 %v1787_v57 }
 0x22d   : > { %897 = vmatmul.mubr.f32.vlgmr.msra.gmra.mrb[0].mxu1 %v736_v40  ;;  %v1799_v40 = vpack.c.bf16 %v1104_v39, %v1103_v38 }
 0x22e   : > { %901 = vmatprep.mubr.f32.mxu1 %v739_v43  ;;  %1811 = vmatpush3.bf16.msra.mxu1 %v1771_v41  ;;  %v780_v41 = vld [vmem:[#allocation5 + $0x160] sm:$0xff]  ;;  %v782_v43 = vld [vmem:[#allocation5 + $0x170] sm:$0xff] }
 0x22f   : > { %1804 = vmatprep.subr.bf16.mxu1 %v1775_v44  ;;  %1790 = vmatpush3.bf16.msra.mxu0 %v1787_v57 }
 0x230   : > { %1792 = vmatprep.subr.bf16.mxu0 %v1791_v62 }
 0x231   : > { %902 = vmatmul.mubr.f32.gmra.mrb[2].mxu1 %v738_v46  ;;  %v786_v46 = vld [vmem:[#allocation5 + $0x190] sm:$0xff] }
 0x232   : > { %906 = vmatprep.mubr.f32.mxu1 %v741_v48  ;;  %1812 = vmatpush3.bf16.msra.mxu1 %v1775_v44  ;;  %v785_v44 = vld [vmem:[#allocation5 + $0x188] sm:$0xff]  ;;  %v788_v48 = vld [vmem:[#allocation5 + $0x1a0] sm:$0xff] }
 0x233   : > { %1805 = vmatprep.subr.bf16.mxu1 %v1779_v47  ;;  %1794 = vmatpush3.bf16.msra.mxu0 %v1791_v62 }
 0x234   : > { %1796 = vmatprep.subr.bf16.mxu0 %v1795_v3 }
 0x235   : > { %907 = vmatmul.mubr.f32.gmra.mrb[4].mxu1 %v740_v51  ;;  %v793_v51 = vld [vmem:[#allocation5 + $0x1c8] sm:$0xff] }
 0x236   : > { %911 = vmatprep.mubr.f32.mxu1 %v743_v53  ;;  %1813 = vmatpush3.bf16.msra.mxu1 %v1779_v47  ;;  %v789_v47 = vld [vmem:[#allocation5 + $0x1a8] sm:$0xff]  ;;  %v795_v53 = vld [vmem:[#allocation5 + $0x1d8] sm:$0xff] }
 0x237   : > { %1806 = vmatprep.subr.bf16.mxu1 %v1783_v52  ;;  %1798 = vmatpush3.bf16.msra.mxu0 %v1795_v3 }
 0x238   : > { %1800 = vmatprep.subr.bf16.mxu0 %v1799_v40 }
 0x239   : > { %912 = vmatmul.mubr.f32.gmra.mrb[6].mxu1 %v742_v56  ;;  %v796_v56 = vld [vmem:[#allocation5 + $0x1e0] sm:$0xff] }
 0x23a   : > { %916 = vmatprep.mubr.f32.mxu1 %v745_v58  ;;  %1814 = vmatpush3.bf16.msra.mxu1 %v1783_v52  ;;  %v792_v52 = vld [vmem:[#allocation5 + $0x1c0] sm:$0xff]  ;;  %v798_v58 = vld [vmem:[#allocation5 + $0x1f0] sm:$0xff] }
 0x23b   : > { %1807 = vmatprep.subr.bf16.mxu1 %v1787_v57  ;;  %1802 = vmatpush3.bf16.msra.mxu0 %v1799_v40 }
 0x23d   : > { %917 = vmatmul.mubr.f32.gmra.mrb[8].mxu1 %v744_v61 }
 0x23e   : > { %921 = vmatprep.mubr.f32.mxu1 %v747_v63  ;;  %1815 = vmatpush3.bf16.msra.mxu1 %v1787_v57  ;;  %v799_v57 = vld [vmem:[#allocation5 + $0x1f8] sm:$0xff] }
 0x23f   : > { %1808 = vmatprep.subr.bf16.mxu1 %v1791_v62 }
 0x241   : > { %922 = vmatmul.mubr.f32.gmra.mrb[10].mxu1 %v746_v2 }
 0x242   : > { %926 = vmatprep.mubr.f32.mxu1 %v749_v4  ;;  %1816 = vmatpush3.bf16.msra.mxu1 %v1791_v62  ;;  %v1912_v4 = vld [vmem:[#allocation10 + $0x10] sm:$0xff] }
 0x243   : > { %1809 = vmatprep.subr.bf16.mxu1 %v1795_v3 }
 0x245   : > { %927 = vmatmul.mubr.f32.gmra.mrb[12].mxu1 %v748_v5 }
 0x246   : > { %931 = vmatprep.mubr.f32.mxu1 %v751_v6  ;;  %1817 = vmatpush3.bf16.msra.mxu1 %v1795_v3 }
 0x247   : > { %1810 = vmatprep.subr.bf16.mxu1 %v1799_v40 }
 0x249   : > { %932 = vmatmul.mubr.f32.gmra.mrb[14].mxu1 %v750_v7 }
 0x24a   : > { %936 = vmatprep.mubr.f32.mxu1 %v753_v8  ;;  %1818 = vmatpush3.bf16.msra.mxu1 %v1799_v40  ;;  %v1913_v8 = vld [vmem:[#allocation10 + $0x18] sm:$0xff] }
 0x24d   : > { %937 = vmatmul.mubr.f32.gmra.mrb[16].mxu1 %v752_v9 }
 0x24e   : > { %941 = vmatprep.mubr.f32.mxu1 %v755_v10 }
 0x251   : > { %942 = vmatmul.mubr.f32.gmra.mrb[18].mxu1 %v754_v11 }
 0x252   : > { %946 = vmatprep.mubr.f32.mxu1 %v757_v12  ;;  %v1914_v12 = vld [vmem:[#allocation10 + $0x20] sm:$0xff] }
 0x255   : > { %947 = vmatmul.mubr.f32.gmra.mrb[20].mxu1 %v756_v13 }
 0x256   : > { %951 = vmatprep.mubr.f32.mxu1 %v759_v14 }
 0x259   : > { %952 = vmatmul.mubr.f32.gmra.mrb[22].mxu1 %v758_v15 }
 0x25a   : > { %956 = vmatprep.mubr.f32.mxu1 %v761_v16  ;;  %v1915_v16 = vld [vmem:[#allocation10 + $0x28] sm:$0xff] }
 0x25d   : > { %957 = vmatmul.mubr.f32.gmra.mrb[24].mxu1 %v760_v17 }
 0x25e   : > { %961 = vmatprep.mubr.f32.mxu1 %v763_v18 }
 0x261   : > { %962 = vmatmul.mubr.f32.gmra.mrb[26].mxu1 %v762_v19 }
 0x262   : > { %966 = vmatprep.mubr.f32.mxu1 %v765_v20  ;;  %v1916_v20 = vld [vmem:[#allocation10 + $0x30] sm:$0xff] }
 0x265   : > { %967 = vmatmul.mubr.f32.gmra.mrb[28].mxu1 %v764_v21 }
 0x266   : > { %971 = vmatprep.mubr.f32.mxu1 %v767_v22 }
 0x269   : > { %972 = vmatmul.mubr.f32.gmra.mrb[30].mxu1 %v766_v23 }
 0x26a   : > { %976 = vmatprep.mubr.f32.mxu1 %v769_v24  ;;  %v1917_v24 = vld [vmem:[#allocation10 + $0x38] sm:$0xff] }
 0x26d   : > { %977 = vmatmul.mubr.f32.gmra.mrb[32].mxu1 %v768_v25 }
 0x26e   : > { %981 = vmatprep.mubr.f32.mxu1 %v771_v26 }
 0x271   : > { %982 = vmatmul.mubr.f32.gmra.mrb[34].mxu1 %v770_v27 }
 0x272   : > { %986 = vmatprep.mubr.f32.mxu1 %v773_v28  ;;  %v1918_v28 = vld [vmem:[#allocation10 + $0x40] sm:$0xff] }
 0x275   : > { %987 = vmatmul.mubr.f32.gmra.mrb[36].mxu1 %v772_v29 }
 0x276   : > { %991 = vmatprep.mubr.f32.mxu1 %v775_v30 }
 0x279   : > { %992 = vmatmul.mubr.f32.gmra.mrb[38].mxu1 %v774_v31 }
 0x27a   : > { %996 = vmatprep.mubr.f32.mxu1 %v777_v32  ;;  %v1919_v32 = vld [vmem:[#allocation10 + $0x48] sm:$0xff] }
 0x27d   : > { %997 = vmatmul.mubr.f32.gmra.mrb[40].mxu1 %v776_v33 }
 0x27e   : > { %1001 = vmatprep.mubr.f32.mxu1 %v779_v34 }
 0x281   : > { %1002 = vmatmul.mubr.f32.gmra.mrb[42].mxu1 %v778_v36 }
 0x282   : > { %1006 = vmatprep.mubr.f32.mxu1 %v781_v37  ;;  %v1920_v37 = vld [vmem:[#allocation10 + $0x50] sm:$0xff] }
 0x285   : > { %1007 = vmatmul.mubr.f32.gmra.mrb[44].mxu1 %v780_v41  ;;  %v1921_v41 = vld [vmem:[#allocation10 + $0x58] sm:$0xff] }
 0x286   : > { %1011 = vmatprep.mubr.f32.mxu1 %v783_v42 }
 0x289   : > { %1012 = vmatmul.mubr.f32.gmra.mrb[46].mxu1 %v782_v43 }
 0x28a   : > { %1016 = vmatprep.mubr.f32.mxu1 %v785_v44 }
 0x28d   : > { %1017 = vmatmul.mubr.f32.gmra.mrb[48].mxu1 %v784_v35  ;;  %v1922_v35 = vld [vmem:[#allocation10 + $0x60] sm:$0xff] }
 0x28e   : > { %1021 = vmatprep.mubr.f32.mxu1 %v787_v45 }
 0x291   : > { %1022 = vmatmul.mubr.f32.gmra.mrb[50].mxu1 %v786_v46 }
 0x292   : > { %1026 = vmatprep.mubr.f32.mxu1 %v789_v47 }
 0x295   : > { %1027 = vmatmul.mubr.f32.gmra.mrb[52].mxu1 %v788_v48  ;;  %v1923_v48 = vld [vmem:[#allocation10 + $0x68] sm:$0xff] }
 0x296   : > { %1031 = vmatprep.mubr.f32.mxu1 %v791_v49 }
 0x299   : > { %1032 = vmatmul.mubr.f32.gmra.mrb[54].mxu1 %v790_v50 }
 0x29a   : > { %1036 = vmatprep.mubr.f32.mxu1 %v793_v51 }
 0x29d   : > { %1037 = vmatmul.mubr.f32.gmra.mrb[56].mxu1 %v792_v52  ;;  %v1924_v52 = vld [vmem:[#allocation10 + $0x70] sm:$0xff] }
 0x29e   : > { %1041 = vmatprep.mubr.f32.mxu1 %v795_v53 }
 0x2a1   : > { %1042 = vmatmul.mubr.f32.gmra.mrb[58].mxu1 %v794_v54 }
 0x2a2   : > { %1046 = vmatprep.mubr.f32.mxu1 %v797_v55 }
 0x2a5   : > { %1047 = vmatmul.mubr.f32.gmra.mrb[60].mxu1 %v796_v56  ;;  %v1925_v56 = vld [vmem:[#allocation10 + $0x78] sm:$0xff] }
 0x2a6   : > { %1051 = vmatprep.mubr.f32.mxu1 %v799_v57 }
 0x2a9   : > { %1052 = vmatmul.mubr.f32.gmra.mrb[62].mxu1 %v798_v58 }
 0x300   : > { %v898_v59 = vpop.f32.mrb[0].mxu1 }
 0x301   : > { %v1057_v61 = vadd.f32 %v1910_v60, %v898_v59  ;;  %v900_v62 = vpop.f32.mrb[1].mxu1  ;;  %v1926_v60 = vld [vmem:[#allocation10 + $0x80] sm:$0xff] }
 0x303   : > { %1627 = vmatprep.mubr.f32.mxu0 %v1057_v61 }
 0x304   : > { %v903_v63 = vpop.f32.mrb[2].mxu1 }
 0x305   : > { %v1058_v1 = vadd.f32 %v1911_v0, %v903_v63  ;;  %v905_v2 = vpop.f32.mrb[3].mxu1  ;;  %v1927_v0 = vld [vmem:[#allocation10 + $0x88] sm:$0xff] }
 0x307   : > { %1628 = vmatmul.mubr.f32.vlgmr.msra.gmra.mrb[64].mxu0 %v1058_v1 }
 0x308   : > { %v908_v3 = vpop.f32.mrb[4].mxu1 }
 0x309   : > { %v1059_v5 = vadd.f32 %v1912_v4, %v908_v3  ;;  %v910_v6 = vpop.f32.mrb[5].mxu1  ;;  %v1928_v4 = vld [vmem:[#allocation10 + $0x90] sm:$0xff] }
 0x30b   : > { %1630 = vmatprep.mubr.f32.mxu0 %v1059_v5 }
 0x30c   : > { %v913_v7 = vpop.f32.mrb[6].mxu1 }
 0x30d   : > { %v1060_v9 = vadd.f32 %v1913_v8, %v913_v7  ;;  %v915_v10 = vpop.f32.mrb[7].mxu1  ;;  %v1929_v8 = vld [vmem:[#allocation10 + $0x98] sm:$0xff] }
 0x30f   : > { %1631 = vmatmul.mubr.f32.gmra.mrb[66].mxu0 %v1060_v9 }
 0x310   : > { %v918_v11 = vpop.f32.mrb[8].mxu1 }
 0x311   : > { %v1061_v13 = vadd.f32 %v1914_v12, %v918_v11  ;;  %v920_v14 = vpop.f32.mrb[9].mxu1  ;;  %v1930_v12 = vld [vmem:[#allocation10 + $0xa0] sm:$0xff] }
 0x313   : > { %1633 = vmatprep.mubr.f32.mxu0 %v1061_v13 }
 0x314   : > { %v923_v15 = vpop.f32.mrb[10].mxu1 }
 0x315   : > { %v1062_v17 = vadd.f32 %v1915_v16, %v923_v15  ;;  %v925_v18 = vpop.f32.mrb[11].mxu1  ;;  %v1931_v16 = vld [vmem:[#allocation10 + $0xa8] sm:$0xff] }
 0x317   : > { %1634 = vmatmul.mubr.f32.gmra.mrb[68].mxu0 %v1062_v17 }
 0x318   : > { %v928_v19 = vpop.f32.mrb[12].mxu1 }
 0x319   : > { %v1063_v21 = vadd.f32 %v1916_v20, %v928_v19  ;;  %v930_v22 = vpop.f32.mrb[13].mxu1  ;;  %v1932_v20 = vld [vmem:[#allocation10 + $0xb0] sm:$0xff] }
 0x31b   : > { %1636 = vmatprep.mubr.f32.mxu0 %v1063_v21 }
 0x31c   : > { %v933_v23 = vpop.f32.mrb[14].mxu1 }
 0x31d   : > { %v1064_v25 = vadd.f32 %v1917_v24, %v933_v23  ;;  %v935_v26 = vpop.f32.mrb[15].mxu1  ;;  %v1933_v24 = vld [vmem:[#allocation10 + $0xb8] sm:$0xff] }
 0x31f   : > { %1637 = vmatmul.mubr.f32.gmra.mrb[70].mxu0 %v1064_v25 }
 0x320   : > { %v938_v27 = vpop.f32.mrb[16].mxu1 }
 0x321   : > { %v1065_v29 = vadd.f32 %v1918_v28, %v938_v27  ;;  %v940_v30 = vpop.f32.mrb[17].mxu1  ;;  %v1934_v28 = vld [vmem:[#allocation10 + $0xc0] sm:$0xff] }
 0x323   : > { %1639 = vmatprep.mubr.f32.mxu0 %v1065_v29 }
 0x324   : > { %v943_v31 = vpop.f32.mrb[18].mxu1 }
 0x325   : > { %v1066_v33 = vadd.f32 %v1919_v32, %v943_v31  ;;  %v945_v34 = vpop.f32.mrb[19].mxu1  ;;  %v1935_v32 = vld [vmem:[#allocation10 + $0xc8] sm:$0xff] }
 0x327   : > { %1640 = vmatmul.mubr.f32.gmra.mrb[72].mxu0 %v1066_v33 }
 0x328   : > { %v948_v36 = vpop.f32.mrb[20].mxu1 }
 0x329   : > { %v1067_v38 = vadd.f32 %v1920_v37, %v948_v36  ;;  %v950_v39 = vpop.f32.mrb[21].mxu1  ;;  %v1936_v37 = vld [vmem:[#allocation10 + $0xd0] sm:$0xff] }
 0x32b   : > { %1642 = vmatprep.mubr.f32.mxu0 %v1067_v38 }
 0x32c   : > { %v953_v40 = vpop.f32.mrb[22].mxu1 }
 0x32d   : > { %v1068_v42 = vadd.f32 %v1921_v41, %v953_v40  ;;  %v955_v43 = vpop.f32.mrb[23].mxu1  ;;  %v1937_v41 = vld [vmem:[#allocation10 + $0xd8] sm:$0xff] }
 0x32f   : > { %1643 = vmatmul.mubr.f32.gmra.mrb[74].mxu0 %v1068_v42 }
 0x330   : > { %v958_v44 = vpop.f32.mrb[24].mxu1 }
 0x331   : > { %v1069_v45 = vadd.f32 %v1922_v35, %v958_v44  ;;  %v960_v46 = vpop.f32.mrb[25].mxu1  ;;  %v1938_v35 = vld [vmem:[#allocation10 + $0xe0] sm:$0xff] }
 0x333   : > { %1645 = vmatprep.mubr.f32.mxu0 %v1069_v45 }
 0x334   : > { %v963_v47 = vpop.f32.mrb[26].mxu1 }
 0x335   : > { %v1070_v49 = vadd.f32 %v1923_v48, %v963_v47  ;;  %v965_v50 = vpop.f32.mrb[27].mxu1  ;;  %v1939_v48 = vld [vmem:[#allocation10 + $0xe8] sm:$0xff] }
 0x337   : > { %1646 = vmatmul.mubr.f32.gmra.mrb[76].mxu0 %v1070_v49 }
 0x338   : > { %v968_v51 = vpop.f32.mrb[28].mxu1 }
 0x339   : > { %v1071_v53 = vadd.f32 %v1924_v52, %v968_v51  ;;  %v970_v54 = vpop.f32.mrb[29].mxu1  ;;  %v1940_v52 = vld [vmem:[#allocation10 + $0xf0] sm:$0xff] }
 0x33b   : > { %1648 = vmatprep.mubr.f32.mxu0 %v1071_v53 }
 0x33c   : > { %v973_v55 = vpop.f32.mrb[30].mxu1 }
 0x33d   : > { %v1072_v57 = vadd.f32 %v1925_v56, %v973_v55  ;;  %v975_v58 = vpop.f32.mrb[31].mxu1  ;;  %v1941_v56 = vld [vmem:[#allocation10 + $0xf8] sm:$0xff] }
 0x33f   : > { %1649 = vmatmul.mubr.f32.gmra.mrb[78].mxu0 %v1072_v57 }
 0x340   : > { %v978_v59 = vpop.f32.mrb[32].mxu1 }
 0x341   : > { %v1073_v61 = vadd.f32 %v1926_v60, %v978_v59  ;;  %v980_v62 = vpop.f32.mrb[33].mxu1  ;;  %v2470_v59 = vld [vmem:[%s314_s24] ss:$0 sm:$0xff] }
 0x343   : > { %1651 = vmatprep.mubr.f32.mxu1 %v1073_v61 }
 0x344   : > { %v983_v63 = vpop.f32.mrb[34].mxu1 }
 0x345   : > { %v1074_v1 = vadd.f32 %v1927_v0, %v983_v63  ;;  %v985_v2 = vpop.f32.mrb[35].mxu1 }
 0x347   : > { %1652 = vmatmul.mubr.f32.vlgmr.msra.gmra.mrb[64].mxu1 %v1074_v1 }
 0x348   : > { %v988_v3 = vpop.f32.mrb[36].mxu1 }
 0x349   : > { %v1075_v5 = vadd.f32 %v1928_v4, %v988_v3  ;;  %v990_v6 = vpop.f32.mrb[37].mxu1 }
 0x34b   : > { %1654 = vmatprep.mubr.f32.mxu1 %v1075_v5 }
 0x34c   : > { %v993_v7 = vpop.f32.mrb[38].mxu1 }
 0x34d   : > { %v1076_v9 = vadd.f32 %v1929_v8, %v993_v7  ;;  %v995_v10 = vpop.f32.mrb[39].mxu1 }
 0x34f   : > { %1655 = vmatmul.mubr.f32.gmra.mrb[66].mxu1 %v1076_v9 }
 0x350   : > { %v998_v11 = vpop.f32.mrb[40].mxu1 }
 0x351   : > { %v1077_v13 = vadd.f32 %v1930_v12, %v998_v11  ;;  %v1000_v14 = vpop.f32.mrb[41].mxu1 }
 0x353   : > { %1657 = vmatprep.mubr.f32.mxu1 %v1077_v13 }
 0x354   : > { %v1003_v15 = vpop.f32.mrb[42].mxu1 }
 0x355   : > { %v1078_v17 = vadd.f32 %v1931_v16, %v1003_v15  ;;  %v1005_v18 = vpop.f32.mrb[43].mxu1 }
 0x357   : > { %1658 = vmatmul.mubr.f32.gmra.mrb[68].mxu1 %v1078_v17 }
 0x358   : > { %v1008_v19 = vpop.f32.mrb[44].mxu1 }
 0x359   : > { %v1079_v21 = vadd.f32 %v1932_v20, %v1008_v19  ;;  %v1010_v22 = vpop.f32.mrb[45].mxu1 }
 0x35b   : > { %1660 = vmatprep.mubr.f32.mxu1 %v1079_v21 }
 0x35c   : > { %v1013_v23 = vpop.f32.mrb[46].mxu1 }
 0x35d   : > { %v1080_v25 = vadd.f32 %v1933_v24, %v1013_v23  ;;  %v1015_v26 = vpop.f32.mrb[47].mxu1 }
 0x35f   : > { %1661 = vmatmul.mubr.f32.gmra.mrb[70].mxu1 %v1080_v25 }
 0x360   : > { %v1018_v27 = vpop.f32.mrb[48].mxu1 }
 0x361   : > { %v1081_v29 = vadd.f32 %v1934_v28, %v1018_v27  ;;  %v1020_v30 = vpop.f32.mrb[49].mxu1 }
 0x363   : > { %1663 = vmatprep.mubr.f32.mxu1 %v1081_v29 }
 0x364   : > { %v1023_v31 = vpop.f32.mrb[50].mxu1 }
 0x365   : > { %v1082_v33 = vadd.f32 %v1935_v32, %v1023_v31  ;;  %v1025_v34 = vpop.f32.mrb[51].mxu1 }
 0x367   : > { %1664 = vmatmul.mubr.f32.gmra.mrb[72].mxu1 %v1082_v33 }
 0x368   : > { %v1028_v36 = vpop.f32.mrb[52].mxu1 }
 0x369   : > { %v1083_v38 = vadd.f32 %v1936_v37, %v1028_v36  ;;  %v1030_v39 = vpop.f32.mrb[53].mxu1 }
 0x36b   : > { %1666 = vmatprep.mubr.f32.mxu1 %v1083_v38 }
 0x36c   : > { %v1033_v40 = vpop.f32.mrb[54].mxu1 }
 0x36d   : > { %v1084_v42 = vadd.f32 %v1937_v41, %v1033_v40  ;;  %v1035_v43 = vpop.f32.mrb[55].mxu1 }
 0x36f   : > { %1667 = vmatmul.mubr.f32.gmra.mrb[74].mxu1 %v1084_v42 }
 0x370   : > { %v1038_v44 = vpop.f32.mrb[56].mxu1 }
 0x371   : > { %v1085_v45 = vadd.f32 %v1938_v35, %v1038_v44  ;;  %v1040_v46 = vpop.f32.mrb[57].mxu1 }
 0x373   : > { %1669 = vmatprep.mubr.f32.mxu1 %v1085_v45 }
 0x374   : > { %v1043_v47 = vpop.f32.mrb[58].mxu1 }
 0x375   : > { %v1086_v49 = vadd.f32 %v1939_v48, %v1043_v47  ;;  %v1045_v50 = vpop.f32.mrb[59].mxu1 }
 0x377   : > { %1670 = vmatmul.mubr.f32.gmra.mrb[76].mxu1 %v1086_v49 }
 0x378   : > { %v1048_v51 = vpop.f32.mrb[60].mxu1 }
 0x379   : > { %v1087_v53 = vadd.f32 %v1940_v52, %v1048_v51  ;;  %v1050_v54 = vpop.f32.mrb[61].mxu1 }
 0x37b   : > { %1672 = vmatprep.mubr.f32.mxu1 %v1087_v53 }
 0x37c   : > { %v1053_v55 = vpop.f32.mrb[62].mxu1 }
 0x37d   : > { %v1088_v57 = vadd.f32 %v1941_v56, %v1053_v55  ;;  %v1055_v58 = vpop.f32.mrb[63].mxu1 }
 0x37f   : > { %1673 = vmatmul.mubr.f32.gmra.mrb[78].mxu1 %v1088_v57 }
 0x3da   : > { %v1629_v60 = vpop.f32.mrb[64].mxu0 }
 0x3db   : > { %v1184_v61 = vadd.f32 %v1629_v60, %v2470_v59  ;;  %v1178_v62 = vpop.f32.mrb[65].mxu0 }
 0x3dc   : > { %2069 = shalt.err (!%p2066_p7)
}
 0x3dd   : > { %s2070_s30 = scalar_lea.hbm %s2573_s6, 4096 }
 0x3de   : > { %p2071_p1 = scmp.ne.s32.totalorder %s2573_s6, %s2070_s30  ;;  %p2076_p8 = scmp.lt.u32.totalorder %s2070_s30, %s2573_s6 }
 0x3e0   : > { %p2072_p4 = pnand %p2071_p1, %p1862_p12 }
 0x3e2   : > { %p2073_p5 = pneg %p2072_p4 }
 0x3e4   : > { %p2078_p6 = pnand %p2076_p8, %p2073_p5 }
 0x3e6   : > { %2081 = shalt.err (!%p2078_p6)
}
 0x3e7   : > { %s2170_s14 = smov 128   ;;  %s2171_s8 = smov 8   ;;  %v1179_v63 = vadd.f32 %v2470_v59, %v1178_v62  ;;  %v1338_v0 = vmax.f32 %v1184_v61, 0.0  ;;  %v1632_v2 = vpop.f32.mrb[66].mxu0 }
 0x3e8   : > { %1836 = dma.vmem_to_hbm [thread:$0]  (%p1862_p12), %s1421_s21, 4096, %s2573_s6, [#allocation12], %s2170_s14, %s2170_s14, %s2171_s8   ;;  %v1194_v3 = vadd.f32 %v1632_v2, %v2470_v59  ;;  %v1188_v4 = vpop.f32.mrb[67].mxu0 }
 0x3e9   : > { %v1337_v1 = vmax.f32 %v1179_v63, 0.0  ;;  %1370 = vst [vmem:[#allocation10 + $0x8] sm:$0xff] %v1338_v0  ;;  %v1189_v5 = vadd.f32 %v2470_v59, %v1188_v4  ;;  %s2172_s12 = smov [#allocation10]  }
 0x3ea   : > { %v1340_v6 = vmax.f32 %v1194_v3, 0.0  ;;  %v1635_v8 = vpop.f32.mrb[68].mxu0  ;;  %s1407_s13 = sshll.u32 %s2172_s12, 4  ;;  %s1408_s13 = int_to_ptr.vmem [resolvable:$true] %s1407_s13 }
 0x3eb   : > { %1369 = vst [vmem:[#allocation10] sm:$0xff] %v1337_v1  ;;  %v1339_v7 = vmax.f32 %v1189_v5, 0.0  ;;  %v1204_v9 = vadd.f32 %v1635_v8, %v2470_v59  ;;  %v1198_v10 = vpop.f32.mrb[69].mxu0  ;;  %s2082_s24 = scalar_lea.vmem %s1408_s13, 4096  ;;  %p2089_p3 = scmp.lt.s32.totalorder %s1408_s13, %s1408_s13 }
 0x3ec   : > { %1372 = vst [vmem:[#allocation10 + $0x18] sm:$0xff] %v1340_v6  ;;  %v1199_v11 = vadd.f32 %v2470_v59, %v1198_v10  ;;  %p2083_p10 = scmp.ne.s32.totalorder %s1408_s13, %s2082_s24  ;;  %p2090_p9 = scmp.lt.s32.totalorder %s2082_s24, %s2082_s24 }
 0x3ed   : > { %1371 = vst [vmem:[#allocation10 + $0x10] sm:$0xff] %v1339_v7  ;;  %v1342_v12 = vmax.f32 %v1204_v9, 0.0 }
 0x3ee   : > { %v1341_v13 = vmax.f32 %v1199_v11, 0.0  ;;  %p2084_p13 = pnand %p2083_p10, %p1862_p12  ;;  %p2091_p11 = por %p2090_p9, %p2089_p3 }
 0x3ef   : > { %1374 = vst [vmem:[#allocation10 + $0x28] sm:$0xff] %v1342_v12 }
 0x3f0   : > { %1373 = vst [vmem:[#allocation10 + $0x20] sm:$0xff] %v1341_v13  ;;  %p2085_p0 = pneg %p2084_p13 }
 0x3f2   : > { %v1638_v14 = vpop.f32.mrb[70].mxu0  ;;  %p2092_p2 = pnand %p2091_p11, %p2085_p0 }
 0x3f3   : > { %v1214_v15 = vadd.f32 %v1638_v14, %v2470_v59  ;;  %v1208_v16 = vpop.f32.mrb[71].mxu0 }
 0x3f4   : > { %v1209_v17 = vadd.f32 %v2470_v59, %v1208_v16 }
 0x3f5   : > { %v1344_v18 = vmax.f32 %v1214_v15, 0.0 }
 0x3f6   : > { %v1343_v19 = vmax.f32 %v1209_v17, 0.0 }
 0x3f7   : > { %1376 = vst [vmem:[#allocation10 + $0x38] sm:$0xff] %v1344_v18 }
 0x3f8   : > { %1375 = vst [vmem:[#allocation10 + $0x30] sm:$0xff] %v1343_v19 }
 0x3fa   : > { %v1641_v20 = vpop.f32.mrb[72].mxu0 }
 0x3fb   : > { %v1224_v21 = vadd.f32 %v1641_v20, %v2470_v59  ;;  %v1218_v22 = vpop.f32.mrb[73].mxu0 }
 0x3fc   : > { %v1219_v23 = vadd.f32 %v2470_v59, %v1218_v22 }
 0x3fd   : > { %v1346_v24 = vmax.f32 %v1224_v21, 0.0 }
 0x3fe   : > { %v1345_v25 = vmax.f32 %v1219_v23, 0.0 }
 0x3ff   : > { %1378 = vst [vmem:[#allocation10 + $0x48] sm:$0xff] %v1346_v24 }
 0x400   : > { %1377 = vst [vmem:[#allocation10 + $0x40] sm:$0xff] %v1345_v25 }
 0x402   : > { %v1644_v26 = vpop.f32.mrb[74].mxu0 }
 0x403   : > { %v1234_v27 = vadd.f32 %v1644_v26, %v2470_v59  ;;  %v1228_v28 = vpop.f32.mrb[75].mxu0 }
 0x404   : > { %v1229_v29 = vadd.f32 %v2470_v59, %v1228_v28 }
 0x405   : > { %v1348_v30 = vmax.f32 %v1234_v27, 0.0 }
 0x406   : > { %v1347_v31 = vmax.f32 %v1229_v29, 0.0 }
 0x407   : > { %1380 = vst [vmem:[#allocation10 + $0x58] sm:$0xff] %v1348_v30 }
 0x408   : > { %1379 = vst [vmem:[#allocation10 + $0x50] sm:$0xff] %v1347_v31 }
 0x40a   : > { %v1647_v32 = vpop.f32.mrb[76].mxu0 }
 0x40b   : > { %v1244_v33 = vadd.f32 %v1647_v32, %v2470_v59  ;;  %v1238_v34 = vpop.f32.mrb[77].mxu0 }
 0x40c   : > { %v1239_v36 = vadd.f32 %v2470_v59, %v1238_v34 }
 0x40d   : > { %v1350_v37 = vmax.f32 %v1244_v33, 0.0 }
 0x40e   : > { %v1349_v38 = vmax.f32 %v1239_v36, 0.0 }
 0x40f   : > { %1382 = vst [vmem:[#allocation10 + $0x68] sm:$0xff] %v1350_v37 }
 0x410   : > { %1381 = vst [vmem:[#allocation10 + $0x60] sm:$0xff] %v1349_v38 }
 0x412   : > { %v1650_v39 = vpop.f32.mrb[78].mxu0 }
 0x413   : > { %v1254_v40 = vadd.f32 %v1650_v39, %v2470_v59  ;;  %v1248_v41 = vpop.f32.mrb[79].mxu0 }
 0x414   : > { %v1249_v42 = vadd.f32 %v2470_v59, %v1248_v41 }
 0x415   : > { %v1352_v43 = vmax.f32 %v1254_v40, 0.0 }
 0x416   : > { %v1351_v44 = vmax.f32 %v1249_v42, 0.0 }
 0x417   : > { %1384 = vst [vmem:[#allocation10 + $0x78] sm:$0xff] %v1352_v43 }
 0x418   : > { %1383 = vst [vmem:[#allocation10 + $0x70] sm:$0xff] %v1351_v44 }
 0x41a   : > { %v1653_v35 = vpop.f32.mrb[64].mxu1 }
 0x41b   : > { %v1264_v45 = vadd.f32 %v1653_v35, %v2470_v59  ;;  %v1258_v46 = vpop.f32.mrb[65].mxu1 }
 0x41c   : > { %v1259_v47 = vadd.f32 %v2470_v59, %v1258_v46 }
 0x41d   : > { %v1354_v48 = vmax.f32 %v1264_v45, 0.0 }
 0x41e   : > { %v1353_v49 = vmax.f32 %v1259_v47, 0.0 }
 0x41f   : > { %1386 = vst [vmem:[#allocation10 + $0x88] sm:$0xff] %v1354_v48 }
 0x420   : > { %1385 = vst [vmem:[#allocation10 + $0x80] sm:$0xff] %v1353_v49 }
 0x422   : > { %v1656_v50 = vpop.f32.mrb[66].mxu1 }
 0x423   : > { %v1274_v51 = vadd.f32 %v1656_v50, %v2470_v59  ;;  %v1268_v52 = vpop.f32.mrb[67].mxu1 }
 0x424   : > { %v1269_v53 = vadd.f32 %v2470_v59, %v1268_v52 }
 0x425   : > { %v1356_v54 = vmax.f32 %v1274_v51, 0.0 }
 0x426   : > { %v1355_v55 = vmax.f32 %v1269_v53, 0.0 }
 0x427   : > { %1388 = vst [vmem:[#allocation10 + $0x98] sm:$0xff] %v1356_v54 }
 0x428   : > { %1387 = vst [vmem:[#allocation10 + $0x90] sm:$0xff] %v1355_v55 }
 0x42a   : > { %v1659_v56 = vpop.f32.mrb[68].mxu1 }
 0x42b   : > { %v1284_v57 = vadd.f32 %v1659_v56, %v2470_v59  ;;  %v1278_v58 = vpop.f32.mrb[69].mxu1 }
 0x42c   : > { %v1279_v60 = vadd.f32 %v2470_v59, %v1278_v58 }
 0x42d   : > { %v1358_v61 = vmax.f32 %v1284_v57, 0.0 }
 0x42e   : > { %v1357_v62 = vmax.f32 %v1279_v60, 0.0 }
 0x42f   : > { %1390 = vst [vmem:[#allocation10 + $0xa8] sm:$0xff] %v1358_v61 }
 0x430   : > { %1389 = vst [vmem:[#allocation10 + $0xa0] sm:$0xff] %v1357_v62 }
 0x432   : > { %v1662_v63 = vpop.f32.mrb[70].mxu1 }
 0x433   : > { %v1294_v0 = vadd.f32 %v1662_v63, %v2470_v59  ;;  %v1288_v1 = vpop.f32.mrb[71].mxu1 }
 0x434   : > { %v1289_v2 = vadd.f32 %v2470_v59, %v1288_v1 }
 0x435   : > { %v1360_v3 = vmax.f32 %v1294_v0, 0.0 }
 0x436   : > { %v1359_v4 = vmax.f32 %v1289_v2, 0.0 }
 0x437   : > { %1392 = vst [vmem:[#allocation10 + $0xb8] sm:$0xff] %v1360_v3 }
 0x438   : > { %1391 = vst [vmem:[#allocation10 + $0xb0] sm:$0xff] %v1359_v4 }
 0x43a   : > { %v1665_v5 = vpop.f32.mrb[72].mxu1 }
 0x43b   : > { %v1304_v6 = vadd.f32 %v1665_v5, %v2470_v59  ;;  %v1298_v7 = vpop.f32.mrb[73].mxu1 }
 0x43c   : > { %v1299_v8 = vadd.f32 %v2470_v59, %v1298_v7 }
 0x43d   : > { %v1362_v9 = vmax.f32 %v1304_v6, 0.0 }
 0x43e   : > { %v1361_v10 = vmax.f32 %v1299_v8, 0.0 }
 0x43f   : > { %1394 = vst [vmem:[#allocation10 + $0xc8] sm:$0xff] %v1362_v9 }
 0x440   : > { %1393 = vst [vmem:[#allocation10 + $0xc0] sm:$0xff] %v1361_v10 }
 0x442   : > { %v1668_v11 = vpop.f32.mrb[74].mxu1 }
 0x443   : > { %v1314_v12 = vadd.f32 %v1668_v11, %v2470_v59  ;;  %v1308_v13 = vpop.f32.mrb[75].mxu1 }
 0x444   : > { %v1309_v14 = vadd.f32 %v2470_v59, %v1308_v13 }
 0x445   : > { %v1364_v15 = vmax.f32 %v1314_v12, 0.0 }
 0x446   : > { %v1363_v16 = vmax.f32 %v1309_v14, 0.0 }
 0x447   : > { %1396 = vst [vmem:[#allocation10 + $0xd8] sm:$0xff] %v1364_v15 }
 0x448   : > { %1395 = vst [vmem:[#allocation10 + $0xd0] sm:$0xff] %v1363_v16 }
 0x44a   : > { %v1671_v17 = vpop.f32.mrb[76].mxu1 }
 0x44b   : > { %v1324_v18 = vadd.f32 %v1671_v17, %v2470_v59  ;;  %v1318_v19 = vpop.f32.mrb[77].mxu1 }
 0x44c   : > { %v1319_v20 = vadd.f32 %v2470_v59, %v1318_v19 }
 0x44d   : > { %v1366_v21 = vmax.f32 %v1324_v18, 0.0 }
 0x44e   : > { %v1365_v22 = vmax.f32 %v1319_v20, 0.0 }
 0x44f   : > { %1398 = vst [vmem:[#allocation10 + $0xe8] sm:$0xff] %v1366_v21 }
 0x450   : > { %1397 = vst [vmem:[#allocation10 + $0xe0] sm:$0xff] %v1365_v22 }
 0x452   : > { %v1674_v23 = vpop.f32.mrb[78].mxu1 }
 0x453   : > { %v1334_v24 = vadd.f32 %v1674_v23, %v2470_v59  ;;  %v1328_v25 = vpop.f32.mrb[79].mxu1 }
 0x454   : > { %v1329_v26 = vadd.f32 %v2470_v59, %v1328_v25 }
 0x455   : > { %v1368_v27 = vmax.f32 %v1334_v24, 0.0 }
 0x456   : > { %v1367_v28 = vmax.f32 %v1329_v26, 0.0 }
 0x457   : > { %1400 = vst [vmem:[#allocation10 + $0xf8] sm:$0xff] %v1368_v27 }
 0x458   : > { %1399 = vst [vmem:[#allocation10 + $0xf0] sm:$0xff] %v1367_v28 }
 0x459   : > { %2095 = shalt.err (!%p2092_p2)
}
 0x45a   : > { %s2096_s20 = scalar_lea.hbm %s2572_s5, 4096 }
 0x45b   : > { %p2097_p7 = scmp.ne.s32.totalorder %s2572_s5, %s2096_s20  ;;  %p2102_p5 = scmp.lt.u32.totalorder %s2096_s20, %s2572_s5 }
 0x45d   : > { %p2098_p1 = pnand %p2097_p7, %p1862_p12 }
 0x45f   : > { %p2099_p4 = pneg %p2098_p1 }
 0x461   : > { %p2104_p8 = pnand %p2102_p5, %p2099_p4 }
 0x463   : > { %2107 = shalt.err (!%p2104_p8)
}
 0x464   : > { %1834 = dma.vmem_to_hbm [thread:$0]  (%p1862_p12), %s1408_s13, 4096, %s2572_s5, [#allocation4], %s2170_s14, %s2170_s14, %s2171_s8  }
 0x465   : > { %2137 = dma.done.wait (%p1862_p12), [#allocation4], 4096  }
 0x466   : > { %2139 = vsyncadd (%p1862_p12), [#allocation4], 4294963200 }
 0x467   : > { %2141 = dma.done.wait (%p1862_p12), [#allocation12], 4096  }
 0x468   : > { %2143 = vsyncadd (%p1862_p12), [#allocation12], 4294963200 }
 0x469 PF: > { %p21_p6 = scmp.ge.s32.totalorder %s2333_s17, 4   ;;  %s2589_s21 = smov %s2150_s22 }
 0x46a   : > { %s2590_s22 = smov %s2154_s23  ;;  %s2591_s23 = smov %s2343_s19 }
 0x46b   : > { %s2592_s24 = smov %s2333_s17  ;;  %23 = sbr.rel (!%p21_p6) target bundleno = 7 (0x7), region = 105 }
 0x472   :  { %1440 = vsyncpa [#allocation3], 1 }
 0x473   :  { %1442 = vsyncpa [#allocation3 + $0x1], 1 }
 0x474   :  { %1443 = vsyncpa [#allocation6], 1 }
 0x475   :  { %1444 = vsyncpa [#allocation9], 1 }
 0x476   :  { %1446 = vsyncpa [#allocation9 + $0x1], 1 }
 0x477   :  { %1447 = vsyncpa [#allocation4], 1 }
 0x478   :  { %1449 = vsyncpa [#allocation4 + $0x1], 1 }
 0x479   :  { %1450 = vsyncpa [#allocation12], 1 }

</bundles_post_ra>
